<compile_context>
chip_gen: v5e
topology: v5e:2x2
jax: 0.10.0
libtpu: 0.0.40
codegen_flags: <defaults>
</compile_context>

<pallas_src>
import jax
import jax.numpy as jnp
from jax import lax
from jax.experimental import pallas as pl
from jax.experimental.pallas import tpu as pltpu

POOL_KERNELS = (5, 9, 13)          # original SPP pool sizes (reference only)
K = 5                              # cascaded pool size: 5 applied 3x == 5, 9, 13
PAD = K // 2                       # 2
_VMEM_BUDGET = 40 * 1024 * 1024    # per-step working-set budget (fits all gens)


def _pool_identity(dtype):
    """Identity element for `max` in this dtype (used as padding value)."""
    dtype = jnp.dtype(dtype)
    if jnp.issubdtype(dtype, jnp.floating):
        return float("-inf")
    return int(jnp.iinfo(dtype).min)


def _spp_yolo_kernel(x_ref, o0_ref, o1_ref, o2_ref, o3_ref, pad_ref):
    # x_ref            : (1, H, W, TC)        NHWC channel slab, VMEM
    # o0..o3_ref       : (1, H, W, TC)        x, pool5, pool9, pool13
    # pad_ref          : (1, H+4, W+4, TC)    max-identity-haloed scratch, VMEM
    _, H, W, C = x_ref.shape
    dtype = x_ref.dtype
    neg = _pool_identity(dtype)
    Hp = H + 2 * PAD
    Wp = W + 2 * PAD

    # Fill only the halo strips with the max-identity. The cascade stages only
    # ever overwrite the centre, so one fill per grid step suffices.
    pad_ref[:, 0:PAD, :, :] = jnp.full((1, PAD, Wp, C), neg, dtype=dtype)
    pad_ref[:, PAD + H:Hp, :, :] = jnp.full((1, PAD, Wp, C), neg, dtype=dtype)
    pad_ref[:, PAD:PAD + H, 0:PAD, :] = jnp.full((1, H, PAD, C), neg, dtype=dtype)
    pad_ref[:, PAD:PAD + H, PAD + W:Wp, :] = jnp.full((1, H, PAD, C), neg, dtype=dtype)

    x = x_ref[...]
    o0_ref[...] = x                               # identity branch of the concat

    cur = x
    for out_ref in (o1_ref, o2_ref, o3_ref):      # SPPF cascade: 5 -> 9 -> 13
        # Drop the current signal into the scratch centre (halo stays -inf).
        pad_ref[:, PAD:PAD + H, PAD:PAD + W, :] = cur

        # Row pass: running max over the K vertical taps. H is an untiled
        # leading dim, so each tap is a cheap whole-plane slice of the scratch.
        g = pad_ref[:, 0:H, :, :]                 # dy = 0 peeled as init
        for dy in range(1, K):
            g = jnp.maximum(g, pad_ref[:, dy:dy + H, :, :])

        # Column pass: running max over the K horizontal (sublane) taps.
        cur = g[:, :, 0:W, :]                     # dx = 0 peeled as init
        for dx in range(1, K):
            cur = jnp.maximum(cur, g[:, :, dx:dx + W, :])

        out_ref[...] = cur


def _channel_tile(C, H, W, itemsize):
    """Largest channel tile (full C, or a multiple of 128 that divides C) whose
    per-step working set fits the VMEM budget."""
    def est(tc):
        # double-buffered input + 4 outputs, plus the padded scratch
        return itemsize * tc * (2 * 5 * H * W + (H + 2 * PAD) * (W + 2 * PAD))

    if est(C) <= _VMEM_BUDGET:
        return C
    cands = [t for t in range(C - C % 128, 0, -128) if t > 0 and C % t == 0]
    for t in cands:
        if est(t) <= _VMEM_BUDGET:
            return t
    # Extremely large spatial extents would additionally need H tiling with a
    # halo exchange; out of scope for SPP-sized feature maps.
    return cands[-1] if cands else C


@jax.jit
def spp_yolo(x):
    """SPP_YOLO forward. x: (N, C, H, W) -> (N, 4*C, H, W)."""
    N, C, H, W = x.shape
    TC = _channel_tile(C, H, W, jnp.dtype(x.dtype).itemsize)

    # Channels-last inside the kernel so C sits on the 128-lane axis.
    x_nhwc = jnp.transpose(x, (0, 2, 3, 1))       # (N, H, W, C)

    branch_shape = jax.ShapeDtypeStruct((N, H, W, C), x.dtype)
    branch_spec = pl.BlockSpec((1, H, W, TC), lambda n, c: (n, 0, 0, c))

    y0, y1, y2, y3 = pl.pallas_call(
        _spp_yolo_kernel,
        out_shape=(branch_shape,) * 4,
        grid_spec=pltpu.PrefetchScalarGridSpec(
            num_scalar_prefetch=0,
            grid=(N, C // TC),
            in_specs=[branch_spec],
            out_specs=[branch_spec] * 4,
            scratch_shapes=[
                pltpu.VMEM((1, H + 2 * PAD, W + 2 * PAD, TC), x.dtype),
            ],
        ),
        compiler_params=pltpu.CompilerParams(
            dimension_semantics=("parallel", "parallel"),
            vmem_limit_bytes=64 * 1024 * 1024,
        ),
    )(x_nhwc)

    # Back to NCHW and concatenate along channels: [x, pool5, pool9, pool13].
    def to_nchw(t):
        return jnp.transpose(t, (0, 3, 1, 2))

    return jnp.concatenate(
        [to_nchw(y0), to_nchw(y1), to_nchw(y2), to_nchw(y3)], axis=1)


def _maxpool_same_ref(x, k):
    """Pure-JAX reference: max pool, stride 1, 'same' padding with -inf."""
    p = k // 2
    return lax.reduce_window(
        x,
        -jnp.inf,
        lax.max,
        window_dimensions=(1, 1, k, k),
        window_strides=(1, 1, 1, 1),
        padding=((0, 0), (0, 0), (p, p), (p, p)),
    )


def spp_yolo_ref(x):
    pools = [_maxpool_same_ref(x, k) for k in POOL_KERNELS]
    return jnp.concatenate([x] + pools, axis=1)


if __name__ == "__main__":
    key = jax.random.PRNGKey(0)
    N, C, H, W = 2, 4, 16, 16
    x = jax.random.normal(key, (N, C, H, W), dtype=jnp.float32)

    out = jax.block_until_ready(spp_yolo(x))
    ref = jax.block_until_ready(spp_yolo_ref(x))

    assert out.shape == (N, 4 * C, H, W), out.shape
    assert jnp.allclose(out, ref), "Pallas SPP_YOLO mismatch vs reference"

    print("KERNEL_OK")
</pallas_src>

<mosaic_0001>
module attributes {stable_mosaic.version = 11 : i64} {
  func.func @_spp_yolo_kernel(%arg0: i32, %arg1: i32, %arg2: memref<1x16x16x4xf32, #tpu.memory_space<vmem>>, %arg3: memref<1x16x16x4xf32, #tpu.memory_space<vmem>>, %arg4: memref<1x16x16x4xf32, #tpu.memory_space<vmem>>, %arg5: memref<1x16x16x4xf32, #tpu.memory_space<vmem>>, %arg6: memref<1x16x16x4xf32, #tpu.memory_space<vmem>>, %arg7: memref<1x20x20x4xf32, #tpu.memory_space<vmem>>) attributes {dimension_semantics = [#tpu.dimension_semantics<parallel>, #tpu.dimension_semantics<parallel>], iteration_bounds = array<i64: 2, 1>, scalar_prefetch = 0 : i64, scratch_operands = 1 : i64, tpu.core_type = #tpu.core_type<tc>, window_params = [{transform_indices = @transform_0, window_bounds = array<i64: 1, 16, 16, 4>}, {transform_indices = @transform_1, window_bounds = array<i64: 1, 16, 16, 4>}, {transform_indices = @transform_2, window_bounds = array<i64: 1, 16, 16, 4>}, {transform_indices = @transform_3, window_bounds = array<i64: 1, 16, 16, 4>}, {transform_indices = @transform_4, window_bounds = array<i64: 1, 16, 16, 4>}]} {
    %cst = arith.constant 0xFF800000 : f32
    %0 = vector.broadcast %cst : f32 to vector<1x2x20x4xf32>
    %c0 = arith.constant 0 : index
    %c0_0 = arith.constant 0 : index
    %c0_1 = arith.constant 0 : index
    %c0_2 = arith.constant 0 : index
    %1 = vector.load %arg7[%c0, %c0_0, %c0_1, %c0_2] : memref<1x20x20x4xf32, #tpu.memory_space<vmem>>, vector<1x2x20x4xf32>
    tpu.vector_store %arg7[%c0, %c0_0, %c0_1, %c0_2], %0 {strides = array<i32>} : memref<1x20x20x4xf32, #tpu.memory_space<vmem>>, vector<1x2x20x4xf32>,
    %cst_3 = arith.constant 0xFF800000 : f32
    %2 = vector.broadcast %cst_3 : f32 to vector<1x2x20x4xf32>
    %c0_4 = arith.constant 0 : index
    %c18 = arith.constant 18 : index
    %c0_5 = arith.constant 0 : index
    %c0_6 = arith.constant 0 : index
    %3 = vector.load %arg7[%c0_4, %c18, %c0_5, %c0_6] : memref<1x20x20x4xf32, #tpu.memory_space<vmem>>, vector<1x2x20x4xf32>
    tpu.vector_store %arg7[%c0_4, %c18, %c0_5, %c0_6], %2 {strides = array<i32>} : memref<1x20x20x4xf32, #tpu.memory_space<vmem>>, vector<1x2x20x4xf32>,
    %cst_7 = arith.constant 0xFF800000 : f32
    %4 = vector.broadcast %cst_7 : f32 to vector<1x16x2x4xf32>
    %c0_8 = arith.constant 0 : index
    %c2 = arith.constant 2 : index
    %c0_9 = arith.constant 0 : index
    %c0_10 = arith.constant 0 : index
    %5 = vector.load %arg7[%c0_8, %c2, %c0_9, %c0_10] : memref<1x20x20x4xf32, #tpu.memory_space<vmem>>, vector<1x16x2x4xf32>
    tpu.vector_store %arg7[%c0_8, %c2, %c0_9, %c0_10], %4 {strides = array<i32>} : memref<1x20x20x4xf32, #tpu.memory_space<vmem>>, vector<1x16x2x4xf32>,
    %cst_11 = arith.constant 0xFF800000 : f32
    %6 = vector.broadcast %cst_11 : f32 to vector<1x16x2x4xf32>
    %c0_12 = arith.constant 0 : index
    %c2_13 = arith.constant 2 : index
    %c18_14 = arith.constant 18 : index
    %c0_15 = arith.constant 0 : index
    %7 = vector.load %arg7[%c0_12, %c2_13, %c18_14, %c0_15] : memref<1x20x20x4xf32, #tpu.memory_space<vmem>>, vector<1x16x2x4xf32>
    tpu.vector_store %arg7[%c0_12, %c2_13, %c18_14, %c0_15], %6 {strides = array<i32>} : memref<1x20x20x4xf32, #tpu.memory_space<vmem>>, vector<1x16x2x4xf32>,
    %c0_16 = arith.constant 0 : index
    %c0_17 = arith.constant 0 : index
    %c0_18 = arith.constant 0 : index
    %c0_19 = arith.constant 0 : index
    %8 = vector.load %arg2[%c0_16, %c0_17, %c0_18, %c0_19] : memref<1x16x16x4xf32, #tpu.memory_space<vmem>>, vector<1x16x16x4xf32>
    %c0_20 = arith.constant 0 : index
    %c0_21 = arith.constant 0 : index
    %c0_22 = arith.constant 0 : index
    %c0_23 = arith.constant 0 : index
    %9 = vector.load %arg3[%c0_20, %c0_21, %c0_22, %c0_23] : memref<1x16x16x4xf32, #tpu.memory_space<vmem>>, vector<1x16x16x4xf32>
    tpu.vector_store %arg3[%c0_20, %c0_21, %c0_22, %c0_23], %8 {strides = array<i32>} : memref<1x16x16x4xf32, #tpu.memory_space<vmem>>, vector<1x16x16x4xf32>,
    %c0_24 = arith.constant 0 : index
    %c2_25 = arith.constant 2 : index
    %c2_26 = arith.constant 2 : index
    %c0_27 = arith.constant 0 : index
    %10 = vector.load %arg7[%c0_24, %c2_25, %c2_26, %c0_27] : memref<1x20x20x4xf32, #tpu.memory_space<vmem>>, vector<1x16x16x4xf32>
    tpu.vector_store %arg7[%c0_24, %c2_25, %c2_26, %c0_27], %8 {strides = array<i32>} : memref<1x20x20x4xf32, #tpu.memory_space<vmem>>, vector<1x16x16x4xf32>,
    %c0_28 = arith.constant 0 : index
    %c0_29 = arith.constant 0 : index
    %c0_30 = arith.constant 0 : index
    %c0_31 = arith.constant 0 : index
    %11 = vector.load %arg7[%c0_28, %c0_29, %c0_30, %c0_31] : memref<1x20x20x4xf32, #tpu.memory_space<vmem>>, vector<1x16x20x4xf32>
    %c0_32 = arith.constant 0 : index
    %c1 = arith.constant 1 : index
    %c0_33 = arith.constant 0 : index
    %c0_34 = arith.constant 0 : index
    %12 = vector.load %arg7[%c0_32, %c1, %c0_33, %c0_34] : memref<1x20x20x4xf32, #tpu.memory_space<vmem>>, vector<1x16x20x4xf32>
    %13 = arith.maximumf %11, %12 : vector<1x16x20x4xf32>
    %c0_35 = arith.constant 0 : index
    %c2_36 = arith.constant 2 : index
    %c0_37 = arith.constant 0 : index
    %c0_38 = arith.constant 0 : index
    %14 = vector.load %arg7[%c0_35, %c2_36, %c0_37, %c0_38] : memref<1x20x20x4xf32, #tpu.memory_space<vmem>>, vector<1x16x20x4xf32>
    %15 = arith.maximumf %13, %14 : vector<1x16x20x4xf32>
    %c0_39 = arith.constant 0 : index
    %c3 = arith.constant 3 : index
    %c0_40 = arith.constant 0 : index
    %c0_41 = arith.constant 0 : index
    %16 = vector.load %arg7[%c0_39, %c3, %c0_40, %c0_41] : memref<1x20x20x4xf32, #tpu.memory_space<vmem>>, vector<1x16x20x4xf32>
    %17 = arith.maximumf %15, %16 : vector<1x16x20x4xf32>
    %c0_42 = arith.constant 0 : index
    %c4 = arith.constant 4 : index
    %c0_43 = arith.constant 0 : index
    %c0_44 = arith.constant 0 : index
    %18 = vector.load %arg7[%c0_42, %c4, %c0_43, %c0_44] : memref<1x20x20x4xf32, #tpu.memory_space<vmem>>, vector<1x16x20x4xf32>
    %19 = arith.maximumf %17, %18 : vector<1x16x20x4xf32>
    %20 = vector.extract_strided_slice %19 {offsets = [0, 0, 0, 0], sizes = [1, 16, 16, 4], strides = [1, 1, 1, 1]} : vector<1x16x20x4xf32> to vector<1x16x16x4xf32>
    %21 = vector.extract_strided_slice %19 {offsets = [0, 0, 1, 0], sizes = [1, 16, 16, 4], strides = [1, 1, 1, 1]} : vector<1x16x20x4xf32> to vector<1x16x16x4xf32>
    %22 = arith.maximumf %20, %21 : vector<1x16x16x4xf32>
    %23 = vector.extract_strided_slice %19 {offsets = [0, 0, 2, 0], sizes = [1, 16, 16, 4], strides = [1, 1, 1, 1]} : vector<1x16x20x4xf32> to vector<1x16x16x4xf32>
    %24 = arith.maximumf %22, %23 : vector<1x16x16x4xf32>
    %25 = vector.extract_strided_slice %19 {offsets = [0, 0, 3, 0], sizes = [1, 16, 16, 4], strides = [1, 1, 1, 1]} : vector<1x16x20x4xf32> to vector<1x16x16x4xf32>
    %26 = arith.maximumf %24, %25 : vector<1x16x16x4xf32>
    %27 = vector.extract_strided_slice %19 {offsets = [0, 0, 4, 0], sizes = [1, 16, 16, 4], strides = [1, 1, 1, 1]} : vector<1x16x20x4xf32> to vector<1x16x16x4xf32>
    %28 = arith.maximumf %26, %27 : vector<1x16x16x4xf32>
    %c0_45 = arith.constant 0 : index
    %c0_46 = arith.constant 0 : index
    %c0_47 = arith.constant 0 : index
    %c0_48 = arith.constant 0 : index
    %29 = vector.load %arg4[%c0_45, %c0_46, %c0_47, %c0_48] : memref<1x16x16x4xf32, #tpu.memory_space<vmem>>, vector<1x16x16x4xf32>
    tpu.vector_store %arg4[%c0_45, %c0_46, %c0_47, %c0_48], %28 {strides = array<i32>} : memref<1x16x16x4xf32, #tpu.memory_space<vmem>>, vector<1x16x16x4xf32>,
    %c0_49 = arith.constant 0 : index
    %c2_50 = arith.constant 2 : index
    %c2_51 = arith.constant 2 : index
    %c0_52 = arith.constant 0 : index
    %30 = vector.load %arg7[%c0_49, %c2_50, %c2_51, %c0_52] : memref<1x20x20x4xf32, #tpu.memory_space<vmem>>, vector<1x16x16x4xf32>
    tpu.vector_store %arg7[%c0_49, %c2_50, %c2_51, %c0_52], %28 {strides = array<i32>} : memref<1x20x20x4xf32, #tpu.memory_space<vmem>>, vector<1x16x16x4xf32>,
    %c0_53 = arith.constant 0 : index
    %c0_54 = arith.constant 0 : index
    %c0_55 = arith.constant 0 : index
    %c0_56 = arith.constant 0 : index
    %31 = vector.load %arg7[%c0_53, %c0_54, %c0_55, %c0_56] : memref<1x20x20x4xf32, #tpu.memory_space<vmem>>, vector<1x16x20x4xf32>
    %c0_57 = arith.constant 0 : index
    %c1_58 = arith.constant 1 : index
    %c0_59 = arith.constant 0 : index
    %c0_60 = arith.constant 0 : index
    %32 = vector.load %arg7[%c0_57, %c1_58, %c0_59, %c0_60] : memref<1x20x20x4xf32, #tpu.memory_space<vmem>>, vector<1x16x20x4xf32>
    %33 = arith.maximumf %31, %32 : vector<1x16x20x4xf32>
    %c0_61 = arith.constant 0 : index
    %c2_62 = arith.constant 2 : index
    %c0_63 = arith.constant 0 : index
    %c0_64 = arith.constant 0 : index
    %34 = vector.load %arg7[%c0_61, %c2_62, %c0_63, %c0_64] : memref<1x20x20x4xf32, #tpu.memory_space<vmem>>, vector<1x16x20x4xf32>
    %35 = arith.maximumf %33, %34 : vector<1x16x20x4xf32>
    %c0_65 = arith.constant 0 : index
    %c3_66 = arith.constant 3 : index
    %c0_67 = arith.constant 0 : index
    %c0_68 = arith.constant 0 : index
    %36 = vector.load %arg7[%c0_65, %c3_66, %c0_67, %c0_68] : memref<1x20x20x4xf32, #tpu.memory_space<vmem>>, vector<1x16x20x4xf32>
    %37 = arith.maximumf %35, %36 : vector<1x16x20x4xf32>
    %c0_69 = arith.constant 0 : index
    %c4_70 = arith.constant 4 : index
    %c0_71 = arith.constant 0 : index
    %c0_72 = arith.constant 0 : index
    %38 = vector.load %arg7[%c0_69, %c4_70, %c0_71, %c0_72] : memref<1x20x20x4xf32, #tpu.memory_space<vmem>>, vector<1x16x20x4xf32>
    %39 = arith.maximumf %37, %38 : vector<1x16x20x4xf32>
    %40 = vector.extract_strided_slice %39 {offsets = [0, 0, 0, 0], sizes = [1, 16, 16, 4], strides = [1, 1, 1, 1]} : vector<1x16x20x4xf32> to vector<1x16x16x4xf32>
    %41 = vector.extract_strided_slice %39 {offsets = [0, 0, 1, 0], sizes = [1, 16, 16, 4], strides = [1, 1, 1, 1]} : vector<1x16x20x4xf32> to vector<1x16x16x4xf32>
    %42 = arith.maximumf %40, %41 : vector<1x16x16x4xf32>
    %43 = vector.extract_strided_slice %39 {offsets = [0, 0, 2, 0], sizes = [1, 16, 16, 4], strides = [1, 1, 1, 1]} : vector<1x16x20x4xf32> to vector<1x16x16x4xf32>
    %44 = arith.maximumf %42, %43 : vector<1x16x16x4xf32>
    %45 = vector.extract_strided_slice %39 {offsets = [0, 0, 3, 0], sizes = [1, 16, 16, 4], strides = [1, 1, 1, 1]} : vector<1x16x20x4xf32> to vector<1x16x16x4xf32>
    %46 = arith.maximumf %44, %45 : vector<1x16x16x4xf32>
    %47 = vector.extract_strided_slice %39 {offsets = [0, 0, 4, 0], sizes = [1, 16, 16, 4], strides = [1, 1, 1, 1]} : vector<1x16x20x4xf32> to vector<1x16x16x4xf32>
    %48 = arith.maximumf %46, %47 : vector<1x16x16x4xf32>
    %c0_73 = arith.constant 0 : index
    %c0_74 = arith.constant 0 : index
    %c0_75 = arith.constant 0 : index
    %c0_76 = arith.constant 0 : index
    %49 = vector.load %arg5[%c0_73, %c0_74, %c0_75, %c0_76] : memref<1x16x16x4xf32, #tpu.memory_space<vmem>>, vector<1x16x16x4xf32>
    tpu.vector_store %arg5[%c0_73, %c0_74, %c0_75, %c0_76], %48 {strides = array<i32>} : memref<1x16x16x4xf32, #tpu.memory_space<vmem>>, vector<1x16x16x4xf32>,
    %c0_77 = arith.constant 0 : index
    %c2_78 = arith.constant 2 : index
    %c2_79 = arith.constant 2 : index
    %c0_80 = arith.constant 0 : index
    %50 = vector.load %arg7[%c0_77, %c2_78, %c2_79, %c0_80] : memref<1x20x20x4xf32, #tpu.memory_space<vmem>>, vector<1x16x16x4xf32>
    tpu.vector_store %arg7[%c0_77, %c2_78, %c2_79, %c0_80], %48 {strides = array<i32>} : memref<1x20x20x4xf32, #tpu.memory_space<vmem>>, vector<1x16x16x4xf32>,
    %c0_81 = arith.constant 0 : index
    %c0_82 = arith.constant 0 : index
    %c0_83 = arith.constant 0 : index
    %c0_84 = arith.constant 0 : index
    %51 = vector.load %arg7[%c0_81, %c0_82, %c0_83, %c0_84] : memref<1x20x20x4xf32, #tpu.memory_space<vmem>>, vector<1x16x20x4xf32>
    %c0_85 = arith.constant 0 : index
    %c1_86 = arith.constant 1 : index
    %c0_87 = arith.constant 0 : index
    %c0_88 = arith.constant 0 : index
    %52 = vector.load %arg7[%c0_85, %c1_86, %c0_87, %c0_88] : memref<1x20x20x4xf32, #tpu.memory_space<vmem>>, vector<1x16x20x4xf32>
    %53 = arith.maximumf %51, %52 : vector<1x16x20x4xf32>
    %c0_89 = arith.constant 0 : index
    %c2_90 = arith.constant 2 : index
    %c0_91 = arith.constant 0 : index
    %c0_92 = arith.constant 0 : index
    %54 = vector.load %arg7[%c0_89, %c2_90, %c0_91, %c0_92] : memref<1x20x20x4xf32, #tpu.memory_space<vmem>>, vector<1x16x20x4xf32>
    %55 = arith.maximumf %53, %54 : vector<1x16x20x4xf32>
    %c0_93 = arith.constant 0 : index
    %c3_94 = arith.constant 3 : index
    %c0_95 = arith.constant 0 : index
    %c0_96 = arith.constant 0 : index
    %56 = vector.load %arg7[%c0_93, %c3_94, %c0_95, %c0_96] : memref<1x20x20x4xf32, #tpu.memory_space<vmem>>, vector<1x16x20x4xf32>
    %57 = arith.maximumf %55, %56 : vector<1x16x20x4xf32>
    %c0_97 = arith.constant 0 : index
    %c4_98 = arith.constant 4 : index
    %c0_99 = arith.constant 0 : index
    %c0_100 = arith.constant 0 : index
    %58 = vector.load %arg7[%c0_97, %c4_98, %c0_99, %c0_100] : memref<1x20x20x4xf32, #tpu.memory_space<vmem>>, vector<1x16x20x4xf32>
    %59 = arith.maximumf %57, %58 : vector<1x16x20x4xf32>
    %60 = vector.extract_strided_slice %59 {offsets = [0, 0, 0, 0], sizes = [1, 16, 16, 4], strides = [1, 1, 1, 1]} : vector<1x16x20x4xf32> to vector<1x16x16x4xf32>
    %61 = vector.extract_strided_slice %59 {offsets = [0, 0, 1, 0], sizes = [1, 16, 16, 4], strides = [1, 1, 1, 1]} : vector<1x16x20x4xf32> to vector<1x16x16x4xf32>
    %62 = arith.maximumf %60, %61 : vector<1x16x16x4xf32>
    %63 = vector.extract_strided_slice %59 {offsets = [0, 0, 2, 0], sizes = [1, 16, 16, 4], strides = [1, 1, 1, 1]} : vector<1x16x20x4xf32> to vector<1x16x16x4xf32>
    %64 = arith.maximumf %62, %63 : vector<1x16x16x4xf32>
    %65 = vector.extract_strided_slice %59 {offsets = [0, 0, 3, 0], sizes = [1, 16, 16, 4], strides = [1, 1, 1, 1]} : vector<1x16x20x4xf32> to vector<1x16x16x4xf32>
    %66 = arith.maximumf %64, %65 : vector<1x16x16x4xf32>
    %67 = vector.extract_strided_slice %59 {offsets = [0, 0, 4, 0], sizes = [1, 16, 16, 4], strides = [1, 1, 1, 1]} : vector<1x16x20x4xf32> to vector<1x16x16x4xf32>
    %68 = arith.maximumf %66, %67 : vector<1x16x16x4xf32>
    %c0_101 = arith.constant 0 : index
    %c0_102 = arith.constant 0 : index
    %c0_103 = arith.constant 0 : index
    %c0_104 = arith.constant 0 : index
    %69 = vector.load %arg6[%c0_101, %c0_102, %c0_103, %c0_104] : memref<1x16x16x4xf32, #tpu.memory_space<vmem>>, vector<1x16x16x4xf32>
    tpu.vector_store %arg6[%c0_101, %c0_102, %c0_103, %c0_104], %68 {strides = array<i32>} : memref<1x16x16x4xf32, #tpu.memory_space<vmem>>, vector<1x16x16x4xf32>,
    return
  }
  func.func @transform_0(%arg0: i32, %arg1: i32) -> (i32, i32, i32, i32) {
    %c0_i32 = arith.constant 0 : i32
    %c0_i32_0 = arith.constant 0 : i32
    %c0_i32_1 = arith.constant 0 : i32
    return %arg0, %c0_i32, %c0_i32_0, %arg1 : i32, i32, i32, i32
  }
  func.func @transform_1(%arg0: i32, %arg1: i32) -> (i32, i32, i32, i32) {
    %c0_i32 = arith.constant 0 : i32
    %c0_i32_0 = arith.constant 0 : i32
    %c0_i32_1 = arith.constant 0 : i32
    return %arg0, %c0_i32, %c0_i32_0, %arg1 : i32, i32, i32, i32
  }
  func.func @transform_2(%arg0: i32, %arg1: i32) -> (i32, i32, i32, i32) {
    %c0_i32 = arith.constant 0 : i32
    %c0_i32_0 = arith.constant 0 : i32
    %c0_i32_1 = arith.constant 0 : i32
    return %arg0, %c0_i32, %c0_i32_0, %arg1 : i32, i32, i32, i32
  }
  func.func @transform_3(%arg0: i32, %arg1: i32) -> (i32, i32, i32, i32) {
    %c0_i32 = arith.constant 0 : i32
    %c0_i32_0 = arith.constant 0 : i32
    %c0_i32_1 = arith.constant 0 : i32
    return %arg0, %c0_i32, %c0_i32_0, %arg1 : i32, i32, i32, i32
  }
  func.func @transform_4(%arg0: i32, %arg1: i32) -> (i32, i32, i32, i32) {
    %c0_i32 = arith.constant 0 : i32
    %c0_i32_0 = arith.constant 0 : i32
    %c0_i32_1 = arith.constant 0 : i32
    return %arg0, %c0_i32, %c0_i32_0, %arg1 : i32, i32, i32, i32
  }
}

</mosaic_0001>

<bundles_post_ra>
// kernel: spp_yolo.1
= control target key start
LH: loop header
LB: loop body
LE: loop exit
PB: predicated region body
PF: predicated region fallthrough
CT: control target
= control target key end

     0   :  { %s4091_s15 = smov 0   ;;  %s4093_s16 = smov 0   ;;  %s5935_s0 = inlined_call_operand.vmem [shape: f32[2,16,16,4], index: 0, kind: input, shape index: {}]   ;;  %s5936_s1 = inlined_call_operand.vmem [shape: f32[2,16,16,4], index: 1, kind: output, shape index: {0}]   ;;  %s5937_s2 = inlined_call_operand.vmem [shape: f32[2,16,16,4], index: 2, kind: output, shape index: {1}]   ;;  %s5938_s3 = inlined_call_operand.vmem [shape: f32[2,16,16,4], index: 3, kind: output, shape index: {2}]   ;;  %s5939_s4 = inlined_call_operand.vmem [shape: f32[2,16,16,4], index: 4, kind: output, shape index: {3}]  }
   0x1   :  { %s4095_s17 = smov 0  }
   0x2 LB: > { %s27_s18 = sadd.s32 1, %s4059_s16  ;;  %p3998_p0 = scmp.ge.s32.totalorder %s4063_s17, 1  ;;  %s4063_s17 = sphi %s4095_s17, %s15_s17   ;;  %s4059_s16 = sphi %s4093_s16, %s5963_s16   ;;  %s4055_s15 = sphi %s4091_s15, %s5962_s15  }
   0x3   : > { %p29_p1 = scmp.ge.s32.totalorder %s27_s18, 2  ;;  %p194_p2 = scmp.lt.s32.totalorder %s4063_s17, 3 }
   0x5   : > { %s5965_s18 = smov (%p29_p1, %s27_s18), 0  ;;  %p195_p3 = pnand %p3998_p0, %p194_p2 }
   0x7   : > { %198 = sbr.rel (%p195_p3) target bundleno = 557 (0x22d), region = 24 }
   0xc   : > { %vm290_vm0 = vcmask 31744   ;;  %v4065_v0 = vmov -inf   ;;  %vm293_vm1 = vcmask 27648   ;;  %vm306_vm2 = vcmask 25600   ;;  %p250_p4 = scmp.lt.s32.totalorder %s4055_s15, 1 }
   0xd   : > { %291 = vst.msk [vmem:[#allocation2] sm:$0xff] %vm290_vm0, %v4065_v0  ;;  %vm918_vm3 = vcmask 1046528   ;;  %vm1063_vm4 = vcmask 1045504   ;;  %vm1208_vm5 = vcmask 1044480   ;;  %vm1353_vm6 = vcmask 1043456  }
   0xe   : > { %292 = vst.msk [vmem:[#allocation2 + $0x8] sm:$0xff] %vm290_vm0, %v4065_v0  ;;  %s5967_s15 = smov (!%p250_p4, %s4055_s15), 1 }
   0xf   : > { %295 = vst.msk [vmem:[#allocation2 + $0x18] sm:$0xff] %vm290_vm0, %v4065_v0  ;;  %s4145_s19 = sshll.u32 %s5967_s15, 8 }
  0x10   : > { %296 = vst.msk [vmem:[#allocation2 + $0x20] sm:$0xff] %vm290_vm0, %v4065_v0  ;;  %s4154_s22 = scalar_lea.vmem %s5935_s0, %s4145_s19  ;;  %s4391_s25 = scalar_lea.vmem %s5937_s2, %s4145_s19 }
  0x11   : > { %299 = vst.msk [vmem:[#allocation2 + $0x1b0] sm:$0xff] %vm290_vm0, %v4065_v0  ;;  %v4160_v1 = vld [vmem:[%s4154_s22] sm:$0xff]  ;;  %v4164_v2 = vld [vmem:[%s4154_s22 + $0x8] sm:$0xff]  ;;  %v4168_v3 = vld [vmem:[%s4154_s22 + $0x10] sm:$0xff]  ;;  %s4858_s28 = scalar_lea.vmem %s5938_s3, %s4145_s19  ;;  %s5076_s5 = scalar_lea.vmem %s5936_s1, %s4145_s19 }
  0x12   : > { %300 = vst.msk [vmem:[#allocation2 + $0x1b8] sm:$0xff] %vm290_vm0, %v4065_v0  ;;  %v4173_v4 = vld [vmem:[%s4154_s22 + $0x18] sm:$0xff]  ;;  %v4178_v5 = vld [vmem:[%s4154_s22 + $0x20] sm:$0xff]  ;;  %v4181_v6 = vld [vmem:[%s4154_s22 + $0x28] sm:$0xff]  ;;  %s5548_s8 = scalar_lea.vmem %s5939_s4, %s4145_s19 }
  0x13   : > { %302 = vst.msk [vmem:[#allocation2 + $0x1c8] sm:$0xff] %vm290_vm0, %v4065_v0  ;;  %v4184_v7 = vld [vmem:[%s4154_s22 + $0x30] sm:$0xff]  ;;  %v4193_v14 = vld [vmem:[%s4154_s22 + $0x38] sm:$0xff]  ;;  %v4198_v16 = vld [vmem:[%s4154_s22 + $0x40] sm:$0xff] }
  0x14   : > { %303 = vst.msk [vmem:[#allocation2 + $0x1d0] sm:$0xff] %vm290_vm0, %v4065_v0  ;;  %v435_v8 = vld [vmem:[#allocation2] sm:$0xff]  ;;  %v4201_v17 = vld [vmem:[%s4154_s22 + $0x48] sm:$0xff]  ;;  %v4206_v20 = vld [vmem:[%s4154_s22 + $0x50] sm:$0xff] }
  0x15   : > { %294 = vst.msk [vmem:[#allocation2 + $0x10] sm:$0xf] %vm293_vm1, %v4065_v0  ;;  %v436_v9 = vld [vmem:[#allocation2 + $0x8] sm:$0xff]  ;;  %v4209_v21 = vld [vmem:[%s4154_s22 + $0x58] sm:$0xff]  ;;  %v4214_v23 = vld [vmem:[%s4154_s22 + $0x60] sm:$0xff] }
  0x16   : > { %297 = vst.msk [vmem:[#allocation2 + $0x28] sm:$0xf] %vm293_vm1, %v4065_v0  ;;  %v484_v10 = vld [vmem:[#allocation2 + $0x18] sm:$0xff]  ;;  %v4223_v30 = vld [vmem:[%s4154_s22 + $0x68] sm:$0xff]  ;;  %v4241_v43 = vld [vmem:[%s4154_s22 + $0x70] sm:$0xff] }
  0x17   : > { %301 = vst.msk [vmem:[#allocation2 + $0x1c0] sm:$0xf] %vm293_vm1, %v4065_v0  ;;  %v485_v11 = vld [vmem:[#allocation2 + $0x20] sm:$0xff]  ;;  %v532_v15 = vmax.f32 %v435_v8, %v484_v10  ;;  %v4244_v44 = vld [vmem:[%s4154_s22 + $0x78] sm:$0xff]  ;;  %v4275_v62 = vld [vmem:[%s4154_s22 + $0x88] sm:$0xff] }
  0x18   : > { %304 = vst.msk [vmem:[#allocation2 + $0x1d8] sm:$0xf] %vm293_vm1, %v4065_v0  ;;  %v533_v18 = vmax.f32 %v436_v9, %v485_v11  ;;  %v4266_v57 = vld [vmem:[%s4154_s22 + $0x80] sm:$0xff] }
  0x19   : > { %307 = vst.msk [vmem:[#allocation2 + $0x30] sm:$0x3] %vm306_vm2, %v4065_v0 }
  0x1a   : > { %308 = vst.msk [vmem:[#allocation2 + $0x48] sm:$0x3] %vm306_vm2, %v4065_v0 }
  0x1b   : > { %309 = vst.msk [vmem:[#allocation2 + $0x60] sm:$0x3] %vm306_vm2, %v4065_v0 }
  0x1c   : > { %310 = vst.msk [vmem:[#allocation2 + $0x78] sm:$0x3] %vm306_vm2, %v4065_v0  ;;  %v437_v12 = vld [vmem:[#allocation2 + $0x10] sm:$0xf] }
  0x1d   : > { %311 = vst.msk [vmem:[#allocation2 + $0x90] sm:$0x3] %vm306_vm2, %v4065_v0  ;;  %v486_v13 = vld [vmem:[#allocation2 + $0x28] sm:$0xf] }
  0x1e   : > { %312 = vst.msk [vmem:[#allocation2 + $0xa8] sm:$0x3] %vm306_vm2, %v4065_v0  ;;  %v534_v19 = vmax.f32 %v437_v12, %v486_v13  ;;  %v440_v22 = vld [vmem:[#allocation2 + $0x28] sm:$0xf] }
  0x1f   : > { %313 = vst.msk [vmem:[#allocation2 + $0xc0] sm:$0x3] %vm306_vm2, %v4065_v0 }
  0x20   : > { %314 = vst.msk [vmem:[#allocation2 + $0xd8] sm:$0x3] %vm306_vm2, %v4065_v0 }
  0x21   : > { %315 = vst.msk [vmem:[#allocation2 + $0xf0] sm:$0x3] %vm306_vm2, %v4065_v0 }
  0x22   : > { %316 = vst.msk [vmem:[#allocation2 + $0x108] sm:$0x3] %vm306_vm2, %v4065_v0 }
  0x23   : > { %317 = vst.msk [vmem:[#allocation2 + $0x120] sm:$0x3] %vm306_vm2, %v4065_v0 }
  0x24   : > { %318 = vst.msk [vmem:[#allocation2 + $0x138] sm:$0x3] %vm306_vm2, %v4065_v0 }
  0x25   : > { %319 = vst.msk [vmem:[#allocation2 + $0x150] sm:$0x3] %vm306_vm2, %v4065_v0 }
  0x26   : > { %320 = vst.msk [vmem:[#allocation2 + $0x168] sm:$0x3] %vm306_vm2, %v4065_v0 }
  0x27   : > { %321 = vst.msk [vmem:[#allocation2 + $0x180] sm:$0x3] %vm306_vm2, %v4065_v0 }
  0x28   : > { %322 = vst.msk [vmem:[#allocation2 + $0x198] sm:$0x3] %vm306_vm2, %v4065_v0 }
  0x29   : > { %323 = vst.msk [vmem:[#allocation2 + $0x42] sm:$0x3] %vm306_vm2, %v4065_v0 }
  0x2a   : > { %324 = vst.msk [vmem:[#allocation2 + $0x5a] sm:$0x3] %vm306_vm2, %v4065_v0 }
  0x2b   : > { %325 = vst.msk [vmem:[#allocation2 + $0x72] sm:$0x3] %vm306_vm2, %v4065_v0 }
  0x2c   : > { %326 = vst.msk [vmem:[#allocation2 + $0x8a] sm:$0x3] %vm306_vm2, %v4065_v0 }
  0x2d   : > { %327 = vst.msk [vmem:[#allocation2 + $0xa2] sm:$0x3] %vm306_vm2, %v4065_v0 }
  0x2e   : > { %328 = vst.msk [vmem:[#allocation2 + $0xba] sm:$0x3] %vm306_vm2, %v4065_v0 }
  0x2f   : > { %329 = vst.msk [vmem:[#allocation2 + $0xd2] sm:$0x3] %vm306_vm2, %v4065_v0 }
  0x30   : > { %330 = vst.msk [vmem:[#allocation2 + $0xea] sm:$0x3] %vm306_vm2, %v4065_v0 }
  0x31   : > { %331 = vst.msk [vmem:[#allocation2 + $0x102] sm:$0x3] %vm306_vm2, %v4065_v0 }
  0x32   : > { %332 = vst.msk [vmem:[#allocation2 + $0x11a] sm:$0x3] %vm306_vm2, %v4065_v0 }
  0x33   : > { %333 = vst.msk [vmem:[#allocation2 + $0x132] sm:$0x3] %vm306_vm2, %v4065_v0 }
  0x34   : > { %334 = vst.msk [vmem:[#allocation2 + $0x14a] sm:$0x3] %vm306_vm2, %v4065_v0 }
  0x35   : > { %335 = vst.msk [vmem:[#allocation2 + $0x162] sm:$0x3] %vm306_vm2, %v4065_v0 }
  0x36   : > { %336 = vst.msk [vmem:[#allocation2 + $0x17a] sm:$0x3] %vm306_vm2, %v4065_v0 }
  0x37   : > { %337 = vst.msk [vmem:[#allocation2 + $0x192] sm:$0x3] %vm306_vm2, %v4065_v0 }
  0x38   : > { %338 = vst.msk [vmem:[#allocation2 + $0x1aa] sm:$0x3] %vm306_vm2, %v4065_v0 }
  0x39   : > { %403 = vst.msk [vmem:[#allocation2 + $0x32] sm:$0xff] %vm290_vm0, %v4160_v1 }
  0x3a   : > { %404 = vst.msk [vmem:[#allocation2 + $0x3a] sm:$0xff] %vm290_vm0, %v4164_v2 }
  0x3b   : > { %405 = vst.msk [vmem:[#allocation2 + $0x4a] sm:$0xff] %vm290_vm0, %v4168_v3 }
  0x3c   : > { %406 = vst.msk [vmem:[#allocation2 + $0x52] sm:$0xff] %vm290_vm0, %v4173_v4 }
  0x3d   : > { %407 = vst.msk [vmem:[#allocation2 + $0x62] sm:$0xff] %vm290_vm0, %v4178_v5 }
  0x3e   : > { %408 = vst.msk [vmem:[#allocation2 + $0x6a] sm:$0xff] %vm290_vm0, %v4181_v6 }
  0x3f   : > { %409 = vst.msk [vmem:[#allocation2 + $0x7a] sm:$0xff] %vm290_vm0, %v4184_v7 }
  0x40   : > { %410 = vst.msk [vmem:[#allocation2 + $0x82] sm:$0xff] %vm290_vm0, %v4193_v14  ;;  %v580_v24 = vld [vmem:[#allocation2 + $0x30] sm:$0xff] }
  0x41   : > { %v581_v25 = vld [vmem:[#allocation2 + $0x38] sm:$0xff]  ;;  %411 = vst.msk [vmem:[#allocation2 + $0x92] sm:$0xff] %vm290_vm0, %v4198_v16  ;;  %v628_v26 = vmax.f32 %v532_v15, %v580_v24  ;;  %v582_v27 = vld [vmem:[#allocation2 + $0x40] sm:$0xf]  ;;  %v535_v28 = vmax.f32 %v484_v10, %v580_v24  ;;  %v4280_v10 = vld [vmem:[%s4154_s22 + $0x90] sm:$0xff] }
  0x42   : > { %v4218_v29 = vld [vmem:[#allocation2 + $0x40] sm:$0xf]  ;;  %412 = vst.msk [vmem:[#allocation2 + $0x9a] sm:$0xff] %vm290_vm0, %v4201_v17  ;;  %v629_v31 = vmax.f32 %v533_v18, %v581_v25  ;;  %v4225_v32 = vld [vmem:[#allocation2 + $0x48] sm:$0xff]  ;;  %v630_v33 = vmax.f32 %v534_v19, %v582_v27  ;;  %v536_v34 = vmax.f32 %v485_v11, %v581_v25  ;;  %v4285_v18 = vld [vmem:[%s4154_s22 + $0x98] sm:$0xff] }
  0x43   : > { %v489_v35 = vld [vmem:[#allocation2 + $0x40] sm:$0xf]  ;;  %v4227_v36 = vld [vmem:[#allocation2 + $0x50] sm:$0xff]  ;;  %413 = vst.msk [vmem:[#allocation2 + $0xaa] sm:$0xff] %vm290_vm0, %v4206_v20  ;;  %v725_v37 = vmax.f32 %v628_v26, %v4225_v32  ;;  %v679_v38 = vld [vmem:[#allocation2 + $0x58] sm:$0xf]  ;;  %v538_v39 = vmax.f32 %v580_v24, %v4225_v32  ;;  %v4234_v40 = vmax.f32 %v535_v28, %v4225_v32 }
  0x44   : > { %v4236_v41 = vld [vmem:[#allocation2 + $0x58] sm:$0xf]  ;;  %v537_v42 = vmax.f32 %v440_v22, %v489_v35  ;;  %414 = vst.msk [vmem:[#allocation2 + $0xb2] sm:$0xff] %vm290_vm0, %v4209_v21  ;;  %v726_v45 = vmax.f32 %v629_v31, %v4227_v36  ;;  %v4247_v46 = vld [vmem:[#allocation2 + $0x60] sm:$0xff]  ;;  %v727_v47 = vmax.f32 %v630_v33, %v679_v38  ;;  %v539_v48 = vmax.f32 %v581_v25, %v4227_v36 }
  0x45   : > { %v4252_v50 = vld [vmem:[#allocation2 + $0x68] sm:$0xff]  ;;  %415 = vst.msk [vmem:[#allocation2 + $0xc2] sm:$0xff] %vm290_vm0, %v4214_v23  ;;  %v822_v51 = vmax.f32 %v725_v37, %v4247_v46  ;;  %v776_v52 = vld [vmem:[#allocation2 + $0x70] sm:$0xf]  ;;  %v4258_v53 = vmax.f32 %v538_v39, %v4247_v46  ;;  %v632_v54 = vmax.f32 %v536_v34, %v4227_v36  ;;  %v728_v55 = vmax.f32 %v4234_v40, %v4247_v46  ;;  %v585_v56 = vld [vmem:[#allocation2 + $0x58] sm:$0xf] }
  0x46   : > { %416 = vst.msk [vmem:[#allocation2 + $0xca] sm:$0xff] %vm290_vm0, %v4223_v30  ;;  %v823_v58 = vmax.f32 %v726_v45, %v4252_v50  ;;  %v824_v59 = vmax.f32 %v727_v47, %v776_v52  ;;  %v633_v60 = vmax.f32 %v537_v42, %v585_v56  ;;  %v4270_v61 = vmax.f32 %v539_v48, %v4252_v50  ;;  %v4290_v26 = vld [vmem:[%s4154_s22 + $0xa0] sm:$0xff]  ;;  %v4299_v34 = vld [vmem:[%s4154_s22 + $0xa8] sm:$0xff]  ;;  %v4304_v40 = vld [vmem:[#allocation2 + $0x78] sm:$0xff] }
  0x47   : > { %417 = vst.msk [vmem:[#allocation2 + $0xda] sm:$0xff] %vm290_vm0, %v4241_v43  ;;  %v919_v63 = vrot.slane %v822_v51, 1  ;;  %v1064_v0 = vrot.slane %v822_v51, 2  ;;  %v1209_v8 = vrot.slane %v822_v51, 3  ;;  %v1354_v9 = vrot.slane %v822_v51, 4  ;;  %v4306_v42 = vld [vmem:[#allocation2 + $0x80] sm:$0xff] }
  0x48   : > { %418 = vst.msk [vmem:[#allocation2 + $0xe2] sm:$0xff] %vm290_vm0, %v4244_v44  ;;  %v920_v11 = vrot.slane %v823_v58, 1  ;;  %v1065_v12 = vrot.slane %v823_v58, 2  ;;  %v1210_v13 = vrot.slane %v823_v58, 3  ;;  %v1355_v15 = vrot.slane %v823_v58, 4  ;;  %v4311_v45 = vld [vmem:[%s4154_s22 + $0xb0] sm:$0xff] }
  0x49   : > { %419 = vst.msk [vmem:[#allocation2 + $0xf2] sm:$0xff] %vm290_vm0, %v4266_v57  ;;  %v922_v19 = vrot.slane %v824_v59, 1  ;;  %v1067_v22 = vrot.slane %v824_v59, 2  ;;  %v1212_v24 = vrot.slane %v824_v59, 3  ;;  %v1357_v25 = vrot.slane %v824_v59, 4  ;;  %v4319_v59 = vld [vmem:[%s4154_s22 + $0xb8] sm:$0xff] }
  0x4a   : > { %420 = vst.msk [vmem:[#allocation2 + $0xfa] sm:$0xff] %vm290_vm0, %v4275_v62  ;;  %v921_v27 = vsel %vm918_vm3, %v919_v63, %v920_v11  ;;  %v1066_v28 = vsel %vm1063_vm4, %v1064_v0, %v1065_v12  ;;  %v1211_v31 = vsel %vm1208_vm5, %v1209_v8, %v1210_v13  ;;  %v1356_v33 = vsel %vm1353_vm6, %v1354_v9, %v1355_v15  ;;  %v682_v56 = vld [vmem:[#allocation2 + $0x70] sm:$0xf] }
  0x4b   : > { %421 = vst.msk [vmem:[#allocation2 + $0x10a] sm:$0xff] %vm290_vm0, %v4280_v10  ;;  %v1031_v35 = vmax.f32 %v822_v51, %v921_v27  ;;  %v923_v37 = vsel %vm918_vm3, %v920_v11, %v922_v19  ;;  %v1068_v38 = vsel %vm1063_vm4, %v1065_v12, %v1067_v22  ;;  %v1213_v39 = vsel %vm1208_vm5, %v1210_v13, %v1212_v24  ;;  %v779_v13 = vld [vmem:[#allocation2 + $0x88] sm:$0xf]  ;;  %v4339_v22 = vld [vmem:[%s4154_s22 + $0xd0] sm:$0xff] }
  0x4c   : > { %422 = vst.msk [vmem:[#allocation2 + $0x112] sm:$0xff] %vm290_vm0, %v4285_v18  ;;  %v1032_v47 = vmax.f32 %v823_v58, %v923_v37  ;;  %v1358_v48 = vsel %vm1353_vm6, %v1355_v15, %v1357_v25  ;;  %v729_v51 = vmax.f32 %v632_v54, %v4252_v50  ;;  %v825_v52 = vmax.f32 %v728_v55, %v4304_v40  ;;  %v4328_v54 = vld [vmem:[%s4154_s22 + $0xc0] sm:$0xff] }
  0x4d   : > { %423 = vst.msk [vmem:[#allocation2 + $0x122] sm:$0xff] %vm290_vm0, %v4290_v26  ;;  %v1176_v63 = vmax.f32 %v1031_v35, %v1066_v28  ;;  %v730_v0 = vmax.f32 %v633_v60, %v682_v56  ;;  %v731_v8 = vmax.f32 %v4258_v53, %v4304_v40  ;;  %v732_v58 = vmax.f32 %v4270_v61, %v4306_v42  ;;  %v4334_v53 = vld [vmem:[%s4154_s22 + $0xc8] sm:$0xff]  ;;  %v4344_v35 = vld [vmem:[%s4154_s22 + $0xd8] sm:$0xff] }
  0x4e   : > { %424 = vst.msk [vmem:[#allocation2 + $0x12a] sm:$0xff] %vm290_vm0, %v4299_v34  ;;  %v1177_v55 = vmax.f32 %v1032_v47, %v1068_v38  ;;  %v826_v9 = vmax.f32 %v729_v51, %v4306_v42  ;;  %v924_v11 = vrot.slane %v825_v52, 1  ;;  %v1069_v12 = vrot.slane %v825_v52, 2  ;;  %v4349_v51 = vld [vmem:[%s4154_s22 + $0xe0] sm:$0xff] }
  0x4f   : > { %425 = vst.msk [vmem:[#allocation2 + $0x13a] sm:$0xff] %vm290_vm0, %v4311_v45  ;;  %v1321_v60 = vmax.f32 %v1176_v63, %v1211_v31  ;;  %v1214_v15 = vrot.slane %v825_v52, 3  ;;  %v1359_v61 = vrot.slane %v825_v52, 4  ;;  %v827_v19 = vmax.f32 %v730_v0, %v779_v13 }
  0x50   : > { %5947 = vst [vmem:[#allocation3_spill] sm:$0xff] %v4334_v53  ;;  %v1322_v24 = vmax.f32 %v1177_v55, %v1213_v39  ;;  %v925_v25 = vrot.slane %v826_v9, 1  ;;  %v1070_v27 = vrot.slane %v826_v9, 2  ;;  %v1215_v28 = vrot.slane %v826_v9, 3  ;;  %v4360_v55 = vld [vmem:[%s4154_s22 + $0xf0] sm:$0xff] }
  0x51   : > { %426 = vst.msk [vmem:[#allocation2 + $0x142] sm:$0xff] %vm290_vm0, %v4319_v59  ;;  %v1466_v31 = vmax.f32 %v1321_v60, %v1356_v33  ;;  %v1360_v37 = vrot.slane %v826_v9, 4  ;;  %v927_v38 = vrot.slane %v827_v19, 1  ;;  %v1072_v47 = vrot.slane %v827_v19, 2  ;;  %v4357_v33 = vld [vmem:[%s4154_s22 + $0xe8] sm:$0xff] }
  0x52   : > { %5948 = vst [vmem:[#allocation4_spill] sm:$0xff] %v4339_v22  ;;  %v1467_v39 = vmax.f32 %v1322_v24, %v1358_v48  ;;  %v926_v56 = vsel %vm918_vm3, %v924_v11, %v925_v25  ;;  %v1071_v63 = vsel %vm1063_vm4, %v1069_v12, %v1070_v27  ;;  %v1216_v0 = vsel %vm1208_vm5, %v1214_v15, %v1215_v28  ;;  %v4365_v11 = vld [vmem:[#allocation2 + $0x90] sm:$0xff]  ;;  %v4367_v12 = vld [vmem:[#allocation2 + $0x98] sm:$0xff] }
  0x53   : > { %427 = vst.msk [vmem:[#allocation2 + $0x152] sm:$0xff] %vm290_vm0, %v4328_v54  ;;  %v1033_v13 = vmax.f32 %v825_v52, %v926_v56  ;;  %v1361_v60 = vsel %vm1353_vm6, %v1359_v61, %v1360_v37  ;;  %v928_v49 = vsel %vm918_vm3, %v925_v25, %v927_v38  ;;  %v1073_v48 = vsel %vm1063_vm4, %v1070_v27, %v1072_v47  ;;  %v588_v52 = vld [vmem:[#allocation2 + $0x70] sm:$0xf]  ;;  %v4375_v61 = vld [vmem:[%s4154_s22 + $0xf8] sm:$0xff] }
  0x54   : > { %5949 = vst [vmem:[#allocation5_spill] sm:$0xff] %v4344_v35  ;;  %v1034_v15 = vmax.f32 %v826_v9, %v928_v49  ;;  %v1217_v24 = vrot.slane %v827_v19, 3  ;;  %v4378_v27 = vmax.f32 %v732_v58, %v4367_v12  ;;  %v5954_v38 = vmax.f32 %v4218_v29, %v4236_v41 }
  0x55   : > { %428 = vst.msk [vmem:[#allocation2 + $0x15a] sm:$0xff] %vm290_vm0, %v4334_v53  ;;  %v828_v53 = vmax.f32 %v731_v8, %v4365_v11  ;;  %v1178_v25 = vmax.f32 %v1033_v13, %v1071_v63  ;;  %v541_v49 = vmax.f32 %v4225_v32, %v4247_v46  ;;  %v446_v63 = vld [vmem:[#allocation2 + $0x58] sm:$0xf] }
  0x56   : > { %5950 = vst [vmem:[#allocation6_spill] sm:$0xff] %v4349_v51  ;;  %v636_v47 = vmax.f32 %v5954_v38, %v588_v52  ;;  %v1179_v8 = vmax.f32 %v1034_v15, %v1073_v48  ;;  %v1218_v58 = vsel %vm1208_vm5, %v1215_v28, %v1217_v24  ;;  %v930_v32 = vrot.slane %v4378_v27, 1 }
  0x57   : > { %429 = vst.msk [vmem:[#allocation2 + $0x16a] sm:$0xff] %vm290_vm0, %v4339_v22  ;;  %v1362_v22 = vrot.slane %v827_v19, 4  ;;  %v929_v19 = vrot.slane %v828_v53, 1  ;;  %v1323_v29 = vmax.f32 %v1178_v25, %v1216_v0  ;;  %v1074_v41 = vrot.slane %v828_v53, 2  ;;  %v685_v25 = vld [vmem:[#allocation2 + $0x88] sm:$0xf] }
  0x58   : > { %5951 = vst [vmem:[#allocation7_spill] sm:$0xff] %v4357_v33  ;;  %v1075_v56 = vrot.slane %v4378_v27, 2  ;;  %v1324_v13 = vmax.f32 %v1179_v8, %v1218_v58  ;;  %v1219_v48 = vrot.slane %v828_v53, 3  ;;  %v1220_v28 = vrot.slane %v4378_v27, 3 }
  0x59   : > { %5952 = vst [vmem:[#allocation8_spill] sm:$0xff] %v4360_v55  ;;  %v1363_v9 = vsel %vm1353_vm6, %v1360_v37, %v1362_v22  ;;  %v1364_v22 = vrot.slane %v828_v53, 4  ;;  %v495_v37 = vld [vmem:[#allocation2 + $0x70] sm:$0xf]  ;;  %v1468_v15 = vmax.f32 %v1323_v29, %v1361_v60  ;;  %v931_v0 = vsel %vm918_vm3, %v929_v19, %v930_v32  ;;  %v782_v19 = vld [vmem:[#allocation2 + $0xa0] sm:$0xf] }
  0x5a   : > { %430 = vst.msk [vmem:[#allocation2 + $0x172] sm:$0xff] %vm290_vm0, %v4344_v35  ;;  %v1076_v24 = vsel %vm1063_vm4, %v1074_v41, %v1075_v56  ;;  %v1365_v52 = vrot.slane %v4378_v27, 4  ;;  %v1469_v38 = vmax.f32 %v1324_v13, %v1363_v9  ;;  %v1221_v8 = vsel %vm1208_vm5, %v1219_v48, %v1220_v28  ;;  %v591_v13 = vld [vmem:[#allocation2 + $0x88] sm:$0xf]  ;;  %v473_v35 = vld [vmem:[#allocation2 + $0x130] sm:$0xf] }
  0x5b   : > { %431 = vst.msk [vmem:[#allocation2 + $0x182] sm:$0xff] %vm290_vm0, %v4349_v51  ;;  %v733_v58 = vmax.f32 %v636_v47, %v685_v25  ;;  %v542_v29 = vmax.f32 %v4227_v36, %v4252_v50  ;;  %v637_v9 = vmax.f32 %v541_v49, %v4304_v40  ;;  %v544_v48 = vmax.f32 %v4247_v46, %v4304_v40  ;;  %v594_v51 = vld [vmem:[#allocation2 + $0xa0] sm:$0xf] }
  0x5c   : > { %5953 = vst [vmem:[#allocation9_spill] sm:$0xff] %v4375_v61  ;;  %v1366_v60 = vsel %vm1353_vm6, %v1364_v22, %v1365_v52 }
  0x5d   : > { %432 = vst.msk [vmem:[#allocation2 + $0x18a] sm:$0xff] %vm290_vm0, %v4357_v33  ;;  %v4412_v33 = vld [vmem:[#allocation2 + $0x88] sm:$0xf]  ;;  %v830_v47 = vmax.f32 %v733_v58, %v782_v19  ;;  %v638_v22 = vmax.f32 %v542_v29, %v4306_v42  ;;  %v734_v36 = vmax.f32 %v637_v9, %v4365_v11  ;;  %v4437_v29 = vld [vmem:[#allocation2 + $0xb0] sm:$0xff] }
  0x5e   : > { %433 = vst.msk [vmem:[#allocation2 + $0x19a] sm:$0xff] %vm290_vm0, %v4360_v55  ;;  %v4410_v55 = vld [vmem:[#allocation2 + $0x70] sm:$0xf] }
  0x5f   : > { %434 = vst.msk [vmem:[#allocation2 + $0x1a2] sm:$0xff] %vm290_vm0, %v4375_v61  ;;  %v1035_v61 = vmax.f32 %v828_v53, %v931_v0  ;;  %v543_v53 = vmax.f32 %v446_v63, %v495_v37  ;;  %v4428_v0 = vld [vmem:[#allocation2 + $0xa8] sm:$0xff]  ;;  %v932_v63 = vrot.slane %v830_v47, 1  ;;  %v1077_v46 = vrot.slane %v830_v47, 2 }
  0x60   : > { %1498 = vst.msk [vmem:[%s4391_s25] sm:$0xff] %vm290_vm0, %v1466_v31  ;;  %v1222_v37 = vrot.slane %v830_v47, 3  ;;  %v735_v25 = vmax.f32 %v638_v22, %v4367_v12  ;;  %v831_v58 = vmax.f32 %v734_v36, %v4428_v0 }
  0x61   : > { %1499 = vst.msk [vmem:[%s4391_s25 + $0x8] sm:$0xff] %vm290_vm0, %v1467_v39  ;;  %v1180_v41 = vmax.f32 %v1035_v61, %v1076_v24  ;;  %v639_v49 = vmax.f32 %v543_v53, %v591_v13  ;;  %v688_v24 = vld [vmem:[#allocation2 + $0xa0] sm:$0xf] }
  0x62   : > { %1530 = vst.msk [vmem:[#allocation2 + $0x32] sm:$0xff] %vm290_vm0, %v1466_v31  ;;  %v545_v31 = vmax.f32 %v4252_v50, %v4306_v42  ;;  %v1367_v50 = vrot.slane %v830_v47, 4  ;;  %v832_v47 = vmax.f32 %v735_v25, %v4437_v29  ;;  %v934_v13 = vrot.slane %v831_v58, 1 }
  0x63   : > { %1531 = vst.msk [vmem:[#allocation2 + $0x3a] sm:$0xff] %vm290_vm0, %v1467_v39  ;;  %v546_v39 = vmax.f32 %v4410_v55, %v4412_v33  ;;  %v1325_v61 = vmax.f32 %v1180_v41, %v1221_v8  ;;  %v736_v19 = vmax.f32 %v639_v49, %v688_v24  ;;  %v933_v33 = vsel %vm918_vm3, %v930_v32, %v932_v63 }
  0x64   : > { %1500 = vst.msk [vmem:[%s4391_s25 + $0x10] sm:$0xff] %vm290_vm0, %v1468_v15  ;;  %v1078_v55 = vsel %vm1063_vm4, %v1075_v56, %v1077_v46  ;;  %v1223_v8 = vsel %vm1208_vm5, %v1220_v28, %v1222_v37  ;;  %v1036_v53 = vmax.f32 %v4378_v27, %v933_v33  ;;  %v1368_v41 = vsel %vm1353_vm6, %v1365_v52, %v1367_v50 }
  0x65   : > { %1501 = vst.msk [vmem:[%s4391_s25 + $0x18] sm:$0xff] %vm290_vm0, %v1469_v38  ;;  %v1470_v9 = vmax.f32 %v1325_v61, %v1366_v60  ;;  %v1079_v22 = vrot.slane %v831_v58, 2  ;;  %v1224_v60 = vrot.slane %v831_v58, 3  ;;  %v1369_v36 = vrot.slane %v831_v58, 4 }
  0x66   : > { %1532 = vst.msk [vmem:[#allocation2 + $0x4a] sm:$0xff] %vm290_vm0, %v1468_v15  ;;  %v785_v15 = vld [vmem:[#allocation2 + $0xb8] sm:$0xf]  ;;  %v1181_v49 = vmax.f32 %v1036_v53, %v1078_v55  ;;  %v935_v56 = vrot.slane %v832_v47, 1  ;;  %v640_v28 = vmax.f32 %v544_v48, %v4365_v11  ;;  %v1080_v61 = vrot.slane %v832_v47, 2 }
  0x67   : > { %1533 = vst.msk [vmem:[#allocation2 + $0x52] sm:$0xff] %vm290_vm0, %v1469_v38  ;;  %v833_v32 = vmax.f32 %v736_v19, %v785_v15  ;;  %v641_v38 = vmax.f32 %v545_v31, %v4367_v12  ;;  %v1225_v27 = vrot.slane %v832_v47, 3  ;;  %v1370_v63 = vrot.slane %v832_v47, 4 }
  0x68   : > { %1502 = vst.msk [vmem:[%s4391_s25 + $0x20] sm:$0xff] %vm290_vm0, %v1470_v9  ;;  %v1326_v46 = vmax.f32 %v1181_v49, %v1223_v8  ;;  %v936_v37 = vsel %vm918_vm3, %v934_v13, %v935_v56  ;;  %v1081_v19 = vsel %vm1063_vm4, %v1079_v22, %v1080_v61  ;;  %v737_v49 = vmax.f32 %v640_v28, %v4428_v0  ;;  %v4462_v22 = vld [vmem:[#allocation2 + $0xc0] sm:$0xff] }
  0x69   : > { %v937_v52 = vrot.slane %v833_v32, 1  ;;  %1534 = vst.msk [vmem:[#allocation2 + $0x62] sm:$0xff] %vm290_vm0, %v1470_v9  ;;  %v1082_v24 = vrot.slane %v833_v32, 2  ;;  %v1227_v50 = vrot.slane %v833_v32, 3  ;;  %v1037_v25 = vmax.f32 %v831_v58, %v936_v37 }
  0x6a   : > { %v1226_v33 = vsel %vm1208_vm5, %v1224_v60, %v1225_v27  ;;  %v1371_v48 = vsel %vm1353_vm6, %v1369_v36, %v1370_v63  ;;  %v1471_v31 = vmax.f32 %v1326_v46, %v1368_v41  ;;  %v1372_v13 = vrot.slane %v833_v32, 4  ;;  %371 = vst.msk [vmem:[%s5076_s5] sm:$0xff] %vm290_vm0, %v4160_v1 }
  0x6b   : > { %v938_v55 = vsel %vm918_vm3, %v935_v56, %v937_v52  ;;  %v1083_v53 = vsel %vm1063_vm4, %v1080_v61, %v1082_v24  ;;  %v1228_v9 = vsel %vm1208_vm5, %v1225_v27, %v1227_v50  ;;  %v1182_v8 = vmax.f32 %v1037_v25, %v1081_v19  ;;  %v4468_v56 = vld [vmem:[#allocation2 + $0xc8] sm:$0xff]  ;;  %v691_v27 = vld [vmem:[#allocation2 + $0xb8] sm:$0xf]  ;;  %v788_v19 = vld [vmem:[#allocation2 + $0xd0] sm:$0xf]  ;;  %372 = vst.msk [vmem:[%s5076_s5 + $0x8] sm:$0xff] %vm290_vm0, %v4164_v2 }
  0x6c   : > { %v1038_v15 = vmax.f32 %v832_v47, %v938_v55  ;;  %1503 = vst.msk [vmem:[%s4391_s25 + $0x28] sm:$0xff] %vm290_vm0, %v1471_v31  ;;  %v738_v58 = vmax.f32 %v641_v38, %v4437_v29  ;;  %v642_v60 = vmax.f32 %v546_v39, %v594_v51  ;;  %v547_v41 = vmax.f32 %v4304_v40, %v4365_v11 }
  0x6d   : > { %v548_v36 = vmax.f32 %v4306_v42, %v4367_v12  ;;  %v1327_v47 = vmax.f32 %v1182_v8, %v1226_v33  ;;  %v1373_v28 = vsel %vm1353_vm6, %v1370_v63, %v1372_v13  ;;  %v834_v61 = vmax.f32 %v737_v49, %v4462_v22  ;;  %1535 = vst.msk [vmem:[#allocation2 + $0x6a] sm:$0xff] %vm290_vm0, %v1471_v31  ;;  %v452_v13 = vld [vmem:[#allocation2 + $0x88] sm:$0xf]  ;;  %v501_v49 = vld [vmem:[#allocation2 + $0xa0] sm:$0xf] }
  0x6e   : > { %v1183_v32 = vmax.f32 %v1038_v15, %v1083_v53  ;;  %v835_v51 = vmax.f32 %v738_v58, %v4468_v56  ;;  %v739_v39 = vmax.f32 %v642_v60, %v691_v27  ;;  %v643_v40 = vmax.f32 %v547_v41, %v4428_v0  ;;  %373 = vst.msk [vmem:[%s5076_s5 + $0x10] sm:$0xff] %vm290_vm0, %v4168_v3 }
  0x6f   : > { %v644_v38 = vmax.f32 %v548_v36, %v4437_v29  ;;  %v1472_v42 = vmax.f32 %v1327_v47, %v1371_v48  ;;  %v939_v46 = vrot.slane %v834_v61, 1  ;;  %v1084_v37 = vrot.slane %v834_v61, 2  ;;  %v4486_v47 = vld [vmem:[#allocation2 + $0xd8] sm:$0xff]  ;;  %374 = vst.msk [vmem:[%s5076_s5 + $0x18] sm:$0xff] %vm290_vm0, %v4173_v4 }
  0x70   : > { %v1328_v52 = vmax.f32 %v1183_v32, %v1228_v9  ;;  %v940_v24 = vrot.slane %v835_v51, 1  ;;  %v1085_v50 = vrot.slane %v835_v51, 2  ;;  %v1229_v63 = vrot.slane %v834_v61, 3  ;;  %375 = vst.msk [vmem:[%s5076_s5 + $0x20] sm:$0xff] %vm290_vm0, %v4178_v5 }
  0x71   : > { %v1230_v25 = vrot.slane %v835_v51, 3  ;;  %1504 = vst.msk [vmem:[%s4391_s25 + $0x30] sm:$0xff] %vm290_vm0, %v1472_v42  ;;  %v1374_v31 = vrot.slane %v834_v61, 4  ;;  %v1375_v55 = vrot.slane %v835_v51, 4  ;;  %v836_v53 = vmax.f32 %v739_v39, %v788_v19 }
  0x72   : > { %v1473_v33 = vmax.f32 %v1328_v52, %v1373_v28  ;;  %v941_v8 = vsel %vm918_vm3, %v939_v46, %v940_v24  ;;  %v1086_v15 = vsel %vm1063_vm4, %v1084_v37, %v1085_v50  ;;  %v740_v9 = vmax.f32 %v643_v40, %v4462_v22  ;;  %1536 = vst.msk [vmem:[#allocation2 + $0x7a] sm:$0xff] %vm290_vm0, %v1472_v42  ;;  %v4491_v40 = vld [vmem:[#allocation2 + $0xe0] sm:$0xff] }
  0x73   : > { %v1231_v48 = vsel %vm1208_vm5, %v1229_v63, %v1230_v25  ;;  %v1039_v58 = vmax.f32 %v834_v61, %v941_v8  ;;  %v1376_v60 = vsel %vm1353_vm6, %v1374_v31, %v1375_v55  ;;  %v942_v41 = vrot.slane %v836_v53, 1  ;;  %376 = vst.msk [vmem:[%s5076_s5 + $0x28] sm:$0xff] %vm290_vm0, %v4181_v6 }
  0x74   : > { %1505 = vst.msk [vmem:[%s4391_s25 + $0x38] sm:$0xff] %vm290_vm0, %v1473_v33  ;;  %v1087_v36 = vrot.slane %v836_v53, 2  ;;  %v1232_v32 = vrot.slane %v836_v53, 3  ;;  %v1377_v28 = vrot.slane %v836_v53, 4  ;;  %v741_v27 = vmax.f32 %v644_v38, %v4468_v56 }
  0x75   : > { %v837_v39 = vmax.f32 %v740_v9, %v4486_v47  ;;  %1537 = vst.msk [vmem:[#allocation2 + $0x82] sm:$0xff] %vm290_vm0, %v1473_v33  ;;  %v1184_v42 = vmax.f32 %v1039_v58, %v1086_v15  ;;  %v943_v52 = vsel %vm918_vm3, %v940_v24, %v942_v41  ;;  %v549_v46 = vmax.f32 %v452_v13, %v501_v49  ;;  %v455_v58 = vld [vmem:[#allocation2 + $0xa0] sm:$0xf]  ;;  %v504_v41 = vld [vmem:[#allocation2 + $0xb8] sm:$0xf] }
  0x76   : > { %v1088_v61 = vsel %vm1063_vm4, %v1085_v50, %v1087_v36  ;;  %v1040_v37 = vmax.f32 %v835_v51, %v943_v52  ;;  %v1233_v63 = vsel %vm1208_vm5, %v1230_v25, %v1232_v32  ;;  %v1378_v19 = vsel %vm1353_vm6, %v1375_v55, %v1377_v28  ;;  %v597_v51 = vld [vmem:[#allocation2 + $0xb8] sm:$0xf]  ;;  %377 = vst.msk [vmem:[%s5076_s5 + $0x30] sm:$0xff] %vm290_vm0, %v4184_v7 }
  0x77   : > { %v4498_v31 = vmax.f32 %v741_v27, %v4491_v40  ;;  %v1329_v38 = vmax.f32 %v1184_v42, %v1231_v48  ;;  %v944_v53 = vrot.slane %v837_v39, 1  ;;  %v1089_v8 = vrot.slane %v837_v39, 2  ;;  %v694_v27 = vld [vmem:[#allocation2 + $0xd0] sm:$0xf]  ;;  %378 = vst.msk [vmem:[%s5076_s5 + $0x38] sm:$0xff] %vm290_vm0, %v4193_v14 }
  0x78   : > { %v1234_v33 = vrot.slane %v837_v39, 3  ;;  %v1185_v9 = vmax.f32 %v1040_v37, %v1088_v61  ;;  %v1379_v25 = vrot.slane %v837_v39, 4  ;;  %v645_v49 = vmax.f32 %v549_v46, %v597_v51  ;;  %v458_v46 = vld [vmem:[#allocation2 + $0xb8] sm:$0xf]  ;;  %v507_v37 = vld [vmem:[#allocation2 + $0xd0] sm:$0xf] }
  0x79   : > { %v945_v15 = vrot.slane %v4498_v31, 1  ;;  %v1090_v24 = vrot.slane %v4498_v31, 2  ;;  %v1235_v50 = vrot.slane %v4498_v31, 3  ;;  %v1474_v13 = vmax.f32 %v1329_v38, %v1376_v60  ;;  %v791_v38 = vld [vmem:[#allocation2 + $0xe8] sm:$0xf]  ;;  %379 = vst.msk [vmem:[%s5076_s5 + $0x40] sm:$0xff] %vm290_vm0, %v4198_v16 }
  0x7a   : > { %v1380_v55 = vrot.slane %v4498_v31, 4  ;;  %v1330_v48 = vmax.f32 %v1185_v9, %v1233_v63  ;;  %v742_v60 = vmax.f32 %v645_v49, %v694_v27  ;;  %v550_v61 = vmax.f32 %v4365_v11, %v4428_v0  ;;  %380 = vst.msk [vmem:[%s5076_s5 + $0x48] sm:$0xff] %vm290_vm0, %v4201_v17 }
  0x7b   : > { %v946_v36 = vsel %vm918_vm3, %v944_v53, %v945_v15  ;;  %v1091_v32 = vsel %vm1063_vm4, %v1089_v8, %v1090_v24  ;;  %v1236_v28 = vsel %vm1208_vm5, %v1234_v33, %v1235_v50  ;;  %1506 = vst.msk [vmem:[%s4391_s25 + $0x40] sm:$0xff] %vm290_vm0, %v1474_v13  ;;  %v551_v53 = vmax.f32 %v4367_v12, %v4437_v29 }
  0x7c   : > { %v1041_v42 = vmax.f32 %v837_v39, %v946_v36  ;;  %v1381_v52 = vsel %vm1353_vm6, %v1379_v25, %v1380_v55  ;;  %v1475_v63 = vmax.f32 %v1330_v48, %v1378_v19  ;;  %1538 = vst.msk [vmem:[#allocation2 + $0x92] sm:$0xff] %vm290_vm0, %v1474_v13  ;;  %v552_v8 = vmax.f32 %v455_v58, %v504_v41  ;;  %v600_v25 = vld [vmem:[#allocation2 + $0xd0] sm:$0xf]  ;;  %v697_v36 = vld [vmem:[#allocation2 + $0xe8] sm:$0xf] }
  0x7d   : > { %v553_v39 = vmax.f32 %v4428_v0, %v4462_v22  ;;  %v839_v9 = vmax.f32 %v742_v60, %v791_v38  ;;  %v646_v51 = vmax.f32 %v550_v61, %v4462_v22  ;;  %v554_v11 = vmax.f32 %v4437_v29, %v4468_v56  ;;  %v4527_v60 = vld [vmem:[#allocation2 + $0xf8] sm:$0xff]  ;;  %381 = vst.msk [vmem:[%s5076_s5 + $0x50] sm:$0xff] %vm290_vm0, %v4206_v20 }
  0x7e   : > { %v1186_v33 = vmax.f32 %v1041_v42, %v1091_v32  ;;  %1507 = vst.msk [vmem:[%s4391_s25 + $0x48] sm:$0xff] %vm290_vm0, %v1475_v63  ;;  %v647_v19 = vmax.f32 %v551_v53, %v4468_v56  ;;  %v648_v49 = vmax.f32 %v552_v8, %v600_v25  ;;  %v555_v13 = vmax.f32 %v458_v46, %v507_v37  ;;  %v4532_v37 = vld [vmem:[#allocation2 + $0xf0] sm:$0xff] }
  0x7f   : > { %v649_v12 = vmax.f32 %v553_v39, %v4486_v47  ;;  %v947_v41 = vrot.slane %v839_v9, 1  ;;  %v1092_v48 = vrot.slane %v839_v9, 2  ;;  %v1237_v0 = vrot.slane %v839_v9, 3  ;;  %1539 = vst.msk [vmem:[#allocation2 + $0x9a] sm:$0xff] %vm290_vm0, %v1475_v63 }
  0x80   : > { %v1331_v58 = vmax.f32 %v1186_v33, %v1236_v28  ;;  %v1382_v32 = vrot.slane %v839_v9, 4  ;;  %v743_v27 = vmax.f32 %v646_v51, %v4486_v47  ;;  %v744_v29 = vmax.f32 %v647_v19, %v4491_v40  ;;  %v794_v33 = vld [vmem:[#allocation2 + $0x100] sm:$0xf]  ;;  %v603_v9 = vld [vmem:[#allocation2 + $0xe8] sm:$0xf]  ;;  %382 = vst.msk [vmem:[%s5076_s5 + $0x58] sm:$0xff] %vm290_vm0, %v4209_v21 }
  0x81   : > { %v745_v42 = vmax.f32 %v648_v49, %v697_v36  ;;  %v948_v38 = vsel %vm918_vm3, %v945_v15, %v947_v41  ;;  %v1093_v28 = vsel %vm1063_vm4, %v1090_v24, %v1092_v48  ;;  %v1238_v46 = vsel %vm1208_vm5, %v1235_v50, %v1237_v0  ;;  %383 = vst.msk [vmem:[%s5076_s5 + $0x60] sm:$0xff] %vm290_vm0, %v4214_v23 }
  0x82   : > { %v1476_v61 = vmax.f32 %v1331_v58, %v1381_v52  ;;  %v1042_v63 = vmax.f32 %v4498_v31, %v948_v38  ;;  %v1383_v53 = vsel %vm1353_vm6, %v1380_v55, %v1382_v32  ;;  %v840_v8 = vmax.f32 %v743_v27, %v4532_v37  ;;  %384 = vst.msk [vmem:[%s5076_s5 + $0x68] sm:$0xff] %vm290_vm0, %v4223_v30 }
  0x83   : > { %v841_v39 = vmax.f32 %v744_v29, %v4527_v60  ;;  %v842_v52 = vmax.f32 %v745_v42, %v794_v33  ;;  %v650_v15 = vmax.f32 %v554_v11, %v4491_v40  ;;  %v746_v24 = vmax.f32 %v649_v12, %v4532_v37  ;;  %385 = vst.msk [vmem:[%s5076_s5 + $0x70] sm:$0xff] %vm290_vm0, %v4241_v43 }
  0x84   : > { %1508 = vst.msk [vmem:[%s4391_s25 + $0x50] sm:$0xff] %vm290_vm0, %v1476_v61  ;;  %v651_v50 = vmax.f32 %v555_v13, %v603_v9  ;;  %v1187_v51 = vmax.f32 %v1042_v63, %v1093_v28  ;;  %v949_v25 = vrot.slane %v840_v8, 1  ;;  %v1094_v31 = vrot.slane %v840_v8, 2  ;;  %v4549_v9 = vld [vmem:[#allocation2 + $0x108] sm:$0xff] }
  0x85   : > { %v950_v19 = vrot.slane %v841_v39, 1  ;;  %1540 = vst.msk [vmem:[#allocation2 + $0xaa] sm:$0xff] %vm290_vm0, %v1476_v61  ;;  %v1095_v55 = vrot.slane %v841_v39, 2  ;;  %v1239_v49 = vrot.slane %v840_v8, 3  ;;  %v1240_v58 = vrot.slane %v841_v39, 3 }
  0x86   : > { %v1384_v41 = vrot.slane %v840_v8, 4  ;;  %v1332_v48 = vmax.f32 %v1187_v51, %v1238_v46  ;;  %v1385_v36 = vrot.slane %v841_v39, 4  ;;  %v952_v32 = vrot.slane %v842_v52, 1  ;;  %v700_v51 = vld [vmem:[#allocation2 + $0x100] sm:$0xf]  ;;  %386 = vst.msk [vmem:[%s5076_s5 + $0x78] sm:$0xff] %vm290_vm0, %v4244_v44 }
  0x87   : > { %v951_v0 = vsel %vm918_vm3, %v949_v25, %v950_v19  ;;  %v1096_v12 = vsel %vm1063_vm4, %v1094_v31, %v1095_v55  ;;  %v1241_v13 = vsel %vm1208_vm5, %v1239_v49, %v1240_v58  ;;  %v1097_v27 = vrot.slane %v842_v52, 2  ;;  %v4556_v49 = vld [vmem:[#allocation2 + $0x110] sm:$0xff]  ;;  %387 = vst.msk [vmem:[%s5076_s5 + $0x80] sm:$0xff] %vm290_vm0, %v4266_v57 }
  0x88   : > { %v1043_v11 = vmax.f32 %v840_v8, %v951_v0  ;;  %v1477_v29 = vmax.f32 %v1332_v48, %v1383_v53  ;;  %v1386_v42 = vsel %vm1353_vm6, %v1384_v41, %v1385_v36  ;;  %v953_v61 = vsel %vm918_vm3, %v950_v19, %v952_v32  ;;  %v797_v0 = vld [vmem:[#allocation2 + $0x118] sm:$0xf]  ;;  %388 = vst.msk [vmem:[%s5076_s5 + $0x88] sm:$0xff] %vm290_vm0, %v4275_v62 }
  0x89   : > { %v1242_v38 = vrot.slane %v842_v52, 3  ;;  %v1044_v63 = vmax.f32 %v841_v39, %v953_v61  ;;  %v1098_v46 = vsel %vm1063_vm4, %v1095_v55, %v1097_v27  ;;  %v1387_v33 = vrot.slane %v842_v52, 4  ;;  %389 = vst.msk [vmem:[%s5076_s5 + $0x90] sm:$0xff] %vm290_vm0, %v4280_v10 }
  0x8a   : > { %v1188_v28 = vmax.f32 %v1043_v11, %v1096_v12  ;;  %1509 = vst.msk [vmem:[%s4391_s25 + $0x58] sm:$0xff] %vm290_vm0, %v1477_v29  ;;  %v747_v25 = vmax.f32 %v650_v15, %v4527_v60  ;;  %v843_v53 = vmax.f32 %v746_v24, %v4549_v9  ;;  %v748_v31 = vmax.f32 %v651_v50, %v700_v51  ;;  %v510_v51 = vld [vmem:[#allocation2 + $0xe8] sm:$0xf] }
  0x8b   : > { %v1243_v8 = vsel %vm1208_vm5, %v1240_v58, %v1242_v38  ;;  %v1189_v41 = vmax.f32 %v1044_v63, %v1098_v46  ;;  %v1388_v39 = vsel %vm1353_vm6, %v1385_v36, %v1387_v33  ;;  %1541 = vst.msk [vmem:[#allocation2 + $0xb2] sm:$0xff] %vm290_vm0, %v1477_v29  ;;  %v556_v52 = vmax.f32 %v4462_v22, %v4486_v47  ;;  %v461_v33 = vld [vmem:[#allocation2 + $0xd0] sm:$0xf] }
  0x8c   : > { %v1333_v19 = vmax.f32 %v1188_v28, %v1241_v13  ;;  %v844_v55 = vmax.f32 %v747_v25, %v4556_v49  ;;  %v954_v58 = vrot.slane %v843_v53, 1  ;;  %v1099_v48 = vrot.slane %v843_v53, 2  ;;  %390 = vst.msk [vmem:[%s5076_s5 + $0x98] sm:$0xff] %vm290_vm0, %v4285_v18 }
  0x8d   : > { %v1244_v15 = vrot.slane %v843_v53, 3  ;;  %v1334_v50 = vmax.f32 %v1189_v41, %v1243_v8  ;;  %v1389_v32 = vrot.slane %v843_v53, 4  ;;  %v845_v11 = vmax.f32 %v748_v31, %v797_v0  ;;  %391 = vst.msk [vmem:[%s5076_s5 + $0xa0] sm:$0xff] %vm290_vm0, %v4290_v26 }
  0x8e   : > { %v1478_v24 = vmax.f32 %v1333_v19, %v1386_v42  ;;  %v955_v12 = vrot.slane %v844_v55, 1  ;;  %v1100_v13 = vrot.slane %v844_v55, 2  ;;  %v1245_v36 = vrot.slane %v844_v55, 3  ;;  %392 = vst.msk [vmem:[%s5076_s5 + $0xa8] sm:$0xff] %vm290_vm0, %v4299_v34 }
  0x8f   : > { %v1390_v27 = vrot.slane %v844_v55, 4  ;;  %v1479_v29 = vmax.f32 %v1334_v50, %v1388_v39  ;;  %v957_v61 = vrot.slane %v845_v11, 1  ;;  %v1102_v22 = vrot.slane %v845_v11, 2  ;;  %v4583_v50 = vld [vmem:[#allocation2 + $0xe8] sm:$0xf]  ;;  %393 = vst.msk [vmem:[%s5076_s5 + $0xb0] sm:$0xff] %vm290_vm0, %v4311_v45 }
  0x90   : > { %1510 = vst.msk [vmem:[%s4391_s25 + $0x60] sm:$0xff] %vm290_vm0, %v1478_v24  ;;  %v1247_v38 = vrot.slane %v845_v11, 3  ;;  %v956_v28 = vsel %vm918_vm3, %v954_v58, %v955_v12  ;;  %v1101_v63 = vsel %vm1063_vm4, %v1099_v48, %v1100_v13  ;;  %v1246_v42 = vsel %vm1208_vm5, %v1244_v15, %v1245_v36 }
  0x91   : > { %v1391_v46 = vsel %vm1353_vm6, %v1389_v32, %v1390_v27  ;;  %1542 = vst.msk [vmem:[#allocation2 + $0xc2] sm:$0xff] %vm290_vm0, %v1478_v24  ;;  %v1045_v8 = vmax.f32 %v843_v53, %v956_v28  ;;  %v958_v25 = vsel %vm918_vm3, %v955_v12, %v957_v61  ;;  %v1103_v31 = vsel %vm1063_vm4, %v1100_v13, %v1102_v22  ;;  %v4585_v32 = vld [vmem:[#allocation2 + $0x100] sm:$0xf]  ;;  %v705_v28 = vld [vmem:[#allocation2 + $0x128] sm:$0xff] }
  0x92   : > { %1511 = vst.msk [vmem:[%s4391_s25 + $0x68] sm:$0xff] %vm290_vm0, %v1479_v29  ;;  %v1248_v19 = vsel %vm1208_vm5, %v1245_v36, %v1247_v38  ;;  %v1046_v41 = vmax.f32 %v844_v55, %v958_v25  ;;  %v1392_v39 = vrot.slane %v845_v11, 4  ;;  %v557_v58 = vmax.f32 %v4468_v56, %v4491_v40  ;;  %v606_v12 = vld [vmem:[#allocation2 + $0x100] sm:$0xf] }
  0x93   : > { %v652_v48 = vmax.f32 %v556_v52, %v4532_v37  ;;  %1543 = vst.msk [vmem:[#allocation2 + $0xca] sm:$0xff] %vm290_vm0, %v1479_v29  ;;  %v1190_v15 = vmax.f32 %v1045_v8, %v1101_v63  ;;  %v558_v0 = vmax.f32 %v461_v33, %v510_v51  ;;  %v559_v53 = vmax.f32 %v4486_v47, %v4532_v37  ;;  %v4590_v36 = vld [vmem:[#allocation2 + $0x120] sm:$0xff]  ;;  %v4598_v33 = vld [vmem:[#allocation2 + $0x128] sm:$0xff] }
  0x94   : > { %v560_v24 = vmax.f32 %v4491_v40, %v4527_v60  ;;  %v1191_v55 = vmax.f32 %v1046_v41, %v1103_v31  ;;  %v1393_v11 = vsel %vm1353_vm6, %v1390_v27, %v1392_v39  ;;  %v653_v56 = vmax.f32 %v557_v58, %v4527_v60  ;;  %v703_v27 = vld [vmem:[#allocation2 + $0x118] sm:$0xf]  ;;  %v800_v58 = vld [vmem:[#allocation2 + $0x130] sm:$0xf]  ;;  %394 = vst.msk [vmem:[%s5076_s5 + $0xb8] sm:$0xff] %vm290_vm0, %v4319_v59 }
  0x95   : > { %v749_v52 = vmax.f32 %v652_v48, %v4549_v9  ;;  %v1335_v13 = vmax.f32 %v1190_v15, %v1246_v42  ;;  %v654_v29 = vmax.f32 %v558_v0, %v606_v12  ;;  %v655_v47 = vmax.f32 %v559_v53, %v4549_v9  ;;  %v4602_v48 = vld [vmem:[#allocation2 + $0x138] sm:$0xff]  ;;  %395 = vst.msk [vmem:[%s5076_s5 + $0xc0] sm:$0xff] %vm290_vm0, %v4328_v54 }
  0x96   : > { %v656_v40 = vmax.f32 %v560_v24, %v4556_v49  ;;  %v1336_v61 = vmax.f32 %v1191_v55, %v1248_v19  ;;  %v750_v22 = vmax.f32 %v653_v56, %v4556_v49  ;;  %v561_v63 = vmax.f32 %v4583_v50, %v4585_v32 }
  0x97   : > { %v846_v38 = vmax.f32 %v749_v52, %v4590_v36  ;;  %v1480_v42 = vmax.f32 %v1335_v13, %v1391_v46  ;;  %v751_v51 = vmax.f32 %v654_v29, %v703_v27  ;;  %v752_v8 = vmax.f32 %v655_v47, %v4590_v36 }
  0x98   : > { %v753_v25 = vmax.f32 %v656_v40, %v705_v28  ;;  %v1481_v31 = vmax.f32 %v1336_v61, %v1393_v11  ;;  %v847_v19 = vmax.f32 %v750_v22, %v4598_v33 }
  0x99   : > { %v959_v41 = vrot.slane %v846_v38, 1  ;;  %v1104_v39 = vrot.slane %v846_v38, 2  ;;  %1512 = vst.msk [vmem:[%s4391_s25 + $0x70] sm:$0xff] %vm290_vm0, %v1480_v42  ;;  %v1249_v15 = vrot.slane %v846_v38, 3  ;;  %v1394_v0 = vrot.slane %v846_v38, 4 }
  0x9a   : > { %v848_v53 = vmax.f32 %v751_v51, %v800_v58  ;;  %v849_v24 = vmax.f32 %v752_v8, %v4602_v48  ;;  %1513 = vst.msk [vmem:[%s4391_s25 + $0x78] sm:$0xff] %vm290_vm0, %v1481_v31  ;;  %v960_v46 = vrot.slane %v847_v19, 1  ;;  %v1105_v50 = vrot.slane %v847_v19, 2  ;;  %v4618_v51 = vld [vmem:[#allocation2 + $0x140] sm:$0xff] }
  0x9b   : > { %v1250_v32 = vrot.slane %v847_v19, 3  ;;  %v1395_v55 = vrot.slane %v847_v19, 4  ;;  %1544 = vst.msk [vmem:[#allocation2 + $0xda] sm:$0xff] %vm290_vm0, %v1480_v42 }
  0x9c   : > { %v962_v11 = vrot.slane %v848_v53, 1  ;;  %v1107_v56 = vrot.slane %v848_v53, 2  ;;  %v1252_v52 = vrot.slane %v848_v53, 3  ;;  %v1397_v12 = vrot.slane %v848_v53, 4  ;;  %1545 = vst.msk [vmem:[#allocation2 + $0xe2] sm:$0xff] %vm290_vm0, %v1481_v31 }
  0x9d   : > { %v961_v13 = vsel %vm918_vm3, %v959_v41, %v960_v46  ;;  %v1106_v29 = vsel %vm1063_vm4, %v1104_v39, %v1105_v50  ;;  %v1251_v47 = vsel %vm1208_vm5, %v1249_v15, %v1250_v32  ;;  %v1396_v40 = vsel %vm1353_vm6, %v1394_v0, %v1395_v55 }
  0x9e   : > { %v1047_v61 = vmax.f32 %v846_v38, %v961_v13  ;;  %v963_v22 = vsel %vm918_vm3, %v960_v46, %v962_v11  ;;  %v1108_v27 = vsel %vm1063_vm4, %v1105_v50, %v1107_v56  ;;  %v1253_v28 = vsel %vm1208_vm5, %v1250_v32, %v1252_v52  ;;  %v609_v32 = vld [vmem:[#allocation2 + $0x118] sm:$0xf]  ;;  %v467_v56 = vld [vmem:[#allocation2 + $0x100] sm:$0xf] }
  0x9f   : > { %v1048_v42 = vmax.f32 %v847_v19, %v963_v22  ;;  %v1398_v8 = vsel %vm1353_vm6, %v1395_v55, %v1397_v12  ;;  %v4622_v41 = vmax.f32 %v753_v25, %v4618_v51  ;;  %v964_v39 = vrot.slane %v849_v24, 1  ;;  %v516_v52 = vld [vmem:[#allocation2 + $0x118] sm:$0xf]  ;;  %v706_v22 = vld [vmem:[#allocation2 + $0x130] sm:$0xf] }
  0xa0   : > { %v1192_v58 = vmax.f32 %v1047_v61, %v1106_v29  ;;  %v1109_v15 = vrot.slane %v849_v24, 2  ;;  %v1254_v0 = vrot.slane %v849_v24, 3  ;;  %v1399_v31 = vrot.slane %v849_v24, 4 }
  0xa1   : > { %v1193_v38 = vmax.f32 %v1048_v42, %v1108_v27  ;;  %v965_v53 = vrot.slane %v4622_v41, 1  ;;  %v1110_v46 = vrot.slane %v4622_v41, 2  ;;  %v1255_v50 = vrot.slane %v4622_v41, 3 }
  0xa2   : > { %v1337_v11 = vmax.f32 %v1192_v58, %v1251_v47  ;;  %v1400_v19 = vrot.slane %v4622_v41, 4  ;;  %v657_v55 = vmax.f32 %v561_v63, %v609_v32  ;;  %v562_v25 = vmax.f32 %v4532_v37, %v4549_v9  ;;  %v4634_v58 = vld [vmem:[#allocation2 + $0x118] sm:$0xf]  ;;  %v4636_v37 = vld [vmem:[#allocation2 + $0x130] sm:$0xf] }
  0xa3   : > { %v1338_v12 = vmax.f32 %v1193_v38, %v1253_v28  ;;  %v966_v13 = vsel %vm918_vm3, %v964_v39, %v965_v53  ;;  %v1111_v29 = vsel %vm1063_vm4, %v1109_v15, %v1110_v46  ;;  %v1256_v61 = vsel %vm1208_vm5, %v1254_v0, %v1255_v50  ;;  %v803_v28 = vld [vmem:[#allocation2 + $0x148] sm:$0xf]  ;;  %v612_v0 = vld [vmem:[#allocation2 + $0x130] sm:$0xf] }
  0xa4   : > { %v1482_v27 = vmax.f32 %v1337_v11, %v1396_v40  ;;  %v1049_v42 = vmax.f32 %v849_v24, %v966_v13  ;;  %v1401_v47 = vsel %vm1353_vm6, %v1399_v31, %v1400_v19  ;;  %v754_v63 = vmax.f32 %v657_v55, %v706_v22  ;;  %v4651_v55 = vld [vmem:[#allocation2 + $0x150] sm:$0xff] }
  0xa5   : > { %v1483_v32 = vmax.f32 %v1338_v12, %v1398_v8  ;;  %v563_v39 = vmax.f32 %v4527_v60, %v4556_v49  ;;  %v658_v15 = vmax.f32 %v562_v25, %v4590_v36  ;;  %v564_v38 = vmax.f32 %v467_v56, %v516_v52 }
  0xa6   : > { %1514 = vst.msk [vmem:[%s4391_s25 + $0x80] sm:$0xff] %vm290_vm0, %v1482_v27  ;;  %v1194_v40 = vmax.f32 %v1049_v42, %v1111_v29  ;;  %v851_v24 = vmax.f32 %v754_v63, %v803_v28  ;;  %v565_v31 = vmax.f32 %v4549_v9, %v4590_v36  ;;  %v566_v11 = vmax.f32 %v4556_v49, %v4598_v33  ;;  %v709_v9 = vld [vmem:[#allocation2 + $0x148] sm:$0xf] }
  0xa7   : > { %1515 = vst.msk [vmem:[%s4391_s25 + $0x88] sm:$0xff] %vm290_vm0, %v1483_v32  ;;  %v659_v8 = vmax.f32 %v563_v39, %v4598_v33  ;;  %v755_v60 = vmax.f32 %v658_v15, %v4602_v48  ;;  %v660_v25 = vmax.f32 %v564_v38, %v612_v0  ;;  %v567_v56 = vmax.f32 %v4634_v58, %v4636_v37  ;;  %v805_v37 = vld [vmem:[#allocation2 + $0x158] sm:$0xff] }
  0xa8   : > { %v1339_v52 = vmax.f32 %v1194_v40, %v1256_v61  ;;  %v967_v12 = vrot.slane %v851_v24, 1  ;;  %v1112_v13 = vrot.slane %v851_v24, 2  ;;  %v1257_v29 = vrot.slane %v851_v24, 3  ;;  %1546 = vst.msk [vmem:[#allocation2 + $0xf2] sm:$0xff] %vm290_vm0, %v1482_v27 }
  0xa9   : > { %v1402_v49 = vrot.slane %v851_v24, 4  ;;  %v756_v22 = vmax.f32 %v659_v8, %v4618_v51  ;;  %v852_v42 = vmax.f32 %v755_v60, %v4651_v55  ;;  %v757_v63 = vmax.f32 %v660_v25, %v709_v9  ;;  %1547 = vst.msk [vmem:[#allocation2 + $0xfa] sm:$0xff] %vm290_vm0, %v1483_v32  ;;  %v806_v51 = vld [vmem:[#allocation2 + $0x160] sm:$0xf] }
  0xaa   : > { %v1484_v28 = vmax.f32 %v1339_v52, %v1401_v47  ;;  %v968_v39 = vsel %vm918_vm3, %v965_v53, %v967_v12  ;;  %v1113_v61 = vsel %vm1063_vm4, %v1110_v46, %v1112_v13  ;;  %v1258_v58 = vsel %vm1208_vm5, %v1255_v50, %v1257_v29  ;;  %v4670_v9 = vld [vmem:[#allocation2 + $0x140] sm:$0xff] }
  0xab   : > { %v1050_v27 = vmax.f32 %v4622_v41, %v968_v39  ;;  %v1403_v15 = vsel %vm1353_vm6, %v1400_v19, %v1402_v49  ;;  %v853_v38 = vmax.f32 %v756_v22, %v805_v37  ;;  %v969_v40 = vrot.slane %v852_v42, 1 }
  0xac   : > { %1516 = vst.msk [vmem:[%s4391_s25 + $0x90] sm:$0xff] %vm290_vm0, %v1484_v28  ;;  %v1114_v24 = vrot.slane %v852_v42, 2  ;;  %v1259_v0 = vrot.slane %v852_v42, 3  ;;  %v1404_v32 = vrot.slane %v852_v42, 4  ;;  %v854_v47 = vmax.f32 %v757_v63, %v806_v51 }
  0xad   : > { %v1195_v8 = vmax.f32 %v1050_v27, %v1113_v61  ;;  %v970_v53 = vrot.slane %v853_v38, 1  ;;  %v1115_v60 = vrot.slane %v853_v38, 2  ;;  %v1260_v46 = vrot.slane %v853_v38, 3  ;;  %1548 = vst.msk [vmem:[#allocation2 + $0x10a] sm:$0xff] %vm290_vm0, %v1484_v28 }
  0xae   : > { %v1405_v50 = vrot.slane %v853_v38, 4  ;;  %v972_v25 = vrot.slane %v854_v47, 1  ;;  %v1117_v41 = vrot.slane %v854_v47, 2  ;;  %v1262_v52 = vrot.slane %v854_v47, 3 }
  0xaf   : > { %v1340_v19 = vmax.f32 %v1195_v8, %v1258_v58  ;;  %v971_v12 = vsel %vm918_vm3, %v969_v40, %v970_v53  ;;  %v1116_v13 = vsel %vm1063_vm4, %v1114_v24, %v1115_v60  ;;  %v1261_v29 = vsel %vm1208_vm5, %v1259_v0, %v1260_v46  ;;  %v615_v40 = vld [vmem:[#allocation2 + $0x148] sm:$0xf] }
  0xb0   : > { %v1051_v49 = vmax.f32 %v852_v42, %v971_v12  ;;  %v1406_v22 = vsel %vm1353_vm6, %v1404_v32, %v1405_v50  ;;  %v973_v63 = vsel %vm918_vm3, %v970_v53, %v972_v25  ;;  %v1118_v28 = vsel %vm1063_vm4, %v1115_v60, %v1117_v41  ;;  %v522_v42 = vld [vmem:[#allocation2 + $0x148] sm:$0xf]  ;;  %v712_v60 = vld [vmem:[#allocation2 + $0x160] sm:$0xf] }
  0xb1   : > { %v1485_v39 = vmax.f32 %v1340_v19, %v1403_v15  ;;  %v1052_v61 = vmax.f32 %v853_v38, %v973_v63  ;;  %v1263_v58 = vsel %vm1208_vm5, %v1260_v46, %v1262_v52  ;;  %v1407_v27 = vrot.slane %v854_v47, 4  ;;  %v4685_v47 = vld [vmem:[#allocation2 + $0x158] sm:$0xff]  ;;  %v4689_v41 = vld [vmem:[#allocation2 + $0x168] sm:$0xff] }
  0xb2   : > { %v1196_v51 = vmax.f32 %v1051_v49, %v1116_v13  ;;  %v661_v24 = vmax.f32 %v565_v31, %v4602_v48  ;;  %v662_v0 = vmax.f32 %v566_v11, %v4670_v9  ;;  %v663_v8 = vmax.f32 %v567_v56, %v615_v40  ;;  %v809_v52 = vld [vmem:[#allocation2 + $0x178] sm:$0xf]  ;;  %v618_v49 = vld [vmem:[#allocation2 + $0x160] sm:$0xf] }
  0xb3   : > { %1517 = vst.msk [vmem:[%s4391_s25 + $0x98] sm:$0xff] %vm290_vm0, %v1485_v39  ;;  %v1197_v32 = vmax.f32 %v1052_v61, %v1118_v28  ;;  %v1408_v53 = vsel %vm1353_vm6, %v1405_v50, %v1407_v27  ;;  %v568_v15 = vmax.f32 %v4590_v36, %v4602_v48  ;;  %v569_v38 = vmax.f32 %v4598_v33, %v4670_v9  ;;  %v808_v50 = vld [vmem:[#allocation2 + $0x170] sm:$0xff] }
  0xb4   : > { %v1341_v31 = vmax.f32 %v1196_v51, %v1261_v29  ;;  %v758_v11 = vmax.f32 %v661_v24, %v4651_v55  ;;  %v759_v56 = vmax.f32 %v662_v0, %v805_v37  ;;  %v760_v46 = vmax.f32 %v663_v8, %v712_v60  ;;  %1549 = vst.msk [vmem:[#allocation2 + $0x112] sm:$0xff] %vm290_vm0, %v1485_v39 }
  0xb5   : > { %v1342_v25 = vmax.f32 %v1197_v32, %v1263_v58  ;;  %v664_v36 = vmax.f32 %v568_v15, %v4651_v55  ;;  %v665_v19 = vmax.f32 %v569_v38, %v4685_v47  ;;  %v570_v33 = vmax.f32 %v473_v35, %v522_v42 }
  0xb6   : > { %v1486_v12 = vmax.f32 %v1341_v31, %v1406_v22  ;;  %v855_v13 = vmax.f32 %v758_v11, %v4689_v41  ;;  %v856_v29 = vmax.f32 %v759_v56, %v808_v50  ;;  %v857_v37 = vmax.f32 %v760_v46, %v809_v52  ;;  %v4704_v11 = vld [vmem:[#allocation2 + $0x180] sm:$0xff] }
  0xb7   : > { %v1487_v63 = vmax.f32 %v1342_v25, %v1408_v53  ;;  %v761_v28 = vmax.f32 %v664_v36, %v4689_v41  ;;  %v762_v39 = vmax.f32 %v665_v19, %v808_v50  ;;  %v666_v61 = vmax.f32 %v570_v33, %v618_v49  ;;  %v4709_v50 = vld [vmem:[#allocation2 + $0x188] sm:$0xff] }
  0xb8   : > { %1518 = vst.msk [vmem:[%s4391_s25 + $0xa0] sm:$0xff] %vm290_vm0, %v1486_v12  ;;  %v974_v58 = vrot.slane %v855_v13, 1  ;;  %v975_v27 = vrot.slane %v856_v29, 1  ;;  %v1119_v40 = vrot.slane %v855_v13, 2  ;;  %v1120_v51 = vrot.slane %v856_v29, 2 }
  0xb9   : > { %1519 = vst.msk [vmem:[%s4391_s25 + $0xa8] sm:$0xff] %vm290_vm0, %v1487_v63  ;;  %v1264_v35 = vrot.slane %v855_v13, 3  ;;  %v1265_v22 = vrot.slane %v856_v29, 3  ;;  %v1409_v24 = vrot.slane %v855_v13, 4  ;;  %v1410_v0 = vrot.slane %v856_v29, 4 }
  0xba   : > { %v976_v8 = vsel %vm918_vm3, %v974_v58, %v975_v27  ;;  %v1121_v42 = vsel %vm1063_vm4, %v1119_v40, %v1120_v51  ;;  %v977_v32 = vrot.slane %v857_v37, 1  ;;  %v1122_v53 = vrot.slane %v857_v37, 2  ;;  %1550 = vst.msk [vmem:[#allocation2 + $0x122] sm:$0xff] %vm290_vm0, %v1486_v12 }
  0xbb   : > { %v1053_v60 = vmax.f32 %v855_v13, %v976_v8  ;;  %v1266_v15 = vsel %vm1208_vm5, %v1264_v35, %v1265_v22  ;;  %v1411_v38 = vsel %vm1353_vm6, %v1409_v24, %v1410_v0  ;;  %v1267_v31 = vrot.slane %v857_v37, 3  ;;  %1551 = vst.msk [vmem:[#allocation2 + $0x12a] sm:$0xff] %vm290_vm0, %v1487_v63  ;;  %v715_v35 = vld [vmem:[#allocation2 + $0x178] sm:$0xf]  ;;  %v525_v8 = vld [vmem:[#allocation2 + $0x160] sm:$0xf] }
  0xbc   : > { %v978_v56 = vsel %vm918_vm3, %v975_v27, %v977_v32  ;;  %v1123_v46 = vsel %vm1063_vm4, %v1120_v51, %v1122_v53  ;;  %v1412_v25 = vrot.slane %v857_v37, 4  ;;  %v858_v52 = vmax.f32 %v761_v28, %v4704_v11  ;;  %v476_v28 = vld [vmem:[#allocation2 + $0x148] sm:$0xf] }
  0xbd   : > { %v1198_v36 = vmax.f32 %v1053_v60, %v1121_v42  ;;  %v1054_v19 = vmax.f32 %v856_v29, %v978_v56  ;;  %v1268_v33 = vsel %vm1208_vm5, %v1265_v22, %v1267_v31  ;;  %v4714_v12 = vmax.f32 %v762_v39, %v4709_v50  ;;  %v812_v60 = vld [vmem:[#allocation2 + $0x190] sm:$0xf] }
  0xbe   : > { %v1413_v13 = vsel %vm1353_vm6, %v1410_v0, %v1412_v25  ;;  %v979_v49 = vrot.slane %v858_v52, 1  ;;  %v1124_v63 = vrot.slane %v858_v52, 2  ;;  %v1269_v58 = vrot.slane %v858_v52, 3  ;;  %v621_v25 = vld [vmem:[#allocation2 + $0x178] sm:$0xf] }
  0xbf   : > { %v1343_v27 = vmax.f32 %v1198_v36, %v1266_v15  ;;  %v1199_v40 = vmax.f32 %v1054_v19, %v1123_v46  ;;  %v980_v37 = vrot.slane %v4714_v12, 1  ;;  %v1125_v51 = vrot.slane %v4714_v12, 2 }
  0xc0   : > { %v1270_v29 = vrot.slane %v4714_v12, 3  ;;  %v1414_v22 = vrot.slane %v858_v52, 4  ;;  %v1415_v39 = vrot.slane %v4714_v12, 4  ;;  %v763_v24 = vmax.f32 %v666_v61, %v715_v35  ;;  %v718_v35 = vld [vmem:[#allocation2 + $0x190] sm:$0xf] }
  0xc1   : > { %v1488_v0 = vmax.f32 %v1343_v27, %v1411_v38  ;;  %v1344_v42 = vmax.f32 %v1199_v40, %v1268_v33  ;;  %v981_v32 = vsel %vm918_vm3, %v979_v49, %v980_v37  ;;  %v1126_v53 = vsel %vm1063_vm4, %v1124_v63, %v1125_v51  ;;  %v4731_v33 = vld [vmem:[#allocation2 + $0x170] sm:$0xff] }
  0xc2   : > { %v1055_v15 = vmax.f32 %v858_v52, %v981_v32  ;;  %v1271_v31 = vsel %vm1208_vm5, %v1269_v58, %v1270_v29  ;;  %v1416_v56 = vsel %vm1353_vm6, %v1414_v22, %v1415_v39  ;;  %v860_v46 = vmax.f32 %v763_v24, %v812_v60  ;;  %v1738_v23 = vld [vmem:[#allocation2 + $0x130] sm:$0xf] }
  0xc3   : > { %1520 = vst.msk [vmem:[%s4391_s25 + $0xb0] sm:$0xff] %vm290_vm0, %v1488_v0  ;;  %v1489_v36 = vmax.f32 %v1344_v42, %v1413_v13  ;;  %v571_v61 = vmax.f32 %v4602_v48, %v4651_v55  ;;  %v572_v38 = vmax.f32 %v4670_v9, %v4685_v47  ;;  %v573_v19 = vmax.f32 %v476_v28, %v525_v8  ;;  %v479_v8 = vld [vmem:[#allocation2 + $0x160] sm:$0xf] }
  0xc4   : > { %v1200_v52 = vmax.f32 %v1055_v15, %v1126_v53  ;;  %v982_v49 = vrot.slane %v860_v46, 1  ;;  %v1127_v63 = vrot.slane %v860_v46, 2  ;;  %v1272_v58 = vrot.slane %v860_v46, 3  ;;  %1552 = vst.msk [vmem:[#allocation2 + $0x13a] sm:$0xff] %vm290_vm0, %v1488_v0  ;;  %v528_v0 = vld [vmem:[#allocation2 + $0x178] sm:$0xf] }
  0xc5   : > { %1521 = vst.msk [vmem:[%s4391_s25 + $0xb8] sm:$0xff] %vm290_vm0, %v1489_v36  ;;  %v1417_v27 = vrot.slane %v860_v46, 4  ;;  %v667_v13 = vmax.f32 %v571_v61, %v4689_v41  ;;  %v668_v40 = vmax.f32 %v572_v38, %v4731_v33  ;;  %v669_v48 = vmax.f32 %v573_v19, %v621_v25  ;;  %v815_v15 = vld [vmem:[#allocation2 + $0x1a8] sm:$0xf]  ;;  %v814_v46 = vld [vmem:[#allocation2 + $0x1a0] sm:$0xff] }
  0xc6   : > { %v1345_v22 = vmax.f32 %v1200_v52, %v1271_v31  ;;  %v983_v9 = vsel %vm918_vm3, %v980_v37, %v982_v49  ;;  %v1128_v28 = vsel %vm1063_vm4, %v1125_v51, %v1127_v63  ;;  %v1273_v24 = vsel %vm1208_vm5, %v1270_v29, %v1272_v58  ;;  %1553 = vst.msk [vmem:[#allocation2 + $0x142] sm:$0xff] %vm290_vm0, %v1489_v36  ;;  %v813_v37 = vld [vmem:[#allocation2 + $0x198] sm:$0xff]  ;;  %v4750_v36 = vld [vmem:[#allocation2 + $0x188] sm:$0xff] }
  0xc7   : > { %v1056_v42 = vmax.f32 %v4714_v12, %v983_v9  ;;  %v1418_v32 = vsel %vm1353_vm6, %v1415_v39, %v1417_v27  ;;  %v764_v53 = vmax.f32 %v667_v13, %v4704_v11  ;;  %v765_v60 = vmax.f32 %v668_v40, %v4709_v50 }
  0xc8   : > { %v1490_v31 = vmax.f32 %v1345_v22, %v1416_v56  ;;  %v766_v51 = vmax.f32 %v669_v48, %v718_v35  ;;  %v574_v29 = vmax.f32 %v4651_v55, %v4689_v41  ;;  %v575_v25 = vmax.f32 %v4685_v47, %v4731_v33 }
  0xc9   : > { %v1201_v12 = vmax.f32 %v1056_v42, %v1128_v28  ;;  %v861_v61 = vmax.f32 %v764_v53, %v813_v37  ;;  %v862_v39 = vmax.f32 %v765_v60, %v814_v46  ;;  %v576_v38 = vmax.f32 %v479_v8, %v528_v0 }
  0xca   : > { %1522 = vst.msk [vmem:[%s4391_s25 + $0xc0] sm:$0xff] %vm290_vm0, %v1490_v31  ;;  %v863_v50 = vmax.f32 %v766_v51, %v815_v15  ;;  %v670_v56 = vmax.f32 %v574_v29, %v4704_v11  ;;  %v671_v19 = vmax.f32 %v575_v25, %v4750_v36  ;;  %v577_v52 = vmax.f32 %v4689_v41, %v4704_v11  ;;  %v482_v25 = vld [vmem:[#allocation2 + $0x178] sm:$0xf] }
  0xcb   : > { %v1346_v55 = vmax.f32 %v1201_v12, %v1273_v24  ;;  %v984_v49 = vrot.slane %v861_v61, 1  ;;  %v985_v63 = vrot.slane %v862_v39, 1  ;;  %v1129_v47 = vrot.slane %v861_v61, 2  ;;  %1554 = vst.msk [vmem:[#allocation2 + $0x152] sm:$0xff] %vm290_vm0, %v1490_v31  ;;  %v624_v24 = vld [vmem:[#allocation2 + $0x190] sm:$0xf] }
  0xcc   : > { %v1130_v58 = vrot.slane %v862_v39, 2  ;;  %v1274_v27 = vrot.slane %v861_v61, 3  ;;  %v1275_v13 = vrot.slane %v862_v39, 3  ;;  %v1419_v40 = vrot.slane %v861_v61, 4  ;;  %v531_v12 = vld [vmem:[#allocation2 + $0x190] sm:$0xf] }
  0xcd   : > { %v1491_v48 = vmax.f32 %v1346_v55, %v1418_v32  ;;  %v986_v35 = vsel %vm918_vm3, %v984_v49, %v985_v63  ;;  %v1420_v22 = vrot.slane %v862_v39, 4  ;;  %v987_v9 = vrot.slane %v863_v50, 1  ;;  %v721_v32 = vld [vmem:[#allocation2 + $0x1a8] sm:$0xf] }
  0xce   : > { %v1057_v28 = vmax.f32 %v861_v61, %v986_v35  ;;  %v1131_v8 = vsel %vm1063_vm4, %v1129_v47, %v1130_v58  ;;  %v1276_v41 = vsel %vm1208_vm5, %v1274_v27, %v1275_v13  ;;  %v1132_v11 = vrot.slane %v863_v50, 2  ;;  %v816_v47 = vld [vmem:[#allocation2 + $0x1b0] sm:$0xff]  ;;  %v1741_v10 = vld [vmem:[#allocation2 + $0x148] sm:$0xf] }
  0xcf   : > { %1523 = vst.msk [vmem:[%s4391_s25 + $0xc8] sm:$0xff] %vm290_vm0, %v1491_v48  ;;  %v1421_v0 = vsel %vm1353_vm6, %v1419_v40, %v1420_v22  ;;  %v988_v42 = vsel %vm918_vm3, %v985_v63, %v987_v9  ;;  %v1277_v53 = vrot.slane %v863_v50, 3  ;;  %v1422_v60 = vrot.slane %v863_v50, 4  ;;  %v817_v50 = vld [vmem:[#allocation2 + $0x1b8] sm:$0xff] }
  0xd0   : > { %v1202_v15 = vmax.f32 %v1057_v28, %v1131_v8  ;;  %v1058_v31 = vmax.f32 %v862_v39, %v988_v42  ;;  %v1133_v51 = vsel %vm1063_vm4, %v1130_v58, %v1132_v11  ;;  %v767_v29 = vmax.f32 %v670_v56, %v813_v37  ;;  %1555 = vst.msk [vmem:[#allocation2 + $0x15a] sm:$0xff] %vm290_vm0, %v1491_v48  ;;  %v818_v48 = vld [vmem:[#allocation2 + $0x1c0] sm:$0xf] }
  0xd1   : > { %v1278_v61 = vsel %vm1208_vm5, %v1275_v13, %v1277_v53  ;;  %v1423_v55 = vsel %vm1353_vm6, %v1420_v22, %v1422_v60  ;;  %v768_v49 = vmax.f32 %v671_v19, %v814_v46  ;;  %v672_v27 = vmax.f32 %v576_v38, %v624_v24  ;;  %v626_v8 = vld [vmem:[#allocation2 + $0x1a0] sm:$0xff] }
  0xd2   : > { %v1347_v63 = vmax.f32 %v1202_v15, %v1276_v41  ;;  %v1203_v40 = vmax.f32 %v1058_v31, %v1133_v51  ;;  %v864_v35 = vmax.f32 %v767_v29, %v816_v47  ;;  %v578_v39 = vmax.f32 %v4731_v33, %v4750_v36  ;;  %v819_v29 = vld [vmem:[#allocation2 + $0x1c8] sm:$0xff] }
  0xd3   : > { %v865_v56 = vmax.f32 %v768_v49, %v817_v50  ;;  %v769_v58 = vmax.f32 %v672_v27, %v721_v32  ;;  %v673_v9 = vmax.f32 %v577_v52, %v813_v37  ;;  %v579_v28 = vmax.f32 %v482_v25, %v531_v12  ;;  %v820_v49 = vld [vmem:[#allocation2 + $0x1d0] sm:$0xff]  ;;  %v724_v27 = vld [vmem:[#allocation2 + $0x1c0] sm:$0xf] }
  0xd4   : > { %v1492_v13 = vmax.f32 %v1347_v63, %v1421_v0  ;;  %v1348_v11 = vmax.f32 %v1203_v40, %v1278_v61  ;;  %v989_v22 = vrot.slane %v864_v35, 1  ;;  %v1134_v46 = vrot.slane %v864_v35, 2  ;;  %v627_v0 = vld [vmem:[#allocation2 + $0x1a8] sm:$0xf] }
  0xd5   : > { %v990_v38 = vrot.slane %v865_v56, 1  ;;  %v1135_v19 = vrot.slane %v865_v56, 2  ;;  %v1279_v41 = vrot.slane %v864_v35, 3  ;;  %v1280_v24 = vrot.slane %v865_v56, 3 }
  0xd6   : > { %1524 = vst.msk [vmem:[%s4391_s25 + $0xd0] sm:$0xff] %vm290_vm0, %v1492_v13  ;;  %v1493_v42 = vmax.f32 %v1348_v11, %v1423_v55  ;;  %v1424_v53 = vrot.slane %v864_v35, 4  ;;  %v1425_v33 = vrot.slane %v865_v56, 4  ;;  %v866_v36 = vmax.f32 %v769_v58, %v818_v48 }
  0xd7   : > { %v991_v60 = vsel %vm918_vm3, %v989_v22, %v990_v38  ;;  %v1136_v37 = vsel %vm1063_vm4, %v1134_v46, %v1135_v19  ;;  %v674_v52 = vmax.f32 %v578_v39, %v626_v8  ;;  %1556 = vst.msk [vmem:[#allocation2 + $0x16a] sm:$0xff] %vm290_vm0, %v1492_v13  ;;  %v1281_v15 = vsel %vm1208_vm5, %v1279_v41, %v1280_v24  ;;  %v821_v22 = vld [vmem:[#allocation2 + $0x1d8] sm:$0xf]  ;;  %v1744_v54 = vld [vmem:[#allocation2 + $0x160] sm:$0xf] }
  0xd8   : > { %1525 = vst.msk [vmem:[%s4391_s25 + $0xd8] sm:$0xff] %vm290_vm0, %v1493_v42  ;;  %v1059_v32 = vmax.f32 %v864_v35, %v991_v60  ;;  %v992_v31 = vrot.slane %v866_v36, 1  ;;  %v1137_v51 = vrot.slane %v866_v36, 2  ;;  %v1282_v25 = vrot.slane %v866_v36, 3  ;;  %v1611_v60 = vld [vmem:[#allocation2 + $0x20] sm:$0xff] }
  0xd9   : > { %v1427_v12 = vrot.slane %v866_v36, 4  ;;  %v770_v61 = vmax.f32 %v673_v9, %v816_v47  ;;  %v771_v55 = vmax.f32 %v674_v52, %v817_v50  ;;  %1557 = vst.msk [vmem:[#allocation2 + $0x172] sm:$0xff] %vm290_vm0, %v1493_v42  ;;  %v1426_v40 = vsel %vm1353_vm6, %v1424_v53, %v1425_v33 }
  0xda   : > { %v1204_v63 = vmax.f32 %v1059_v32, %v1136_v37  ;;  %v993_v39 = vsel %vm918_vm3, %v990_v38, %v992_v31  ;;  %v675_v58 = vmax.f32 %v579_v28, %v627_v0  ;;  %v1138_v48 = vsel %vm1063_vm4, %v1135_v19, %v1137_v51  ;;  %v1562_v38 = vld [vmem:[#allocation2] sm:$0xff]  ;;  %v4788_v28 = vld [vmem:[#allocation2 + $0x18] sm:$0xff] }
  0xdb   : > { %v1060_v35 = vmax.f32 %v865_v56, %v993_v39  ;;  %v1283_v8 = vsel %vm1208_vm5, %v1280_v24, %v1282_v25  ;;  %v867_v13 = vmax.f32 %v770_v61, %v819_v29  ;;  %v1428_v47 = vsel %vm1353_vm6, %v1425_v33, %v1427_v12  ;;  %v1563_v33 = vld [vmem:[#allocation2 + $0x8] sm:$0xff]  ;;  %v1707_v12 = vld [vmem:[#allocation2 + $0x38] sm:$0xff]  ;;  %v1564_v61 = vld [vmem:[#allocation2 + $0x10] sm:$0xf] }
  0xdc   : > { %v1349_v11 = vmax.f32 %v1204_v63, %v1281_v15  ;;  %v4786_v50 = vmax.f32 %v771_v55, %v820_v49  ;;  %v772_v9 = vmax.f32 %v675_v58, %v724_v27  ;;  %v1706_v15 = vld [vmem:[#allocation2 + $0x30] sm:$0xff]  ;;  %v1658_v25 = vmax.f32 %v1562_v38, %v4788_v28  ;;  %v1612_v55 = vld [vmem:[#allocation2 + $0x28] sm:$0xf] }
  0xdd   : > { %v1205_v46 = vmax.f32 %v1060_v35, %v1138_v48  ;;  %v994_v41 = vrot.slane %v867_v13, 1  ;;  %v1139_v42 = vrot.slane %v867_v13, 2  ;;  %v1284_v53 = vrot.slane %v867_v13, 3  ;;  %v4802_v48 = vld [vmem:[#allocation2 + $0x48] sm:$0xff] }
  0xde   : > { %v1494_v56 = vmax.f32 %v1349_v11, %v1426_v40  ;;  %v995_v19 = vrot.slane %v4786_v50, 1  ;;  %v1140_v24 = vrot.slane %v4786_v50, 2  ;;  %v1285_v36 = vrot.slane %v4786_v50, 3 }
  0xdf   : > { %v1350_v37 = vmax.f32 %v1205_v46, %v1283_v8  ;;  %v1429_v52 = vrot.slane %v867_v13, 4  ;;  %v1430_v0 = vrot.slane %v4786_v50, 4  ;;  %v869_v32 = vmax.f32 %v772_v9, %v821_v22  ;;  %v4804_v8 = vld [vmem:[#allocation2 + $0x50] sm:$0xff]  ;;  %v1708_v9 = vld [vmem:[#allocation2 + $0x40] sm:$0xf]  ;;  %v4808_v46 = vld [vmem:[#allocation2 + $0x38] sm:$0xff] }
  0xe0   : > { %1526 = vst.msk [vmem:[%s4391_s25 + $0xe0] sm:$0xff] %vm290_vm0, %v1494_v56  ;;  %v996_v31 = vsel %vm918_vm3, %v994_v41, %v995_v19  ;;  %v1141_v51 = vsel %vm1063_vm4, %v1139_v42, %v1140_v24  ;;  %v1286_v29 = vsel %vm1208_vm5, %v1284_v53, %v1285_v36  ;;  %v1659_v40 = vmax.f32 %v1563_v33, %v1611_v60  ;;  %v4806_v22 = vld [vmem:[#allocation2 + $0x30] sm:$0xff] }
  0xe1   : > { %v1495_v49 = vmax.f32 %v1350_v37, %v1428_v47  ;;  %v1061_v27 = vmax.f32 %v867_v13, %v996_v31  ;;  %1558 = vst.msk [vmem:[#allocation2 + $0x182] sm:$0xff] %vm290_vm0, %v1494_v56  ;;  %v997_v63 = vrot.slane %v869_v32, 1  ;;  %v1431_v39 = vsel %vm1353_vm6, %v1429_v52, %v1430_v0  ;;  %v1615_v47 = vld [vmem:[#allocation2 + $0x40] sm:$0xf]  ;;  %v1804_v52 = vld [vmem:[#allocation2 + $0x58] sm:$0xf] }
  0xe2   : > { %v1142_v58 = vrot.slane %v869_v32, 2  ;;  %v1287_v35 = vrot.slane %v869_v32, 3  ;;  %v1754_v11 = vmax.f32 %v1658_v25, %v1706_v15  ;;  %v1755_v42 = vmax.f32 %v1659_v40, %v1707_v12  ;;  %v4819_v12 = vld [vmem:[#allocation2 + $0x60] sm:$0xff] }
  0xe3   : > { %1527 = vst.msk [vmem:[%s4391_s25 + $0xe8] sm:$0xff] %vm290_vm0, %v1495_v49  ;;  %v1206_v13 = vmax.f32 %v1061_v27, %v1141_v51  ;;  %v998_v41 = vsel %vm918_vm3, %v995_v19, %v997_v63  ;;  %v1660_v53 = vmax.f32 %v1564_v61, %v1612_v55  ;;  %v1432_v37 = vrot.slane %v869_v32, 4  ;;  %v1567_v27 = vld [vmem:[#allocation2 + $0x28] sm:$0xf] }
  0xe4   : > { %v1062_v38 = vmax.f32 %v4786_v50, %v998_v41  ;;  %v1143_v56 = vsel %vm1063_vm4, %v1140_v24, %v1142_v58  ;;  %v1288_v33 = vsel %vm1208_vm5, %v1285_v36, %v1287_v35  ;;  %1559 = vst.msk [vmem:[#allocation2 + $0x18a] sm:$0xff] %vm290_vm0, %v1495_v49  ;;  %v1850_v31 = vmax.f32 %v1754_v11, %v4802_v48  ;;  %v4821_v50 = vld [vmem:[#allocation2 + $0x68] sm:$0xff]  ;;  %v1711_v11 = vld [vmem:[#allocation2 + $0x58] sm:$0xf] }
  0xe5   : > { %v1351_v15 = vmax.f32 %v1206_v13, %v1286_v29  ;;  %v1851_v25 = vmax.f32 %v1755_v42, %v4804_v8  ;;  %v1756_v51 = vmax.f32 %v1660_v53, %v1708_v9  ;;  %v1661_v24 = vmax.f32 %v4788_v28, %v4806_v22  ;;  %v1900_v53 = vld [vmem:[#allocation2 + $0x70] sm:$0xf] }
  0xe6   : > { %v1207_v19 = vmax.f32 %v1062_v38, %v1143_v56  ;;  %v1662_v36 = vmax.f32 %v1611_v60, %v4808_v46  ;;  %v1663_v32 = vmax.f32 %v1567_v27, %v1615_v47  ;;  %v1946_v29 = vmax.f32 %v1850_v31, %v4819_v12 }
  0xe7   : > { %v1496_v61 = vmax.f32 %v1351_v15, %v1431_v39  ;;  %v1947_v55 = vmax.f32 %v1851_v25, %v4821_v50  ;;  %v1852_v49 = vmax.f32 %v1756_v51, %v1804_v52  ;;  %v1433_v40 = vsel %vm1353_vm6, %v1430_v0, %v1432_v37 }
  0xe8   : > { %v1352_v63 = vmax.f32 %v1207_v19, %v1288_v33  ;;  %v1757_v58 = vmax.f32 %v1661_v24, %v4802_v48  ;;  %v1758_v35 = vmax.f32 %v1662_v36, %v4804_v8  ;;  %v2042_v28 = vrot.slane %v1946_v29, 1  ;;  %v4842_v24 = vld [vmem:[#allocation2 + $0x78] sm:$0xff]  ;;  %v4844_v36 = vld [vmem:[#allocation2 + $0x80] sm:$0xff] }
  0xe9   : > { %1528 = vst.msk [vmem:[%s4391_s25 + $0xf0] sm:$0xff] %vm290_vm0, %v1496_v61  ;;  %v2043_v60 = vrot.slane %v1947_v55, 1  ;;  %v2186_v9 = vrot.slane %v1946_v29, 2  ;;  %v2187_v39 = vrot.slane %v1947_v55, 2  ;;  %v2330_v13 = vrot.slane %v1946_v29, 3 }
  0xea   : > { %1560 = vst.msk [vmem:[#allocation2 + $0x19a] sm:$0xff] %vm290_vm0, %v1496_v61  ;;  %v1497_v47 = vmax.f32 %v1352_v63, %v1433_v40  ;;  %v2331_v41 = vrot.slane %v1947_v55, 3  ;;  %v2474_v42 = vrot.slane %v1946_v29, 4  ;;  %v2475_v38 = vrot.slane %v1947_v55, 4  ;;  %v1807_v63 = vld [vmem:[#allocation2 + $0x70] sm:$0xf] }
  0xeb   : > { %v2044_v0 = vsel %vm918_vm3, %v2042_v28, %v2043_v60  ;;  %v1948_v56 = vmax.f32 %v1852_v49, %v1900_v53  ;;  %v1759_v33 = vmax.f32 %v1663_v32, %v1711_v11  ;;  %v2188_v52 = vsel %vm1063_vm4, %v2186_v9, %v2187_v39 }
  0xec   : > { %1529 = vst.msk [vmem:[%s4391_s25 + $0xf8] sm:$0xff] %vm290_vm0, %v1497_v47  ;;  %v2154_v37 = vmax.f32 %v1946_v29, %v2044_v0  ;;  %v1853_v15 = vmax.f32 %v1757_v58, %v4819_v12  ;;  %v1854_v31 = vmax.f32 %v1758_v35, %v4821_v50  ;;  %v2332_v25 = vsel %vm1208_vm5, %v2330_v13, %v2331_v41 }
  0xed   : > { %1561 = vst.msk [vmem:[#allocation2 + $0x1a2] sm:$0xff] %vm290_vm0, %v1497_v47  ;;  %v2045_v51 = vrot.slane %v1948_v56, 1  ;;  %v2189_v27 = vrot.slane %v1948_v56, 2  ;;  %v2333_v19 = vrot.slane %v1948_v56, 3  ;;  %v2476_v61 = vsel %vm1353_vm6, %v2474_v42, %v2475_v38 }
  0xee   : > { %v2298_v32 = vmax.f32 %v2154_v37, %v2188_v52  ;;  %v1949_v29 = vmax.f32 %v1853_v15, %v4842_v24  ;;  %v4849_v49 = vmax.f32 %v1854_v31, %v4844_v36  ;;  %v2477_v35 = vrot.slane %v1948_v56, 4  ;;  %v1903_v37 = vld [vmem:[#allocation2 + $0x88] sm:$0xf] }
  0xef   : > { %v2046_v40 = vsel %vm918_vm3, %v2043_v60, %v2045_v51  ;;  %v2190_v58 = vsel %vm1063_vm4, %v2187_v39, %v2189_v27  ;;  %v1855_v11 = vmax.f32 %v1759_v33, %v1807_v63  ;;  %v2334_v47 = vsel %vm1208_vm5, %v2331_v41, %v2333_v19 }
  0xf0   : > { %v2442_v28 = vmax.f32 %v2298_v32, %v2332_v25  ;;  %v2155_v9 = vmax.f32 %v1947_v55, %v2046_v40  ;;  %v2047_v13 = vrot.slane %v1949_v29, 1  ;;  %v2048_v42 = vrot.slane %v4849_v49, 1  ;;  %v1618_v40 = vld [vmem:[#allocation2 + $0x58] sm:$0xf] }
  0xf1   : > { %v2191_v53 = vrot.slane %v1949_v29, 2  ;;  %v2192_v60 = vrot.slane %v4849_v49, 2  ;;  %v2335_v0 = vrot.slane %v1949_v29, 3  ;;  %v2336_v33 = vrot.slane %v4849_v49, 3 }
  0xf2   : > { %v2586_v39 = vmax.f32 %v2442_v28, %v2476_v61  ;;  %v2299_v56 = vmax.f32 %v2155_v9, %v2190_v58  ;;  %v2479_v55 = vrot.slane %v1949_v29, 4  ;;  %v2478_v41 = vsel %vm1353_vm6, %v2475_v38, %v2477_v35  ;;  %v1573_v28 = vld [vmem:[#allocation2 + $0x58] sm:$0xf] }
  0xf3   : > { %v2049_v52 = vsel %vm918_vm3, %v2047_v13, %v2048_v42  ;;  %v2480_v15 = vrot.slane %v4849_v49, 4  ;;  %v1951_v31 = vmax.f32 %v1855_v11, %v1903_v37  ;;  %v2193_v27 = vsel %vm1063_vm4, %v2191_v53, %v2192_v60  ;;  %v1621_v53 = vld [vmem:[#allocation2 + $0x70] sm:$0xf] }
  0xf4   : > { %2618 = vst.msk [vmem:[%s4858_s28] sm:$0xff] %vm290_vm0, %v2586_v39  ;;  %v2443_v25 = vmax.f32 %v2299_v56, %v2334_v47  ;;  %v2156_v51 = vmax.f32 %v1949_v29, %v2049_v52  ;;  %v1664_v19 = vmax.f32 %v4806_v22, %v4802_v48  ;;  %v2337_v32 = vsel %vm1208_vm5, %v2335_v0, %v2336_v33  ;;  %v1570_v0 = vld [vmem:[#allocation2 + $0x40] sm:$0xf] }
  0xf5   : > { %2650 = vst.msk [vmem:[#allocation2 + $0x32] sm:$0xff] %vm290_vm0, %v2586_v39  ;;  %v2050_v38 = vrot.slane %v1951_v31, 1  ;;  %v2194_v61 = vrot.slane %v1951_v31, 2  ;;  %v2338_v63 = vrot.slane %v1951_v31, 3  ;;  %v2481_v11 = vsel %vm1353_vm6, %v2479_v55, %v2480_v15 }
  0xf6   : > { %v2587_v58 = vmax.f32 %v2443_v25, %v2478_v41  ;;  %v2300_v35 = vmax.f32 %v2156_v51, %v2193_v27  ;;  %v1665_v29 = vmax.f32 %v4808_v46, %v4804_v8  ;;  %v2482_v47 = vrot.slane %v1951_v31, 4  ;;  %v4891_v25 = vld [vmem:[#allocation2 + $0x90] sm:$0xff]  ;;  %v4893_v27 = vld [vmem:[#allocation2 + $0x98] sm:$0xff] }
  0xf7   : > { %v2051_v9 = vsel %vm918_vm3, %v2048_v42, %v2050_v38  ;;  %v2195_v22 = vsel %vm1063_vm4, %v2192_v60, %v2194_v61  ;;  %v1760_v13 = vmax.f32 %v1664_v19, %v4819_v12  ;;  %v2339_v55 = vsel %vm1208_vm5, %v2336_v33, %v2338_v63  ;;  %v1714_v33 = vld [vmem:[#allocation2 + $0x70] sm:$0xf]  ;;  %v1717_v61 = vld [vmem:[#allocation2 + $0x88] sm:$0xf] }
  0xf8   : > { %2619 = vst.msk [vmem:[%s4858_s28 + $0x8] sm:$0xff] %vm290_vm0, %v2587_v58  ;;  %v2444_v39 = vmax.f32 %v2300_v35, %v2337_v32  ;;  %v2157_v56 = vmax.f32 %v4849_v49, %v2051_v9  ;;  %v1761_v37 = vmax.f32 %v1665_v29, %v4821_v50  ;;  %v1666_v42 = vmax.f32 %v1570_v0, %v1618_v40  ;;  %v1810_v0 = vld [vmem:[#allocation2 + $0x88] sm:$0xf] }
  0xf9   : > { %2651 = vst.msk [vmem:[#allocation2 + $0x3a] sm:$0xff] %vm290_vm0, %v2587_v58  ;;  %v1856_v46 = vmax.f32 %v1760_v13, %v4842_v24  ;;  %v1667_v60 = vmax.f32 %v4802_v48, %v4819_v12  ;;  %v1668_v41 = vmax.f32 %v4804_v8, %v4821_v50  ;;  %v1669_v51 = vmax.f32 %v1573_v28, %v1621_v53 }
  0xfa   : > { %v2588_v52 = vmax.f32 %v2444_v39, %v2481_v11  ;;  %v2301_v31 = vmax.f32 %v2157_v56, %v2195_v22  ;;  %v1857_v49 = vmax.f32 %v1761_v37, %v4844_v36  ;;  %v1762_v32 = vmax.f32 %v1666_v42, %v1714_v33  ;;  %v1906_v42 = vld [vmem:[#allocation2 + $0xa0] sm:$0xf] }
  0xfb   : > { %v1952_v19 = vmax.f32 %v1856_v46, %v4891_v25  ;;  %v1763_v38 = vmax.f32 %v1667_v60, %v4842_v24  ;;  %v1764_v48 = vmax.f32 %v1668_v41, %v4844_v36  ;;  %v2483_v63 = vsel %vm1353_vm6, %v2480_v15, %v2482_v47  ;;  %v1813_v47 = vld [vmem:[#allocation2 + $0xa0] sm:$0xf]  ;;  %v4909_v60 = vld [vmem:[#allocation2 + $0xa8] sm:$0xff] }
  0xfc   : > { %2620 = vst.msk [vmem:[%s4858_s28 + $0x10] sm:$0xff] %vm290_vm0, %v2588_v52  ;;  %v2445_v8 = vmax.f32 %v2301_v31, %v2339_v55  ;;  %v1953_v40 = vmax.f32 %v1857_v49, %v4893_v27  ;;  %v1765_v58 = vmax.f32 %v1669_v51, %v1717_v61  ;;  %v1858_v56 = vmax.f32 %v1762_v32, %v1810_v0  ;;  %v4915_v51 = vld [vmem:[#allocation2 + $0xb0] sm:$0xff] }
  0xfd   : > { %2652 = vst.msk [vmem:[#allocation2 + $0x4a] sm:$0xff] %vm290_vm0, %v2588_v52  ;;  %v2052_v35 = vrot.slane %v1952_v19, 1  ;;  %v2196_v11 = vrot.slane %v1952_v19, 2  ;;  %v2340_v29 = vrot.slane %v1952_v19, 3  ;;  %v2484_v28 = vrot.slane %v1952_v19, 4 }
  0xfe   : > { %v2589_v9 = vmax.f32 %v2445_v8, %v2483_v63  ;;  %v2053_v22 = vrot.slane %v1953_v40, 1  ;;  %v2197_v13 = vrot.slane %v1953_v40, 2  ;;  %v2341_v53 = vrot.slane %v1953_v40, 3 }
  0xff   : > { %v2485_v39 = vrot.slane %v1953_v40, 4  ;;  %v1859_v55 = vmax.f32 %v1763_v38, %v4891_v25  ;;  %v1860_v15 = vmax.f32 %v1764_v48, %v4893_v27  ;;  %v1861_v41 = vmax.f32 %v1765_v58, %v1813_v47  ;;  %v1909_v38 = vld [vmem:[#allocation2 + $0xb8] sm:$0xf] }
 0x100   : > { %2621 = vst.msk [vmem:[%s4858_s28 + $0x18] sm:$0xff] %vm290_vm0, %v2589_v9  ;;  %v2054_v37 = vsel %vm918_vm3, %v2052_v35, %v2053_v22  ;;  %v2198_v46 = vsel %vm1063_vm4, %v2196_v11, %v2197_v13  ;;  %v1670_v52 = vmax.f32 %v4819_v12, %v4842_v24  ;;  %v2342_v49 = vsel %vm1208_vm5, %v2340_v29, %v2341_v53 }
 0x101   : > { %2653 = vst.msk [vmem:[#allocation2 + $0x52] sm:$0xff] %vm290_vm0, %v2589_v9  ;;  %v2158_v31 = vmax.f32 %v1952_v19, %v2054_v37  ;;  %v1954_v33 = vmax.f32 %v1858_v56, %v1906_v42  ;;  %v1955_v32 = vmax.f32 %v1859_v55, %v4909_v60  ;;  %v2486_v48 = vsel %vm1353_vm6, %v2484_v28, %v2485_v39 }
 0x102   : > { %v4920_v61 = vmax.f32 %v1860_v15, %v4915_v51  ;;  %v4922_v8 = vmax.f32 %v1861_v41, %v1909_v38  ;;  %v1671_v12 = vmax.f32 %v4821_v50, %v4844_v36  ;;  %v1766_v0 = vmax.f32 %v1670_v52, %v4891_v25 }
 0x103   : > { %v2302_v63 = vmax.f32 %v2158_v31, %v2198_v46  ;;  %v2055_v19 = vrot.slane %v1954_v33, 1  ;;  %v2199_v58 = vrot.slane %v1954_v33, 2  ;;  %v2343_v35 = vrot.slane %v1954_v33, 3 }
 0x104   : > { %v2057_v11 = vrot.slane %v1955_v32, 1  ;;  %v2058_v29 = vrot.slane %v4920_v61, 1  ;;  %v2201_v9 = vrot.slane %v1955_v32, 2  ;;  %v2487_v15 = vrot.slane %v1954_v33, 4 }
 0x105   : > { %v2446_v56 = vmax.f32 %v2302_v63, %v2342_v49  ;;  %v2056_v28 = vsel %vm918_vm3, %v2053_v22, %v2055_v19  ;;  %v2200_v55 = vsel %vm1063_vm4, %v2197_v13, %v2199_v58  ;;  %v2344_v50 = vsel %vm1208_vm5, %v2341_v53, %v2343_v35 }
 0x106   : > { %v2159_v47 = vmax.f32 %v1953_v40, %v2056_v28  ;;  %v2059_v37 = vsel %vm918_vm3, %v2057_v11, %v2058_v29  ;;  %v2202_v46 = vrot.slane %v4920_v61, 2  ;;  %v2345_v31 = vrot.slane %v1955_v32, 3  ;;  %v1624_v11 = vld [vmem:[#allocation2 + $0x88] sm:$0xf] }
 0x107   : > { %v2590_v42 = vmax.f32 %v2446_v56, %v2486_v48  ;;  %v2160_v41 = vmax.f32 %v1955_v32, %v2059_v37  ;;  %v2346_v38 = vrot.slane %v4920_v61, 3  ;;  %v2489_v63 = vrot.slane %v1955_v32, 4  ;;  %v1576_v32 = vld [vmem:[#allocation2 + $0x70] sm:$0xf] }
 0x108   : > { %v2303_v52 = vmax.f32 %v2159_v47, %v2200_v55  ;;  %v2203_v49 = vsel %vm1063_vm4, %v2201_v9, %v2202_v46  ;;  %v2490_v22 = vrot.slane %v4920_v61, 4  ;;  %v2488_v40 = vsel %vm1353_vm6, %v2485_v39, %v2487_v15  ;;  %v1579_v55 = vld [vmem:[#allocation2 + $0x88] sm:$0xf]  ;;  %v1627_v15 = vld [vmem:[#allocation2 + $0xa0] sm:$0xf] }
 0x109   : > { %2622 = vst.msk [vmem:[%s4858_s28 + $0x20] sm:$0xff] %vm290_vm0, %v2590_v42  ;;  %v2304_v13 = vmax.f32 %v2160_v41, %v2203_v49  ;;  %v2060_v53 = vrot.slane %v4922_v8, 1  ;;  %v2204_v33 = vrot.slane %v4922_v8, 2  ;;  %v2347_v19 = vsel %vm1208_vm5, %v2345_v31, %v2346_v38  ;;  %v4957_v49 = vld [vmem:[#allocation2 + $0xc8] sm:$0xff] }
 0x10a   : > { %v2447_v48 = vmax.f32 %v2303_v52, %v2344_v50  ;;  %v2491_v58 = vsel %vm1353_vm6, %v2489_v63, %v2490_v22  ;;  %v2348_v35 = vrot.slane %v4922_v8, 3  ;;  %2654 = vst.msk [vmem:[#allocation2 + $0x62] sm:$0xff] %vm290_vm0, %v2590_v42  ;;  %v2492_v56 = vrot.slane %v4922_v8, 4  ;;  %v1720_v63 = vld [vmem:[#allocation2 + $0xa0] sm:$0xf] }
 0x10b   : > { %v2448_v9 = vmax.f32 %v2304_v13, %v2347_v19  ;;  %v2061_v39 = vsel %vm918_vm3, %v2058_v29, %v2060_v53  ;;  %v1767_v28 = vmax.f32 %v1671_v12, %v4893_v27  ;;  %v2205_v37 = vsel %vm1063_vm4, %v2202_v46, %v2204_v33  ;;  %v4955_v12 = vld [vmem:[#allocation2 + $0xc0] sm:$0xff]  ;;  %v1723_v33 = vld [vmem:[#allocation2 + $0xb8] sm:$0xf] }
 0x10c   : > { %v2591_v47 = vmax.f32 %v2447_v48, %v2488_v40  ;;  %v2161_v50 = vmax.f32 %v4920_v61, %v2061_v39  ;;  %v2349_v42 = vsel %vm1208_vm5, %v2346_v38, %v2348_v35  ;;  %v1862_v31 = vmax.f32 %v1766_v0, %v4909_v60 }
 0x10d   : > { %v2592_v41 = vmax.f32 %v2448_v9, %v2491_v58  ;;  %v1863_v52 = vmax.f32 %v1767_v28, %v4915_v51  ;;  %v1672_v29 = vmax.f32 %v1576_v32, %v1624_v11  ;;  %v1673_v61 = vmax.f32 %v4842_v24, %v4891_v25  ;;  %v1816_v28 = vld [vmem:[#allocation2 + $0xb8] sm:$0xf] }
 0x10e   : > { %2623 = vst.msk [vmem:[%s4858_s28 + $0x28] sm:$0xff] %vm290_vm0, %v2591_v47  ;;  %v2305_v8 = vmax.f32 %v2161_v50, %v2205_v37  ;;  %v1674_v46 = vmax.f32 %v4844_v36, %v4893_v27  ;;  %v1675_v38 = vmax.f32 %v1579_v55, %v1627_v15  ;;  %v2493_v0 = vsel %vm1353_vm6, %v2490_v22, %v2492_v56 }
 0x10f   : > { %2624 = vst.msk [vmem:[%s4858_s28 + $0x30] sm:$0xff] %vm290_vm0, %v2592_v41  ;;  %v1958_v40 = vmax.f32 %v1862_v31, %v4955_v12  ;;  %v4968_v13 = vmax.f32 %v1863_v52, %v4957_v49  ;;  %v1768_v53 = vmax.f32 %v1672_v29, %v1720_v63  ;;  %v1769_v24 = vmax.f32 %v1673_v61, %v4909_v60  ;;  %v1819_v29 = vld [vmem:[#allocation2 + $0xd0] sm:$0xf] }
 0x110   : > { %v2449_v48 = vmax.f32 %v2305_v8, %v2349_v42  ;;  %2655 = vst.msk [vmem:[#allocation2 + $0x6a] sm:$0xff] %vm290_vm0, %v2591_v47  ;;  %v1770_v19 = vmax.f32 %v1674_v46, %v4915_v51  ;;  %v1771_v36 = vmax.f32 %v1675_v38, %v1723_v33  ;;  %v1676_v50 = vmax.f32 %v4891_v25, %v4909_v60  ;;  %v4988_v46 = vld [vmem:[#allocation2 + $0xd8] sm:$0xff]  ;;  %v4990_v38 = vld [vmem:[#allocation2 + $0xe0] sm:$0xff] }
 0x111   : > { %v2062_v58 = vrot.slane %v1958_v40, 1  ;;  %v2063_v35 = vrot.slane %v4968_v13, 1  ;;  %v2206_v22 = vrot.slane %v1958_v40, 2  ;;  %v2207_v32 = vrot.slane %v4968_v13, 2  ;;  %2656 = vst.msk [vmem:[#allocation2 + $0x7a] sm:$0xff] %vm290_vm0, %v2592_v41 }
 0x112   : > { %v2593_v11 = vmax.f32 %v2449_v48, %v2493_v0  ;;  %v2350_v9 = vrot.slane %v1958_v40, 3  ;;  %v2351_v39 = vrot.slane %v4968_v13, 3  ;;  %v2494_v56 = vrot.slane %v1958_v40, 4  ;;  %v1912_v41 = vld [vmem:[#allocation2 + $0xd0] sm:$0xf] }
 0x113   : > { %v2064_v55 = vsel %vm918_vm3, %v2062_v58, %v2063_v35  ;;  %v2495_v15 = vrot.slane %v4968_v13, 4  ;;  %v1864_v47 = vmax.f32 %v1768_v53, %v1816_v28  ;;  %v2208_v42 = vsel %vm1063_vm4, %v2206_v22, %v2207_v32 }
 0x114   : > { %2625 = vst.msk [vmem:[%s4858_s28 + $0x38] sm:$0xff] %vm290_vm0, %v2593_v11  ;;  %v2162_v37 = vmax.f32 %v1958_v40, %v2064_v55  ;;  %v1865_v31 = vmax.f32 %v1769_v24, %v4955_v12  ;;  %v1866_v52 = vmax.f32 %v1770_v19, %v4957_v49  ;;  %v2352_v8 = vsel %vm1208_vm5, %v2350_v9, %v2351_v39 }
 0x115   : > { %v2496_v63 = vsel %vm1353_vm6, %v2494_v56, %v2495_v15  ;;  %v1960_v61 = vmax.f32 %v1864_v47, %v1912_v41  ;;  %v1867_v25 = vmax.f32 %v1771_v36, %v1819_v29  ;;  %2657 = vst.msk [vmem:[#allocation2 + $0x82] sm:$0xff] %vm290_vm0, %v2593_v11  ;;  %v1677_v33 = vmax.f32 %v4893_v27, %v4915_v51 }
 0x116   : > { %v2306_v0 = vmax.f32 %v2162_v37, %v2208_v42  ;;  %v1961_v40 = vmax.f32 %v1865_v31, %v4988_v46  ;;  %v1962_v53 = vmax.f32 %v1866_v52, %v4990_v38  ;;  %v1772_v58 = vmax.f32 %v1676_v50, %v4955_v12 }
 0x117   : > { %v2065_v48 = vrot.slane %v1960_v61, 1  ;;  %v2209_v24 = vrot.slane %v1960_v61, 2  ;;  %v2353_v19 = vrot.slane %v1960_v61, 3  ;;  %v2497_v47 = vrot.slane %v1960_v61, 4 }
 0x118   : > { %v2450_v22 = vmax.f32 %v2306_v0, %v2352_v8  ;;  %v2067_v9 = vrot.slane %v1961_v40, 1  ;;  %v2068_v56 = vrot.slane %v1962_v53, 1  ;;  %v2211_v36 = vrot.slane %v1961_v40, 2  ;;  %v1915_v8 = vld [vmem:[#allocation2 + $0xe8] sm:$0xf] }
 0x119   : > { %v2066_v11 = vsel %vm918_vm3, %v2063_v35, %v2065_v48  ;;  %v2210_v28 = vsel %vm1063_vm4, %v2207_v32, %v2209_v24  ;;  %v2354_v55 = vsel %vm1208_vm5, %v2351_v39, %v2353_v19  ;;  %v2212_v41 = vrot.slane %v1962_v53, 2 }
 0x11a   : > { %v2594_v37 = vmax.f32 %v2450_v22, %v2496_v63  ;;  %v2163_v27 = vmax.f32 %v4968_v13, %v2066_v11  ;;  %v2069_v42 = vsel %vm918_vm3, %v2067_v9, %v2068_v56  ;;  %v2355_v50 = vrot.slane %v1961_v40, 3 }
 0x11b   : > { %v2164_v31 = vmax.f32 %v1961_v40, %v2069_v42  ;;  %v2356_v52 = vrot.slane %v1962_v53, 3  ;;  %v2499_v29 = vrot.slane %v1961_v40, 4  ;;  %v2213_v35 = vsel %vm1063_vm4, %v2211_v36, %v2212_v41 }
 0x11c   : > { %2626 = vst.msk [vmem:[%s4858_s28 + $0x40] sm:$0xff] %vm290_vm0, %v2594_v37  ;;  %v2307_v0 = vmax.f32 %v2163_v27, %v2210_v28  ;;  %v2500_v32 = vrot.slane %v1962_v53, 4  ;;  %v1963_v48 = vmax.f32 %v1867_v25, %v1915_v8  ;;  %v2498_v39 = vsel %vm1353_vm6, %v2495_v15, %v2497_v47  ;;  %v5012_v28 = vld [vmem:[#allocation2 + $0xf0] sm:$0xff]  ;;  %v1582_v47 = vld [vmem:[#allocation2 + $0xa0] sm:$0xf] }
 0x11d   : > { %v2308_v63 = vmax.f32 %v2164_v31, %v2213_v35  ;;  %v1773_v13 = vmax.f32 %v1677_v33, %v4957_v49  ;;  %v1868_v61 = vmax.f32 %v1772_v58, %v4988_v46  ;;  %2658 = vst.msk [vmem:[#allocation2 + $0x92] sm:$0xff] %vm290_vm0, %v2594_v37  ;;  %v2357_v40 = vsel %vm1208_vm5, %v2355_v50, %v2356_v52  ;;  %v1630_v37 = vld [vmem:[#allocation2 + $0xb8] sm:$0xf] }
 0x11e   : > { %v2451_v24 = vmax.f32 %v2307_v0, %v2354_v55  ;;  %v2070_v19 = vrot.slane %v1963_v48, 1  ;;  %v2214_v22 = vrot.slane %v1963_v48, 2  ;;  %v2358_v11 = vrot.slane %v1963_v48, 3  ;;  %v5018_v50 = vld [vmem:[#allocation2 + $0xf8] sm:$0xff] }
 0x11f   : > { %v2452_v9 = vmax.f32 %v2308_v63, %v2357_v40  ;;  %v2502_v36 = vrot.slane %v1963_v48, 4  ;;  %v1869_v25 = vmax.f32 %v1773_v13, %v4990_v38  ;;  %v2501_v33 = vsel %vm1353_vm6, %v2499_v29, %v2500_v32 }
 0x120   : > { %v2595_v15 = vmax.f32 %v2451_v24, %v2498_v39  ;;  %v2071_v58 = vsel %vm918_vm3, %v2068_v56, %v2070_v19  ;;  %v1964_v55 = vmax.f32 %v1868_v61, %v5012_v28  ;;  %v2215_v31 = vsel %vm1063_vm4, %v2212_v41, %v2214_v22  ;;  %v1585_v22 = vld [vmem:[#allocation2 + $0xb8] sm:$0xf] }
 0x121   : > { %v2596_v27 = vmax.f32 %v2452_v9, %v2501_v33  ;;  %v2165_v42 = vmax.f32 %v1962_v53, %v2071_v58  ;;  %v2359_v8 = vsel %vm1208_vm5, %v2356_v52, %v2358_v11  ;;  %v5024_v0 = vmax.f32 %v1869_v25, %v5018_v50  ;;  %v1726_v53 = vld [vmem:[#allocation2 + $0xd0] sm:$0xf] }
 0x122   : > { %2627 = vst.msk [vmem:[%s4858_s28 + $0x48] sm:$0xff] %vm290_vm0, %v2595_v15  ;;  %v2072_v29 = vrot.slane %v1964_v55, 1  ;;  %v2216_v35 = vrot.slane %v1964_v55, 2  ;;  %v2503_v48 = vsel %vm1353_vm6, %v2500_v32, %v2502_v36  ;;  %v1678_v39 = vmax.f32 %v1582_v47, %v1630_v37  ;;  %v5043_v37 = vld [vmem:[#allocation2 + $0xd0] sm:$0xf] }
 0x123   : > { %2628 = vst.msk [vmem:[%s4858_s28 + $0x50] sm:$0xff] %vm290_vm0, %v2596_v27  ;;  %v2309_v56 = vmax.f32 %v2165_v42, %v2215_v31  ;;  %v1679_v41 = vmax.f32 %v4909_v60, %v4955_v12  ;;  %v2073_v63 = vrot.slane %v5024_v0, 1  ;;  %v2217_v13 = vrot.slane %v5024_v0, 2  ;;  %v1633_v60 = vld [vmem:[#allocation2 + $0xd0] sm:$0xf] }
 0x124   : > { %v2360_v52 = vrot.slane %v1964_v55, 3  ;;  %v2361_v61 = vrot.slane %v5024_v0, 3  ;;  %2659 = vst.msk [vmem:[#allocation2 + $0x9a] sm:$0xff] %vm290_vm0, %v2595_v15  ;;  %v1774_v40 = vmax.f32 %v1678_v39, %v1726_v53  ;;  %v1680_v19 = vmax.f32 %v4915_v51, %v4957_v49  ;;  %v1822_v15 = vld [vmem:[#allocation2 + $0xe8] sm:$0xf] }
 0x125   : > { %v2453_v24 = vmax.f32 %v2309_v56, %v2359_v8  ;;  %v1775_v32 = vmax.f32 %v1679_v41, %v4988_v46  ;;  %2660 = vst.msk [vmem:[#allocation2 + $0xaa] sm:$0xff] %vm290_vm0, %v2596_v27  ;;  %v2074_v9 = vsel %vm918_vm3, %v2072_v29, %v2073_v63  ;;  %v2218_v11 = vsel %vm1063_vm4, %v2216_v35, %v2217_v13  ;;  %v5045_v42 = vld [vmem:[#allocation2 + $0xe8] sm:$0xf]  ;;  %v1918_v27 = vld [vmem:[#allocation2 + $0x100] sm:$0xf] }
 0x126   : > { %v2504_v36 = vrot.slane %v1964_v55, 4  ;;  %v2505_v25 = vrot.slane %v5024_v0, 4  ;;  %v2166_v58 = vmax.f32 %v1964_v55, %v2074_v9  ;;  %v1870_v47 = vmax.f32 %v1774_v40, %v1822_v15  ;;  %v5058_v53 = vld [vmem:[#allocation2 + $0x108] sm:$0xff] }
 0x127   : > { %v2597_v33 = vmax.f32 %v2453_v24, %v2503_v48  ;;  %v1776_v51 = vmax.f32 %v1680_v19, %v4990_v38  ;;  %v1871_v31 = vmax.f32 %v1775_v32, %v5012_v28  ;;  %v1681_v8 = vmax.f32 %v1585_v22, %v1633_v60  ;;  %v1729_v41 = vld [vmem:[#allocation2 + $0xe8] sm:$0xf]  ;;  %v5065_v22 = vld [vmem:[#allocation2 + $0x110] sm:$0xff] }
 0x128   : > { %v1682_v29 = vmax.f32 %v4955_v12, %v4988_v46  ;;  %v1683_v35 = vmax.f32 %v4957_v49, %v4990_v38  ;;  %v2310_v55 = vmax.f32 %v2166_v58, %v2218_v11  ;;  %v2362_v56 = vsel %vm1208_vm5, %v2360_v52, %v2361_v61 }
 0x129   : > { %2629 = vst.msk [vmem:[%s4858_s28 + $0x58] sm:$0xff] %vm290_vm0, %v2597_v33  ;;  %v1966_v48 = vmax.f32 %v1870_v47, %v1918_v27  ;;  %v1872_v39 = vmax.f32 %v1776_v51, %v5018_v50  ;;  %v2506_v24 = vsel %vm1353_vm6, %v2504_v36, %v2505_v25  ;;  %v1967_v12 = vmax.f32 %v1871_v31, %v5058_v53 }
 0x12a   : > { %v1777_v40 = vmax.f32 %v1681_v8, %v1729_v41  ;;  %2661 = vst.msk [vmem:[#allocation2 + $0xb2] sm:$0xff] %vm290_vm0, %v2597_v33  ;;  %v1684_v49 = vmax.f32 %v5043_v37, %v5045_v42  ;;  %v2454_v19 = vmax.f32 %v2310_v55, %v2362_v56  ;;  %v1778_v60 = vmax.f32 %v1682_v29, %v5012_v28  ;;  %v1825_v8 = vld [vmem:[#allocation2 + $0x100] sm:$0xf] }
 0x12b   : > { %v2075_v32 = vrot.slane %v1966_v48, 1  ;;  %v2219_v52 = vrot.slane %v1966_v48, 2  ;;  %v2363_v9 = vrot.slane %v1966_v48, 3  ;;  %v5069_v11 = vmax.f32 %v1872_v39, %v5065_v22 }
 0x12c   : > { %v2077_v36 = vrot.slane %v1967_v12, 1  ;;  %v1779_v15 = vmax.f32 %v1683_v35, %v5018_v50  ;;  %v2598_v33 = vmax.f32 %v2454_v19, %v2506_v24  ;;  %v2507_v47 = vrot.slane %v1966_v48, 4  ;;  %v1921_v19 = vld [vmem:[#allocation2 + $0x118] sm:$0xf] }
 0x12d   : > { %v2076_v58 = vsel %vm918_vm3, %v2073_v63, %v2075_v32  ;;  %v2221_v51 = vrot.slane %v1967_v12, 2  ;;  %v2220_v42 = vsel %vm1063_vm4, %v2217_v13, %v2219_v52  ;;  %v2078_v27 = vrot.slane %v5069_v11, 1 }
 0x12e   : > { %v2167_v37 = vmax.f32 %v5024_v0, %v2076_v58  ;;  %v2222_v31 = vrot.slane %v5069_v11, 2  ;;  %2630 = vst.msk [vmem:[%s4858_s28 + $0x60] sm:$0xff] %vm290_vm0, %v2598_v33  ;;  %v2365_v29 = vrot.slane %v1967_v12, 3  ;;  %v2366_v63 = vrot.slane %v5069_v11, 3 }
 0x12f   : > { %v2509_v35 = vrot.slane %v1967_v12, 4  ;;  %v2510_v55 = vrot.slane %v5069_v11, 4  ;;  %v2364_v1 = vsel %vm1208_vm5, %v2361_v61, %v2363_v9  ;;  %v2079_v13 = vsel %vm918_vm3, %v2077_v36, %v2078_v27  ;;  %2662 = vst.msk [vmem:[#allocation2 + $0xc2] sm:$0xff] %vm290_vm0, %v2598_v33  ;;  %v5103_v9 = vld [vmem:[#allocation2 + $0x120] sm:$0xff] }
 0x130   : > { %v2311_v56 = vmax.f32 %v2167_v37, %v2220_v42  ;;  %v1873_v48 = vmax.f32 %v1777_v40, %v1825_v8  ;;  %v2508_v39 = vsel %vm1353_vm6, %v2505_v25, %v2507_v47  ;;  %v2168_v41 = vmax.f32 %v1967_v12, %v2079_v13  ;;  %v1732_v25 = vld [vmem:[#allocation2 + $0x100] sm:$0xf] }
 0x131   : > { %v2223_v24 = vsel %vm1063_vm4, %v2221_v51, %v2222_v31  ;;  %v1874_v32 = vmax.f32 %v1778_v60, %v5058_v53  ;;  %v2367_v61 = vsel %vm1208_vm5, %v2365_v29, %v2366_v63  ;;  %v1875_v40 = vmax.f32 %v1779_v15, %v5065_v22  ;;  %v5115_v51 = vld [vmem:[#allocation2 + $0x128] sm:$0xff] }
 0x132   : > { %v2455_v0 = vmax.f32 %v2311_v56, %v2364_v1  ;;  %v1969_v52 = vmax.f32 %v1873_v48, %v1921_v19  ;;  %v2312_v12 = vmax.f32 %v2168_v41, %v2223_v24  ;;  %v2511_v60 = vsel %vm1353_vm6, %v2509_v35, %v2510_v55  ;;  %v1828_v48 = vld [vmem:[#allocation2 + $0x118] sm:$0xf]  ;;  %v1591_v24 = vld [vmem:[#allocation2 + $0xe8] sm:$0xf]  ;;  %v1639_v19 = vld [vmem:[#allocation2 + $0x100] sm:$0xf] }
 0x133   : > { %v5110_v2 = vmax.f32 %v1874_v32, %v5103_v9  ;;  %v1780_v36 = vmax.f32 %v1684_v49, %v1732_v25  ;;  %v5121_v42 = vmax.f32 %v1875_v40, %v5115_v51  ;;  %v1685_v5 = vmax.f32 %v4988_v46, %v5012_v28 }
 0x134   : > { %v2599_v33 = vmax.f32 %v2455_v0, %v2508_v39  ;;  %v2080_v15 = vrot.slane %v1969_v52, 1  ;;  %v2224_v58 = vrot.slane %v1969_v52, 2  ;;  %v2368_v47 = vrot.slane %v1969_v52, 3 }
 0x135   : > { %v2456_v3 = vmax.f32 %v2312_v12, %v2367_v61  ;;  %v2512_v37 = vrot.slane %v1969_v52, 4  ;;  %v2082_v8 = vrot.slane %v5110_v2, 1  ;;  %v1686_v29 = vmax.f32 %v4990_v38, %v5018_v50  ;;  %v1924_v61 = vld [vmem:[#allocation2 + $0x130] sm:$0xf] }
 0x136   : > { %2631 = vst.msk [vmem:[%s4858_s28 + $0x68] sm:$0xff] %vm290_vm0, %v2599_v33  ;;  %v2081_v4 = vsel %vm918_vm3, %v2078_v27, %v2080_v15  ;;  %v2225_v49 = vsel %vm1063_vm4, %v2222_v31, %v2224_v58  ;;  %v2083_v1 = vrot.slane %v5121_v42, 1  ;;  %v2226_v6 = vrot.slane %v5110_v2, 2 }
 0x137   : > { %v2600_v35 = vmax.f32 %v2456_v3, %v2511_v60  ;;  %v2169_v56 = vmax.f32 %v5069_v11, %v2081_v4  ;;  %2663 = vst.msk [vmem:[#allocation2 + $0xca] sm:$0xff] %vm290_vm0, %v2599_v33  ;;  %v2369_v13 = vsel %vm1208_vm5, %v2366_v63, %v2368_v47  ;;  %v2227_v27 = vrot.slane %v5121_v42, 2 }
 0x138   : > { %v2370_v31 = vrot.slane %v5110_v2, 3  ;;  %v2371_v46 = vrot.slane %v5121_v42, 3  ;;  %v2513_v11 = vsel %vm1353_vm6, %v2510_v55, %v2512_v37  ;;  %v2084_v39 = vsel %vm918_vm3, %v2082_v8, %v2083_v1  ;;  %v5162_v37 = vld [vmem:[#allocation2 + $0x138] sm:$0xff] }
 0x139   : > { %2632 = vst.msk [vmem:[%s4858_s28 + $0x70] sm:$0xff] %vm290_vm0, %v2600_v35  ;;  %v2313_v38 = vmax.f32 %v2169_v56, %v2225_v49  ;;  %v1876_v41 = vmax.f32 %v1780_v36, %v1828_v48  ;;  %v2170_v63 = vmax.f32 %v5110_v2, %v2084_v39  ;;  %v2514_v32 = vrot.slane %v5110_v2, 4 }
 0x13a   : > { %v2515_v0 = vrot.slane %v5121_v42, 4  ;;  %v1781_v52 = vmax.f32 %v1685_v5, %v5058_v53  ;;  %2664 = vst.msk [vmem:[#allocation2 + $0xda] sm:$0xff] %vm290_vm0, %v2600_v35  ;;  %v2228_v55 = vsel %vm1063_vm4, %v2226_v6, %v2227_v27  ;;  %v1782_v12 = vmax.f32 %v1686_v29, %v5065_v22  ;;  %v1735_v5 = vld [vmem:[#allocation2 + $0x118] sm:$0xf]  ;;  %v5178_v35 = vld [vmem:[#allocation2 + $0x140] sm:$0xff] }
 0x13b   : > { %v2457_v40 = vmax.f32 %v2313_v38, %v2369_v13  ;;  %v1972_v25 = vmax.f32 %v1876_v41, %v1924_v61  ;;  %v2314_v60 = vmax.f32 %v2170_v63, %v2228_v55  ;;  %v2372_v2 = vsel %vm1208_vm5, %v2370_v31, %v2371_v46  ;;  %v1831_v41 = vld [vmem:[#allocation2 + $0x130] sm:$0xf]  ;;  %v1594_v63 = vld [vmem:[#allocation2 + $0x100] sm:$0xf]  ;;  %v1927_v55 = vld [vmem:[#allocation2 + $0x148] sm:$0xf] }
 0x13c   : > { %v1877_v36 = vmax.f32 %v1781_v52, %v5103_v9  ;;  %v1687_v33 = vmax.f32 %v1591_v24, %v1639_v19  ;;  %v1878_v4 = vmax.f32 %v1782_v12, %v5115_v51  ;;  %v2516_v14 = vsel %vm1353_vm6, %v2514_v32, %v2515_v0  ;;  %v1642_v32 = vld [vmem:[#allocation2 + $0x118] sm:$0xf] }
 0x13d   : > { %v2601_v15 = vmax.f32 %v2457_v40, %v2513_v11  ;;  %v2085_v58 = vrot.slane %v1972_v25, 1  ;;  %v2229_v47 = vrot.slane %v1972_v25, 2  ;;  %v2373_v3 = vrot.slane %v1972_v25, 3 }
 0x13e   : > { %v2458_v7 = vmax.f32 %v2314_v60, %v2372_v2  ;;  %v2517_v8 = vrot.slane %v1972_v25, 4  ;;  %v5169_v49 = vmax.f32 %v1877_v36, %v5162_v37  ;;  %v1783_v16 = vmax.f32 %v1687_v33, %v1735_v5 }
 0x13f   : > { %2633 = vst.msk [vmem:[%s4858_s28 + $0x78] sm:$0xff] %vm290_vm0, %v2601_v15  ;;  %v2086_v29 = vsel %vm918_vm3, %v2083_v1, %v2085_v58  ;;  %v1688_v56 = vmax.f32 %v5012_v28, %v5058_v53  ;;  %v5184_v31 = vmax.f32 %v1878_v4, %v5178_v35  ;;  %v2230_v17 = vsel %vm1063_vm4, %v2227_v27, %v2229_v47 }
 0x140   : > { %v2602_v6 = vmax.f32 %v2458_v7, %v2516_v14  ;;  %v2171_v13 = vmax.f32 %v5121_v42, %v2086_v29  ;;  %2665 = vst.msk [vmem:[#allocation2 + $0xe2] sm:$0xff] %vm290_vm0, %v2601_v15  ;;  %v2374_v48 = vsel %vm1208_vm5, %v2371_v46, %v2373_v3  ;;  %v2518_v1 = vsel %vm1353_vm6, %v2515_v0, %v2517_v8  ;;  %v5218_v7 = vld [vmem:[#allocation2 + $0x150] sm:$0xff]  ;;  %v5231_v29 = vld [vmem:[#allocation2 + $0x158] sm:$0xff] }
 0x141   : > { %v2087_v38 = vrot.slane %v5169_v49, 1  ;;  %v2088_v28 = vrot.slane %v5184_v31, 1  ;;  %v2231_v42 = vrot.slane %v5169_v49, 2  ;;  %v2232_v39 = vrot.slane %v5184_v31, 2 }
 0x142   : > { %2634 = vst.msk [vmem:[%s4858_s28 + $0x80] sm:$0xff] %vm290_vm0, %v2602_v6  ;;  %v2315_v11 = vmax.f32 %v2171_v13, %v2230_v17  ;;  %v2375_v24 = vrot.slane %v5169_v49, 3  ;;  %v1879_v27 = vmax.f32 %v1783_v16, %v1831_v41  ;;  %v1689_v46 = vmax.f32 %v5018_v50, %v5065_v22  ;;  %v1834_v41 = vld [vmem:[#allocation2 + $0x148] sm:$0xf] }
 0x143   : > { %v1784_v19 = vmax.f32 %v1688_v56, %v5103_v9  ;;  %2666 = vst.msk [vmem:[#allocation2 + $0xf2] sm:$0xff] %vm290_vm0, %v2602_v6  ;;  %v2089_v61 = vsel %vm918_vm3, %v2087_v38, %v2088_v28  ;;  %v2376_v52 = vrot.slane %v5184_v31, 3  ;;  %v2519_v40 = vrot.slane %v5169_v49, 4 }
 0x144   : > { %v2459_v0 = vmax.f32 %v2315_v11, %v2374_v48  ;;  %v2172_v50 = vmax.f32 %v5169_v49, %v2089_v61  ;;  %v2520_v25 = vrot.slane %v5184_v31, 4  ;;  %v1975_v12 = vmax.f32 %v1879_v27, %v1927_v55  ;;  %v1597_v27 = vld [vmem:[#allocation2 + $0x118] sm:$0xf] }
 0x145   : > { %v1785_v60 = vmax.f32 %v1689_v46, %v5115_v51  ;;  %v2233_v36 = vsel %vm1063_vm4, %v2231_v42, %v2232_v39  ;;  %v1880_v33 = vmax.f32 %v1784_v19, %v5162_v37  ;;  %v1690_v15 = vmax.f32 %v1594_v63, %v1642_v32  ;;  %v1645_v46 = vld [vmem:[#allocation2 + $0x130] sm:$0xf] }
 0x146   : > { %v2603_v2 = vmax.f32 %v2459_v0, %v2518_v1  ;;  %v2316_v20 = vmax.f32 %v2172_v50, %v2233_v36  ;;  %v2090_v58 = vrot.slane %v1975_v12, 1  ;;  %v2234_v47 = vrot.slane %v1975_v12, 2  ;;  %v1930_v0 = vld [vmem:[#allocation2 + $0x160] sm:$0xf] }
 0x147   : > { %v2378_v3 = vrot.slane %v1975_v12, 3  ;;  %v2377_v21 = vsel %vm1208_vm5, %v2375_v24, %v2376_v52  ;;  %v2522_v8 = vrot.slane %v1975_v12, 4  ;;  %v1881_v4 = vmax.f32 %v1785_v60, %v5178_v35 }
 0x148   : > { %2635 = vst.msk [vmem:[%s4858_s28 + $0x88] sm:$0xff] %vm290_vm0, %v2603_v2  ;;  %v5228_v49 = vmax.f32 %v1880_v33, %v5218_v7  ;;  %v2460_v5 = vmax.f32 %v2316_v20, %v2377_v21  ;;  %v2091_v14 = vsel %vm918_vm3, %v2088_v28, %v2090_v58  ;;  %v1786_v16 = vmax.f32 %v1690_v15, %v1738_v23  ;;  %v5278_v15 = vld [vmem:[#allocation2 + $0x168] sm:$0xff] }
 0x149   : > { %2667 = vst.msk [vmem:[#allocation2 + $0xfa] sm:$0xff] %vm290_vm0, %v2603_v2  ;;  %v1691_v30 = vmax.f32 %v5058_v53, %v5103_v9  ;;  %v2521_v56 = vsel %vm1353_vm6, %v2519_v40, %v2520_v25  ;;  %v2173_v6 = vmax.f32 %v5184_v31, %v2091_v14  ;;  %v5239_v13 = vmax.f32 %v1881_v4, %v5231_v29 }
 0x14a   : > { %v2092_v17 = vrot.slane %v5228_v49, 1  ;;  %v2604_v48 = vmax.f32 %v2460_v5, %v2521_v56  ;;  %v2235_v1 = vsel %vm1063_vm4, %v2232_v39, %v2234_v47  ;;  %v2379_v38 = vsel %vm1208_vm5, %v2376_v52, %v2378_v3 }
 0x14b   : > { %v2523_v53 = vsel %vm1353_vm6, %v2520_v25, %v2522_v8  ;;  %v2317_v11 = vmax.f32 %v2173_v6, %v2235_v1  ;;  %v2093_v31 = vrot.slane %v5239_v13, 1  ;;  %v2236_v28 = vrot.slane %v5228_v49, 2  ;;  %v5291_v8 = vld [vmem:[#allocation2 + $0x170] sm:$0xff]  ;;  %v1837_v1 = vld [vmem:[#allocation2 + $0x160] sm:$0xf] }
 0x14c   : > { %v2237_v42 = vrot.slane %v5239_v13, 2  ;;  %2636 = vst.msk [vmem:[%s4858_s28 + $0x90] sm:$0xff] %vm290_vm0, %v2604_v48  ;;  %v2380_v43 = vrot.slane %v5228_v49, 3  ;;  %v1882_v39 = vmax.f32 %v1786_v16, %v1834_v41  ;;  %v1692_v44 = vmax.f32 %v5065_v22, %v5115_v51 }
 0x14d   : > { %v1787_v24 = vmax.f32 %v1691_v30, %v5162_v37  ;;  %v2461_v19 = vmax.f32 %v2317_v11, %v2379_v38  ;;  %v2094_v63 = vsel %vm918_vm3, %v2092_v17, %v2093_v31  ;;  %v2381_v32 = vrot.slane %v5239_v13, 3  ;;  %2668 = vst.msk [vmem:[#allocation2 + $0x10a] sm:$0xff] %vm290_vm0, %v2604_v48  ;;  %v1600_v11 = vld [vmem:[#allocation2 + $0x130] sm:$0xf] }
 0x14e   : > { %v2524_v57 = vrot.slane %v5228_v49, 4  ;;  %v2174_v61 = vmax.f32 %v5228_v49, %v2094_v63  ;;  %v2525_v22 = vrot.slane %v5239_v13, 4  ;;  %v1978_v52 = vmax.f32 %v1882_v39, %v1930_v0 }
 0x14f   : > { %v1788_v40 = vmax.f32 %v1692_v44, %v5178_v35  ;;  %v2605_v55 = vmax.f32 %v2461_v19, %v2523_v53  ;;  %v2238_v50 = vsel %vm1063_vm4, %v2236_v28, %v2237_v42  ;;  %v1883_v25 = vmax.f32 %v1787_v24, %v5218_v7 }
 0x150   : > { %v1693_v12 = vmax.f32 %v1597_v27, %v1645_v46  ;;  %v2318_v60 = vmax.f32 %v2174_v61, %v2238_v50  ;;  %v2095_v2 = vrot.slane %v1978_v52, 1  ;;  %v2239_v36 = vrot.slane %v1978_v52, 2 }
 0x151   : > { %v2383_v33 = vrot.slane %v1978_v52, 3  ;;  %2637 = vst.msk [vmem:[%s4858_s28 + $0x98] sm:$0xff] %vm290_vm0, %v2605_v55  ;;  %v2382_v62 = vsel %vm1208_vm5, %v2380_v43, %v2381_v32  ;;  %v2527_v20 = vrot.slane %v1978_v52, 4  ;;  %v1884_v58 = vmax.f32 %v1788_v40, %v5231_v29  ;;  %v1933_v43 = vld [vmem:[#allocation2 + $0x178] sm:$0xf]  ;;  %v5955_v52 = vld [vmem:[#allocation3_spill] sm:$0xff] }
 0x152   : > { %v5288_v47 = vmax.f32 %v1883_v25, %v5278_v15  ;;  %v2462_v3 = vmax.f32 %v2318_v60, %v2382_v62  ;;  %v2096_v21 = vsel %vm918_vm3, %v2093_v31, %v2095_v2  ;;  %v1789_v4 = vmax.f32 %v1693_v12, %v1741_v10  ;;  %2669 = vst.msk [vmem:[#allocation2 + $0x112] sm:$0xff] %vm290_vm0, %v2605_v55  ;;  %v1648_v31 = vld [vmem:[#allocation2 + $0x148] sm:$0xf] }
 0x153   : > { %v1694_v18 = vmax.f32 %v5103_v9, %v5162_v37  ;;  %v2526_v49 = vsel %vm1353_vm6, %v2524_v57, %v2525_v22  ;;  %v2175_v23 = vmax.f32 %v5239_v13, %v2096_v21  ;;  %v5299_v5 = vmax.f32 %v1884_v58, %v5291_v8  ;;  %396 = vst.msk [vmem:[%s5076_s5 + $0xc8] sm:$0xff] %vm290_vm0, %v5955_v52  ;;  %v5351_v60 = vld [vmem:[#allocation2 + $0x188] sm:$0xff] }
 0x154   : > { %v2097_v14 = vrot.slane %v5288_v47, 1  ;;  %v2606_v16 = vmax.f32 %v2462_v3, %v2526_v49  ;;  %v2240_v30 = vsel %vm1063_vm4, %v2237_v42, %v2239_v36  ;;  %v2384_v56 = vsel %vm1208_vm5, %v2381_v32, %v2383_v33 }
 0x155   : > { %v2528_v9 = vsel %vm1353_vm6, %v2525_v22, %v2527_v20  ;;  %v2319_v6 = vmax.f32 %v2175_v23, %v2240_v30  ;;  %v2098_v13 = vrot.slane %v5299_v5, 1  ;;  %v2241_v17 = vrot.slane %v5288_v47, 2  ;;  %v5338_v22 = vld [vmem:[#allocation2 + $0x180] sm:$0xff] }
 0x156   : > { %v2242_v48 = vrot.slane %v5299_v5, 2  ;;  %2638 = vst.msk [vmem:[%s4858_s28 + $0xa0] sm:$0xff] %vm290_vm0, %v2606_v16  ;;  %v2385_v26 = vrot.slane %v5288_v47, 3  ;;  %v1885_v38 = vmax.f32 %v1789_v4, %v1837_v1  ;;  %v1695_v34 = vmax.f32 %v5115_v51, %v5178_v35  ;;  %v5957_v4 = vld [vmem:[#allocation5_spill] sm:$0xff] }
 0x157   : > { %v1790_v53 = vmax.f32 %v1694_v18, %v5218_v7  ;;  %v2463_v28 = vmax.f32 %v2319_v6, %v2384_v56  ;;  %v2099_v42 = vsel %vm918_vm3, %v2097_v14, %v2098_v13  ;;  %v2386_v41 = vrot.slane %v5299_v5, 3  ;;  %2670 = vst.msk [vmem:[#allocation2 + $0x122] sm:$0xff] %vm290_vm0, %v2606_v16  ;;  %v1840_v14 = vld [vmem:[#allocation2 + $0x178] sm:$0xf] }
 0x158   : > { %v2529_v45 = vrot.slane %v5288_v47, 4  ;;  %v2176_v39 = vmax.f32 %v5288_v47, %v2099_v42  ;;  %v2530_v51 = vrot.slane %v5299_v5, 4  ;;  %v1981_v44 = vmax.f32 %v1885_v38, %v1933_v43  ;;  %v5956_v47 = vld [vmem:[#allocation4_spill] sm:$0xff]  ;;  %398 = vst.msk [vmem:[%s5076_s5 + $0xd8] sm:$0xff] %vm290_vm0, %v5957_v4  ;;  %v5958_v16 = vld [vmem:[#allocation6_spill] sm:$0xff] }
 0x159   : > { %v1791_v24 = vmax.f32 %v1695_v34, %v5231_v29  ;;  %v2607_v27 = vmax.f32 %v2463_v28, %v2528_v9  ;;  %v2243_v46 = vsel %vm1063_vm4, %v2241_v17, %v2242_v48  ;;  %v1886_v19 = vmax.f32 %v1790_v53, %v5278_v15  ;;  %397 = vst.msk [vmem:[%s5076_s5 + $0xd0] sm:$0xff] %vm290_vm0, %v5956_v47  ;;  %v1651_v17 = vld [vmem:[#allocation2 + $0x160] sm:$0xf]  ;;  %v1936_v34 = vld [vmem:[#allocation2 + $0x190] sm:$0xf] }
 0x15a   : > { %v1696_v63 = vmax.f32 %v1600_v11, %v1648_v31  ;;  %v2320_v32 = vmax.f32 %v2176_v39, %v2243_v46  ;;  %v2100_v57 = vrot.slane %v1981_v44, 1  ;;  %v2244_v0 = vrot.slane %v1981_v44, 2  ;;  %399 = vst.msk [vmem:[%s5076_s5 + $0xe0] sm:$0xff] %vm290_vm0, %v5958_v16  ;;  %v5959_v28 = vld [vmem:[#allocation7_spill] sm:$0xff]  ;;  %v5960_v39 = vld [vmem:[#allocation8_spill] sm:$0xff]  ;;  %v5398_v46 = vld [vmem:[#allocation2 + $0x198] sm:$0xff] }
 0x15b   : > { %v2388_v61 = vrot.slane %v1981_v44, 3  ;;  %2639 = vst.msk [vmem:[%s4858_s28 + $0xa8] sm:$0xff] %vm290_vm0, %v2607_v27  ;;  %v2387_v59 = vsel %vm1208_vm5, %v2385_v26, %v2386_v41  ;;  %v2532_v40 = vrot.slane %v1981_v44, 4  ;;  %v1887_v55 = vmax.f32 %v1791_v24, %v5291_v8 }
 0x15c   : > { %v5348_v50 = vmax.f32 %v1886_v19, %v5338_v22  ;;  %v2464_v25 = vmax.f32 %v2320_v32, %v2387_v59  ;;  %v2101_v12 = vsel %vm918_vm3, %v2098_v13, %v2100_v57  ;;  %v1792_v2 = vmax.f32 %v1696_v63, %v1744_v54  ;;  %2671 = vst.msk [vmem:[#allocation2 + $0x12a] sm:$0xff] %vm290_vm0, %v2607_v27  ;;  %v1603_v13 = vld [vmem:[#allocation2 + $0x148] sm:$0xf]  ;;  %v5961_v19 = vld [vmem:[#allocation9_spill] sm:$0xff] }
 0x15d   : > { %v1697_v36 = vmax.f32 %v5162_v37, %v5218_v7  ;;  %v2531_v33 = vsel %vm1353_vm6, %v2529_v45, %v2530_v51  ;;  %v2177_v62 = vmax.f32 %v5299_v5, %v2101_v12  ;;  %v5359_v20 = vmax.f32 %v1887_v55, %v5351_v60  ;;  %400 = vst.msk [vmem:[%s5076_s5 + $0xe8] sm:$0xff] %vm290_vm0, %v5959_v28 }
 0x15e   : > { %v2102_v58 = vrot.slane %v5348_v50, 1  ;;  %v2608_v10 = vmax.f32 %v2464_v25, %v2531_v33  ;;  %v2245_v3 = vsel %vm1063_vm4, %v2242_v48, %v2244_v0  ;;  %v2389_v21 = vsel %vm1208_vm5, %v2386_v41, %v2388_v61  ;;  %401 = vst.msk [vmem:[%s5076_s5 + $0xf0] sm:$0xff] %vm290_vm0, %v5960_v39  ;;  %v1747_v61 = vld [vmem:[#allocation2 + $0x178] sm:$0xf] }
 0x15f   : > { %v2533_v37 = vsel %vm1353_vm6, %v2530_v51, %v2532_v40  ;;  %v2321_v18 = vmax.f32 %v2177_v62, %v2245_v3  ;;  %v2103_v49 = vrot.slane %v5359_v20, 1  ;;  %v2246_v23 = vrot.slane %v5348_v50, 2  ;;  %402 = vst.msk [vmem:[%s5076_s5 + $0xf8] sm:$0xff] %vm290_vm0, %v5961_v19  ;;  %v5409_v40 = vld [vmem:[#allocation2 + $0x1a0] sm:$0xff] }
 0x160   : > { %v2247_v5 = vrot.slane %v5359_v20, 2  ;;  %2640 = vst.msk [vmem:[%s4858_s28 + $0xb0] sm:$0xff] %vm290_vm0, %v2608_v10  ;;  %v2390_v30 = vrot.slane %v5348_v50, 3  ;;  %v1888_v56 = vmax.f32 %v1792_v2, %v1840_v14  ;;  %v1698_v9 = vmax.f32 %v5178_v35, %v5231_v29 }
 0x161   : > { %v1793_v6 = vmax.f32 %v1697_v36, %v5278_v15  ;;  %v2465_v48 = vmax.f32 %v2321_v18, %v2389_v21  ;;  %v2104_v1 = vsel %vm918_vm3, %v2102_v58, %v2103_v49  ;;  %v2391_v26 = vrot.slane %v5359_v20, 3  ;;  %2672 = vst.msk [vmem:[#allocation2 + $0x13a] sm:$0xff] %vm290_vm0, %v2608_v10 }
 0x162   : > { %v2534_v38 = vrot.slane %v5348_v50, 4  ;;  %v2178_v53 = vmax.f32 %v5348_v50, %v2104_v1  ;;  %v2535_v35 = vrot.slane %v5359_v20, 4  ;;  %v1984_v11 = vmax.f32 %v1888_v56, %v1936_v34  ;;  %v1939_v56 = vld [vmem:[#allocation2 + $0x1a8] sm:$0xf] }
 0x163   : > { %v1794_v31 = vmax.f32 %v1698_v9, %v5291_v8  ;;  %v2609_v42 = vmax.f32 %v2465_v48, %v2533_v37  ;;  %v2248_v41 = vsel %vm1063_vm4, %v2246_v23, %v2247_v5  ;;  %v1889_v45 = vmax.f32 %v1793_v6, %v5338_v22  ;;  %v1843_v37 = vld [vmem:[#allocation2 + $0x190] sm:$0xf]  ;;  %v1654_v23 = vld [vmem:[#allocation2 + $0x178] sm:$0xf] }
 0x164   : > { %v1699_v43 = vmax.f32 %v1603_v13, %v1651_v17  ;;  %v2322_v51 = vmax.f32 %v2178_v53, %v2248_v41  ;;  %v2105_v44 = vrot.slane %v1984_v11, 1  ;;  %v2249_v24 = vrot.slane %v1984_v11, 2 }
 0x165   : > { %v2393_v27 = vrot.slane %v1984_v11, 3  ;;  %2641 = vst.msk [vmem:[%s4858_s28 + $0xb8] sm:$0xff] %vm290_vm0, %v2609_v42  ;;  %v2392_v63 = vsel %vm1208_vm5, %v2390_v30, %v2391_v26  ;;  %v2537_v32 = vrot.slane %v1984_v11, 4  ;;  %v1890_v57 = vmax.f32 %v1794_v31, %v5351_v60  ;;  %v1940_v11 = vld [vmem:[#allocation2 + $0x1b0] sm:$0xff] }
 0x166   : > { %v1985_v0 = vmax.f32 %v1889_v45, %v5398_v46  ;;  %v2466_v52 = vmax.f32 %v2322_v51, %v2392_v63  ;;  %v2106_v59 = vsel %vm918_vm3, %v2103_v49, %v2105_v44  ;;  %v1795_v55 = vmax.f32 %v1699_v43, %v1747_v61  ;;  %2673 = vst.msk [vmem:[#allocation2 + $0x142] sm:$0xff] %vm290_vm0, %v2609_v42  ;;  %v1606_v49 = vld [vmem:[#allocation2 + $0x160] sm:$0xf]  ;;  %v1750_v45 = vld [vmem:[#allocation2 + $0x190] sm:$0xf]  ;;  %v1941_v51 = vld [vmem:[#allocation2 + $0x1b8] sm:$0xff] }
 0x167   : > { %v1700_v50 = vmax.f32 %v5218_v7, %v5278_v15  ;;  %v2536_v54 = vsel %vm1353_vm6, %v2534_v38, %v2535_v35  ;;  %v2179_v25 = vmax.f32 %v5359_v20, %v2106_v59  ;;  %v1986_v12 = vmax.f32 %v1890_v57, %v5409_v40 }
 0x168   : > { %v2107_v2 = vrot.slane %v1985_v0, 1  ;;  %v2610_v36 = vmax.f32 %v2466_v52, %v2536_v54  ;;  %v2250_v33 = vsel %vm1063_vm4, %v2247_v5, %v2249_v24  ;;  %v2394_v62 = vsel %vm1208_vm5, %v2391_v26, %v2393_v27 }
 0x169   : > { %v2538_v58 = vsel %vm1353_vm6, %v2535_v35, %v2537_v32  ;;  %v2323_v47 = vmax.f32 %v2179_v25, %v2250_v33  ;;  %v2108_v10 = vrot.slane %v1986_v12, 1  ;;  %v2251_v3 = vrot.slane %v1985_v0, 2  ;;  %v1657_v33 = vld [vmem:[#allocation2 + $0x190] sm:$0xf] }
 0x16a   : > { %v2252_v21 = vrot.slane %v1986_v12, 2  ;;  %2642 = vst.msk [vmem:[%s4858_s28 + $0xc0] sm:$0xff] %vm290_vm0, %v2610_v36  ;;  %v2395_v7 = vrot.slane %v1985_v0, 3  ;;  %v1891_v4 = vmax.f32 %v1795_v55, %v1843_v37  ;;  %v1701_v20 = vmax.f32 %v5231_v29, %v5291_v8 }
 0x16b   : > { %v1796_v18 = vmax.f32 %v1700_v50, %v5338_v22  ;;  %v2467_v5 = vmax.f32 %v2323_v47, %v2394_v62  ;;  %v2109_v14 = vsel %vm918_vm3, %v2107_v2, %v2108_v10  ;;  %v2396_v16 = vrot.slane %v1986_v12, 3  ;;  %2674 = vst.msk [vmem:[#allocation2 + $0x152] sm:$0xff] %vm290_vm0, %v2610_v36  ;;  %v1609_v36 = vld [vmem:[#allocation2 + $0x178] sm:$0xf] }
 0x16c   : > { %v2539_v30 = vrot.slane %v1985_v0, 4  ;;  %v2180_v9 = vmax.f32 %v1985_v0, %v2109_v14  ;;  %v2540_v6 = vrot.slane %v1986_v12, 4  ;;  %v1987_v13 = vmax.f32 %v1891_v4, %v1939_v56  ;;  %v1943_v14 = vld [vmem:[#allocation2 + $0x1c8] sm:$0xff] }
 0x16d   : > { %v1797_v17 = vmax.f32 %v1701_v20, %v5351_v60  ;;  %v2611_v48 = vmax.f32 %v2467_v5, %v2538_v58  ;;  %v2253_v29 = vsel %vm1063_vm4, %v2251_v3, %v2252_v21  ;;  %v1892_v1 = vmax.f32 %v1796_v18, %v5398_v46  ;;  %v1942_v3 = vld [vmem:[#allocation2 + $0x1c0] sm:$0xf] }
 0x16e   : > { %v1702_v26 = vmax.f32 %v1606_v49, %v1654_v23  ;;  %v2324_v38 = vmax.f32 %v2180_v9, %v2253_v29  ;;  %v2110_v34 = vrot.slane %v1987_v13, 1  ;;  %v2254_v53 = vrot.slane %v1987_v13, 2 }
 0x16f   : > { %v2398_v35 = vrot.slane %v1987_v13, 3  ;;  %2643 = vst.msk [vmem:[%s4858_s28 + $0xc8] sm:$0xff] %vm290_vm0, %v2611_v48  ;;  %v2397_v31 = vsel %vm1208_vm5, %v2395_v7, %v2396_v16  ;;  %v2542_v28 = vrot.slane %v1987_v13, 4  ;;  %v1893_v42 = vmax.f32 %v1797_v17, %v5409_v40  ;;  %v1753_v13 = vld [vmem:[#allocation2 + $0x1a8] sm:$0xf] }
 0x170   : > { %v1988_v41 = vmax.f32 %v1892_v1, %v1940_v11  ;;  %v2468_v43 = vmax.f32 %v2324_v38, %v2397_v31  ;;  %v2111_v39 = vsel %vm918_vm3, %v2108_v10, %v2110_v34  ;;  %v1798_v44 = vmax.f32 %v1702_v26, %v1750_v45  ;;  %2675 = vst.msk [vmem:[#allocation2 + $0x15a] sm:$0xff] %vm290_vm0, %v2611_v48  ;;  %v1944_v1 = vld [vmem:[#allocation2 + $0x1d0] sm:$0xff] }
 0x171   : > { %v1703_v24 = vmax.f32 %v5278_v15, %v5338_v22  ;;  %v2541_v27 = vsel %vm1353_vm6, %v2539_v30, %v2540_v6  ;;  %v2181_v19 = vmax.f32 %v1986_v12, %v2111_v39  ;;  %v5439_v63 = vmax.f32 %v1893_v42, %v1941_v51  ;;  %v1846_v15 = vld [vmem:[#allocation2 + $0x1a8] sm:$0xf]  ;;  %v5457_v30 = vld [vmem:[#allocation2 + $0x18] sm:$0xff]  ;;  %v1849_v39 = vld [vmem:[#allocation2 + $0x1c0] sm:$0xf] }
 0x172   : > { %v2112_v32 = vrot.slane %v1988_v41, 1  ;;  %v2612_v57 = vmax.f32 %v2468_v43, %v2541_v27  ;;  %v2255_v0 = vsel %vm1063_vm4, %v2252_v21, %v2254_v53  ;;  %v2399_v61 = vsel %vm1208_vm5, %v2396_v16, %v2398_v35  ;;  %v2682_v16 = vld [vmem:[#allocation2] sm:$0xff]  ;;  %v2683_v35 = vld [vmem:[#allocation2 + $0x8] sm:$0xff] }
 0x173   : > { %v2543_v52 = vsel %vm1353_vm6, %v2540_v6, %v2542_v28  ;;  %v2325_v59 = vmax.f32 %v2181_v19, %v2255_v0  ;;  %v2113_v55 = vrot.slane %v5439_v63, 1  ;;  %v2256_v50 = vrot.slane %v1988_v41, 2  ;;  %v5474_v28 = vld [vmem:[#allocation2 + $0x30] sm:$0xff]  ;;  %v5482_v19 = vld [vmem:[#allocation2 + $0x38] sm:$0xff] }
 0x174   : > { %v2257_v54 = vrot.slane %v5439_v63, 2  ;;  %2644 = vst.msk [vmem:[%s4858_s28 + $0xd0] sm:$0xff] %vm290_vm0, %v2612_v57  ;;  %v2400_v22 = vrot.slane %v1988_v41, 3  ;;  %v1894_v25 = vmax.f32 %v1798_v44, %v1846_v15  ;;  %v1704_v12 = vmax.f32 %v5291_v8, %v5351_v60 }
 0x175   : > { %v1799_v2 = vmax.f32 %v1703_v24, %v5398_v46  ;;  %v2469_v62 = vmax.f32 %v2325_v59, %v2399_v61  ;;  %v2114_v58 = vsel %vm918_vm3, %v2112_v32, %v2113_v55  ;;  %v2401_v47 = vrot.slane %v5439_v63, 3  ;;  %2676 = vst.msk [vmem:[#allocation2 + $0x16a] sm:$0xff] %vm290_vm0, %v2612_v57  ;;  %v2732_v59 = vld [vmem:[#allocation2 + $0x28] sm:$0xf] }
 0x176   : > { %v2544_v10 = vrot.slane %v1988_v41, 4  ;;  %v2182_v21 = vmax.f32 %v1988_v41, %v2114_v58  ;;  %v2545_v37 = vrot.slane %v5439_v63, 4  ;;  %v1990_v7 = vmax.f32 %v1894_v25, %v1942_v3 }
 0x177   : > { %v1800_v8 = vmax.f32 %v1704_v12, %v5409_v40  ;;  %v2613_v60 = vmax.f32 %v2469_v62, %v2543_v52  ;;  %v2258_v46 = vsel %vm1063_vm4, %v2256_v50, %v2257_v54  ;;  %v1895_v4 = vmax.f32 %v1799_v2, %v1940_v11  ;;  %v5471_v11 = vld [vmem:[#allocation2 + $0x20] sm:$0xff]  ;;  %v5489_v52 = vld [vmem:[#allocation2 + $0x48] sm:$0xff] }
 0x178   : > { %v1705_v20 = vmax.f32 %v1609_v36, %v1657_v33  ;;  %v2326_v18 = vmax.f32 %v2182_v21, %v2258_v46  ;;  %v2115_v49 = vrot.slane %v1990_v7, 1  ;;  %v2259_v23 = vrot.slane %v1990_v7, 2  ;;  %v5498_v33 = vld [vmem:[#allocation2 + $0x50] sm:$0xff]  ;;  %v5500_v62 = vld [vmem:[#allocation2 + $0x60] sm:$0xff]  ;;  %v5504_v46 = vld [vmem:[#allocation2 + $0x68] sm:$0xff] }
 0x179   : > { %v2403_v5 = vrot.slane %v1990_v7, 3  ;;  %2645 = vst.msk [vmem:[%s4858_s28 + $0xd8] sm:$0xff] %vm290_vm0, %v2613_v60  ;;  %v2402_v56 = vsel %vm1208_vm5, %v2400_v22, %v2401_v47  ;;  %v2547_v9 = vrot.slane %v1990_v7, 4  ;;  %v1896_v6 = vmax.f32 %v1800_v8, %v1941_v51  ;;  %v1945_v22 = vld [vmem:[#allocation2 + $0x1d8] sm:$0xf] }
 0x17a   : > { %v5462_v40 = vmax.f32 %v1895_v4, %v1943_v14  ;;  %v2470_v17 = vmax.f32 %v2326_v18, %v2402_v56  ;;  %v2546_v48 = vsel %vm1353_vm6, %v2544_v10, %v2545_v37  ;;  %v2116_v29 = vsel %vm918_vm3, %v2113_v55, %v2115_v49  ;;  %2677 = vst.msk [vmem:[#allocation2 + $0x172] sm:$0xff] %vm290_vm0, %v2613_v60  ;;  %v2828_v21 = vld [vmem:[#allocation2 + $0x40] sm:$0xf] }
 0x17b   : > { %v1801_v26 = vmax.f32 %v1705_v20, %v1753_v13  ;;  %v2183_v38 = vmax.f32 %v5439_v63, %v2116_v29  ;;  %v5468_v34 = vmax.f32 %v1896_v6, %v1944_v1  ;;  %v2778_v31 = vmax.f32 %v2682_v16, %v5457_v30  ;;  %v2684_v63 = vld [vmem:[#allocation2 + $0x10] sm:$0xf]  ;;  %v2924_v13 = vld [vmem:[#allocation2 + $0x58] sm:$0xf] }
 0x17c   : > { %v2117_v53 = vrot.slane %v5462_v40, 1  ;;  %v2614_v42 = vmax.f32 %v2470_v17, %v2546_v48  ;;  %v2260_v41 = vsel %vm1063_vm4, %v2257_v54, %v2259_v23  ;;  %v2404_v45 = vsel %vm1208_vm5, %v2401_v47, %v2403_v5 }
 0x17d   : > { %v2548_v43 = vsel %vm1353_vm6, %v2545_v37, %v2547_v9  ;;  %v2327_v51 = vmax.f32 %v2183_v38, %v2260_v41  ;;  %v2118_v44 = vrot.slane %v5468_v34, 1  ;;  %v2261_v24 = vrot.slane %v5462_v40, 2 }
 0x17e   : > { %v2262_v27 = vrot.slane %v5468_v34, 2  ;;  %2646 = vst.msk [vmem:[%s4858_s28 + $0xe0] sm:$0xff] %vm290_vm0, %v2614_v42  ;;  %v2405_v32 = vrot.slane %v5462_v40, 3  ;;  %v1897_v57 = vmax.f32 %v1801_v26, %v1849_v39  ;;  %v2779_v0 = vmax.f32 %v2683_v35, %v5471_v11 }
 0x17f   : > { %v2874_v61 = vmax.f32 %v2778_v31, %v5474_v28  ;;  %v2471_v55 = vmax.f32 %v2327_v51, %v2404_v45  ;;  %v2119_v50 = vsel %vm918_vm3, %v2117_v53, %v2118_v44  ;;  %v2406_v54 = vrot.slane %v5468_v34, 3  ;;  %2678 = vst.msk [vmem:[#allocation2 + $0x182] sm:$0xff] %vm290_vm0, %v2614_v42  ;;  %v2735_v45 = vld [vmem:[#allocation2 + $0x40] sm:$0xf] }
 0x180   : > { %v2549_v15 = vrot.slane %v5462_v40, 4  ;;  %v2184_v25 = vmax.f32 %v5462_v40, %v2119_v50  ;;  %v2550_v12 = vrot.slane %v5468_v34, 4  ;;  %v1993_v2 = vmax.f32 %v1897_v57, %v1945_v22  ;;  %v2687_v57 = vld [vmem:[#allocation2 + $0x28] sm:$0xf] }
 0x181   : > { %v2875_v36 = vmax.f32 %v2779_v0, %v5482_v19  ;;  %v2615_v58 = vmax.f32 %v2471_v55, %v2548_v43  ;;  %v2263_v47 = vsel %vm1063_vm4, %v2261_v24, %v2262_v27  ;;  %v2970_v10 = vmax.f32 %v2874_v61, %v5489_v52  ;;  %v2831_v55 = vld [vmem:[#allocation2 + $0x58] sm:$0xf] }
 0x182   : > { %v2780_v3 = vmax.f32 %v2684_v63, %v2732_v59  ;;  %v2328_v37 = vmax.f32 %v2184_v25, %v2263_v47  ;;  %v2120_v7 = vrot.slane %v1993_v2, 1  ;;  %v2264_v8 = vrot.slane %v1993_v2, 2  ;;  %v5531_v25 = vld [vmem:[#allocation2 + $0x78] sm:$0xff] }
 0x183   : > { %v2408_v60 = vrot.slane %v1993_v2, 3  ;;  %2647 = vst.msk [vmem:[%s4858_s28 + $0xe8] sm:$0xff] %vm290_vm0, %v2615_v58  ;;  %v2407_v4 = vsel %vm1208_vm5, %v2405_v32, %v2406_v54  ;;  %v2552_v20 = vrot.slane %v1993_v2, 4  ;;  %v2971_v18 = vmax.f32 %v2875_v36, %v5498_v33 }
 0x184   : > { %v3066_v49 = vmax.f32 %v2970_v10, %v5500_v62  ;;  %v2472_v23 = vmax.f32 %v2328_v37, %v2407_v4  ;;  %v2121_v5 = vsel %vm918_vm3, %v2118_v44, %v2120_v7  ;;  %2679 = vst.msk [vmem:[#allocation2 + $0x18a] sm:$0xff] %vm290_vm0, %v2615_v58  ;;  %v2876_v14 = vmax.f32 %v2780_v3, %v2828_v21  ;;  %v5540_v3 = vld [vmem:[#allocation2 + $0x80] sm:$0xff] }
 0x185   : > { %v2781_v16 = vmax.f32 %v5457_v30, %v5474_v28  ;;  %v2551_v56 = vsel %vm1353_vm6, %v2549_v15, %v2550_v12  ;;  %v2185_v9 = vmax.f32 %v5468_v34, %v2121_v5  ;;  %v3067_v6 = vmax.f32 %v2971_v18, %v5504_v46  ;;  %v3020_v30 = vld [vmem:[#allocation2 + $0x70] sm:$0xf] }
 0x186   : > { %v3162_v40 = vrot.slane %v3066_v49, 1  ;;  %v2616_v17 = vmax.f32 %v2472_v23, %v2551_v56  ;;  %v2265_v48 = vsel %vm1063_vm4, %v2262_v27, %v2264_v8  ;;  %v2409_v29 = vsel %vm1208_vm5, %v2406_v54, %v2408_v60 }
 0x187   : > { %v2553_v1 = vsel %vm1353_vm6, %v2550_v12, %v2552_v20  ;;  %v2329_v26 = vmax.f32 %v2185_v9, %v2265_v48  ;;  %v3163_v38 = vrot.slane %v3067_v6, 1  ;;  %v3306_v53 = vrot.slane %v3066_v49, 2  ;;  %v2927_v20 = vld [vmem:[#allocation2 + $0x70] sm:$0xf] }
 0x188   : > { %v3307_v35 = vrot.slane %v3067_v6, 2  ;;  %2648 = vst.msk [vmem:[%s4858_s28 + $0xf0] sm:$0xff] %vm290_vm0, %v2616_v17  ;;  %v3450_v31 = vrot.slane %v3066_v49, 3  ;;  %v2972_v34 = vmax.f32 %v2876_v14, %v2924_v13  ;;  %v2782_v42 = vmax.f32 %v5471_v11, %v5482_v19 }
 0x189   : > { %v2877_v41 = vmax.f32 %v2781_v16, %v5489_v52  ;;  %2680 = vst.msk [vmem:[#allocation2 + $0x19a] sm:$0xff] %vm290_vm0, %v2616_v17  ;;  %v2473_v43 = vmax.f32 %v2329_v26, %v2409_v29  ;;  %v3164_v39 = vsel %vm918_vm3, %v3162_v40, %v3163_v38  ;;  %v3451_v51 = vrot.slane %v3067_v6, 3  ;;  %v2738_v17 = vld [vmem:[#allocation2 + $0x58] sm:$0xf] }
 0x18a   : > { %v3594_v44 = vrot.slane %v3066_v49, 4  ;;  %v3274_v24 = vmax.f32 %v3066_v49, %v3164_v39  ;;  %v3595_v27 = vrot.slane %v3067_v6, 4  ;;  %v3068_v63 = vmax.f32 %v2972_v34, %v3020_v30  ;;  %v2690_v34 = vld [vmem:[#allocation2 + $0x40] sm:$0xf] }
 0x18b   : > { %v2878_v32 = vmax.f32 %v2782_v42, %v5498_v33  ;;  %v2617_v0 = vmax.f32 %v2473_v43, %v2553_v1  ;;  %v3308_v11 = vsel %vm1063_vm4, %v3306_v53, %v3307_v35  ;;  %v2973_v61 = vmax.f32 %v2877_v41, %v5500_v62  ;;  %v2834_v43 = vld [vmem:[#allocation2 + $0x70] sm:$0xf] }
 0x18c   : > { %v2783_v59 = vmax.f32 %v2687_v57, %v2735_v45  ;;  %v3418_v50 = vmax.f32 %v3274_v24, %v3308_v11  ;;  %v3165_v54 = vrot.slane %v3068_v63, 1  ;;  %v3309_v15 = vrot.slane %v3068_v63, 2 }
 0x18d   : > { %v3453_v22 = vrot.slane %v3068_v63, 3  ;;  %2649 = vst.msk [vmem:[%s4858_s28 + $0xf8] sm:$0xff] %vm290_vm0, %v2617_v0  ;;  %v3452_v12 = vsel %vm1208_vm5, %v3450_v31, %v3451_v51  ;;  %v3597_v2 = vrot.slane %v3068_v63, 4  ;;  %v2974_v36 = vmax.f32 %v2878_v32, %v5504_v46 }
 0x18e   : > { %v3069_v58 = vmax.f32 %v2973_v61, %v5531_v25  ;;  %2681 = vst.msk [vmem:[#allocation2 + $0x1a2] sm:$0xff] %vm290_vm0, %v2617_v0  ;;  %v3562_v47 = vmax.f32 %v3418_v50, %v3452_v12  ;;  %v3166_v10 = vsel %vm918_vm3, %v3163_v38, %v3165_v54  ;;  %v2879_v21 = vmax.f32 %v2783_v59, %v2831_v55  ;;  %v3023_v38 = vld [vmem:[#allocation2 + $0x88] sm:$0xf]  ;;  %v5572_v59 = vld [vmem:[#allocation2 + $0x98] sm:$0xff] }
 0x18f   : > { %v2784_v37 = vmax.f32 %v5474_v28, %v5489_v52  ;;  %v3596_v7 = vsel %vm1353_vm6, %v3594_v44, %v3595_v27  ;;  %v3275_v8 = vmax.f32 %v3067_v6, %v3166_v10  ;;  %v3070_v60 = vmax.f32 %v2974_v36, %v5540_v3 }
 0x190   : > { %v3167_v4 = vrot.slane %v3069_v58, 1  ;;  %v3706_v18 = vmax.f32 %v3562_v47, %v3596_v7  ;;  %v3310_v49 = vsel %vm1063_vm4, %v3307_v35, %v3309_v15  ;;  %v3454_v23 = vsel %vm1208_vm5, %v3451_v51, %v3453_v22 }
 0x191   : > { %v3598_v28 = vsel %vm1353_vm6, %v3595_v27, %v3597_v2  ;;  %v3419_v5 = vmax.f32 %v3275_v8, %v3310_v49  ;;  %v3168_v14 = vrot.slane %v3070_v60, 1  ;;  %v3311_v16 = vrot.slane %v3069_v58, 2  ;;  %v5564_v27 = vld [vmem:[#allocation2 + $0x90] sm:$0xff]  ;;  %v2930_v8 = vld [vmem:[#allocation2 + $0x88] sm:$0xf] }
 0x192   : > { %v3312_v56 = vrot.slane %v3070_v60, 2  ;;  %3738 = vst.msk [vmem:[%s5548_s8] sm:$0xff] %vm290_vm0, %v3706_v18  ;;  %v3455_v9 = vrot.slane %v3069_v58, 3  ;;  %v2975_v40 = vmax.f32 %v2879_v21, %v2927_v20  ;;  %v2785_v6 = vmax.f32 %v5482_v19, %v5498_v33  ;;  %v2741_v18 = vld [vmem:[#allocation2 + $0x70] sm:$0xf] }
 0x193   : > { %v2880_v13 = vmax.f32 %v2784_v37, %v5500_v62  ;;  %v3563_v48 = vmax.f32 %v3419_v5, %v3454_v23  ;;  %v3169_v29 = vsel %vm918_vm3, %v3167_v4, %v3168_v14  ;;  %v3456_v1 = vrot.slane %v3070_v60, 3 }
 0x194   : > { %v3599_v26 = vrot.slane %v3069_v58, 4  ;;  %v3276_v53 = vmax.f32 %v3069_v58, %v3169_v29  ;;  %v3600_v35 = vrot.slane %v3070_v60, 4  ;;  %v3071_v30 = vmax.f32 %v2975_v40, %v3023_v38 }
 0x195   : > { %v2881_v31 = vmax.f32 %v2785_v6, %v5504_v46  ;;  %v3707_v42 = vmax.f32 %v3563_v48, %v3598_v28  ;;  %v3313_v41 = vsel %vm1063_vm4, %v3311_v16, %v3312_v56  ;;  %v2976_v19 = vmax.f32 %v2880_v13, %v5531_v25  ;;  %v2693_v6 = vld [vmem:[#allocation2 + $0x58] sm:$0xf] }
 0x196   : > { %v2786_v45 = vmax.f32 %v2690_v34, %v2738_v17  ;;  %v3420_v39 = vmax.f32 %v3276_v53, %v3313_v41  ;;  %v3170_v51 = vrot.slane %v3071_v30, 1  ;;  %v3314_v44 = vrot.slane %v3071_v30, 2  ;;  %v5590_v53 = vld [vmem:[#allocation2 + $0xa8] sm:$0xff] }
 0x197   : > { %v3458_v24 = vrot.slane %v3071_v30, 3  ;;  %3739 = vst.msk [vmem:[%s5548_s8 + $0x8] sm:$0xff] %vm290_vm0, %v3707_v42  ;;  %v3457_v63 = vsel %vm1208_vm5, %v3455_v9, %v3456_v1  ;;  %v3602_v32 = vrot.slane %v3071_v30, 4  ;;  %v2977_v57 = vmax.f32 %v2881_v31, %v5540_v3  ;;  %v2837_v42 = vld [vmem:[#allocation2 + $0x88] sm:$0xf] }
 0x198   : > { %v3072_v0 = vmax.f32 %v2976_v19, %v5564_v27  ;;  %v3564_v11 = vmax.f32 %v3420_v39, %v3457_v63  ;;  %v3171_v61 = vsel %vm918_vm3, %v3168_v14, %v3170_v51  ;;  %v2882_v55 = vmax.f32 %v2786_v45, %v2834_v43  ;;  %v3026_v14 = vld [vmem:[#allocation2 + $0xa0] sm:$0xf]  ;;  %v5598_v45 = vld [vmem:[#allocation2 + $0xb0] sm:$0xff] }
 0x199   : > { %v2787_v50 = vmax.f32 %v5489_v52, %v5500_v62  ;;  %v3601_v54 = vsel %vm1353_vm6, %v3599_v26, %v3600_v35  ;;  %v3277_v15 = vmax.f32 %v3070_v60, %v3171_v61  ;;  %v3073_v22 = vmax.f32 %v2977_v57, %v5572_v59 }
 0x19a   : > { %v3172_v12 = vrot.slane %v3072_v0, 1  ;;  %v3708_v2 = vmax.f32 %v3564_v11, %v3601_v54  ;;  %v3315_v36 = vsel %vm1063_vm4, %v3312_v56, %v3314_v44  ;;  %v3459_v58 = vsel %vm1208_vm5, %v3456_v1, %v3458_v24 }
 0x19b   : > { %v3603_v47 = vsel %vm1353_vm6, %v3600_v35, %v3602_v32  ;;  %v3421_v10 = vmax.f32 %v3277_v15, %v3315_v36  ;;  %v3173_v21 = vrot.slane %v3073_v22, 1  ;;  %v3316_v37 = vrot.slane %v3072_v0, 2  ;;  %v2933_v15 = vld [vmem:[#allocation2 + $0xa0] sm:$0xf]  ;;  %v2696_v36 = vld [vmem:[#allocation2 + $0x70] sm:$0xf] }
 0x19c   : > { %v3317_v7 = vrot.slane %v3073_v22, 2  ;;  %3740 = vst.msk [vmem:[%s5548_s8 + $0x10] sm:$0xff] %vm290_vm0, %v3708_v2  ;;  %v3460_v52 = vrot.slane %v3072_v0, 3  ;;  %v2978_v4 = vmax.f32 %v2882_v55, %v2930_v8  ;;  %v2788_v60 = vmax.f32 %v5498_v33, %v5504_v46 }
 0x19d   : > { %v2883_v20 = vmax.f32 %v2787_v50, %v5531_v25  ;;  %v3565_v49 = vmax.f32 %v3421_v10, %v3459_v58  ;;  %v3174_v23 = vsel %vm918_vm3, %v3172_v12, %v3173_v21  ;;  %v3461_v28 = vrot.slane %v3073_v22, 3  ;;  %v2744_v58 = vld [vmem:[#allocation2 + $0x88] sm:$0xf] }
 0x19e   : > { %v3604_v5 = vrot.slane %v3072_v0, 4  ;;  %v3278_v16 = vmax.f32 %v3072_v0, %v3174_v23  ;;  %v3605_v56 = vrot.slane %v3073_v22, 4  ;;  %v3074_v9 = vmax.f32 %v2978_v4, %v3026_v14 }
 0x19f   : > { %v2884_v40 = vmax.f32 %v2788_v60, %v5540_v3  ;;  %v3709_v13 = vmax.f32 %v3565_v49, %v3603_v47  ;;  %v3318_v17 = vsel %vm1063_vm4, %v3316_v37, %v3317_v7  ;;  %v2979_v33 = vmax.f32 %v2883_v20, %v5564_v27 }
 0x1a0   : > { %v2789_v48 = vmax.f32 %v2693_v6, %v2741_v18  ;;  %v3422_v29 = vmax.f32 %v3278_v16, %v3318_v17  ;;  %v3175_v1 = vrot.slane %v3074_v9, 1  ;;  %v3319_v26 = vrot.slane %v3074_v9, 2  ;;  %v5616_v16 = vld [vmem:[#allocation2 + $0xc0] sm:$0xff] }
 0x1a1   : > { %v3463_v38 = vrot.slane %v3074_v9, 3  ;;  %3741 = vst.msk [vmem:[%s5548_s8 + $0x18] sm:$0xff] %vm290_vm0, %v3709_v13  ;;  %v3462_v35 = vsel %vm1208_vm5, %v3460_v52, %v3461_v28  ;;  %v3607_v30 = vrot.slane %v3074_v9, 4  ;;  %v2980_v31 = vmax.f32 %v2884_v40, %v5572_v59  ;;  %v2840_v13 = vld [vmem:[#allocation2 + $0xa0] sm:$0xf] }
 0x1a2   : > { %v3075_v34 = vmax.f32 %v2979_v33, %v5590_v53  ;;  %v3566_v41 = vmax.f32 %v3422_v29, %v3462_v35  ;;  %v3176_v19 = vsel %vm918_vm3, %v3173_v21, %v3175_v1  ;;  %v2885_v43 = vmax.f32 %v2789_v48, %v2837_v42  ;;  %v5624_v48 = vld [vmem:[#allocation2 + $0xc8] sm:$0xff] }
 0x1a3   : > { %v2790_v39 = vmax.f32 %v5500_v62, %v5531_v25  ;;  %v3606_v51 = vsel %vm1353_vm6, %v3604_v5, %v3605_v56  ;;  %v3279_v44 = vmax.f32 %v3073_v22, %v3176_v19  ;;  %v3076_v24 = vmax.f32 %v2980_v31, %v5598_v45 }
 0x1a4   : > { %v3177_v63 = vrot.slane %v3075_v34, 1  ;;  %v3710_v32 = vmax.f32 %v3566_v41, %v3606_v51  ;;  %v3320_v57 = vsel %vm1063_vm4, %v3317_v7, %v3319_v26  ;;  %v3464_v0 = vsel %vm1208_vm5, %v3461_v28, %v3463_v38  ;;  %v3029_v7 = vld [vmem:[#allocation2 + $0xb8] sm:$0xf] }
 0x1a5   : > { %v3608_v11 = vsel %vm1353_vm6, %v3605_v56, %v3607_v30  ;;  %v3423_v61 = vmax.f32 %v3279_v44, %v3320_v57  ;;  %v3178_v55 = vrot.slane %v3076_v24, 1  ;;  %v3321_v50 = vrot.slane %v3075_v34, 2  ;;  %v2936_v44 = vld [vmem:[#allocation2 + $0xb8] sm:$0xf]  ;;  %v2699_v57 = vld [vmem:[#allocation2 + $0x88] sm:$0xf] }
 0x1a6   : > { %v3322_v54 = vrot.slane %v3076_v24, 2  ;;  %3742 = vst.msk [vmem:[%s5548_s8 + $0x20] sm:$0xff] %vm290_vm0, %v3710_v32  ;;  %v3465_v62 = vrot.slane %v3075_v34, 3  ;;  %v2981_v12 = vmax.f32 %v2885_v43, %v2933_v15  ;;  %v2791_v22 = vmax.f32 %v5504_v46, %v5540_v3 }
 0x1a7   : > { %v2886_v2 = vmax.f32 %v2790_v39, %v5564_v27  ;;  %v3567_v47 = vmax.f32 %v3423_v61, %v3464_v0  ;;  %v3179_v10 = vsel %vm918_vm3, %v3177_v63, %v3178_v55  ;;  %v3466_v21 = vrot.slane %v3076_v24, 3  ;;  %v2747_v0 = vld [vmem:[#allocation2 + $0xa0] sm:$0xf] }
 0x1a8   : > { %v3609_v37 = vrot.slane %v3075_v34, 4  ;;  %v3280_v8 = vmax.f32 %v3075_v34, %v3179_v10  ;;  %v3610_v52 = vrot.slane %v3076_v24, 4  ;;  %v3077_v4 = vmax.f32 %v2981_v12, %v3029_v7  ;;  %v5642_v7 = vld [vmem:[#allocation2 + $0xd8] sm:$0xff] }
 0x1a9   : > { %v2887_v60 = vmax.f32 %v2791_v22, %v5572_v59  ;;  %v3711_v20 = vmax.f32 %v3567_v47, %v3608_v11  ;;  %v3323_v18 = vsel %vm1063_vm4, %v3321_v50, %v3322_v54  ;;  %v2982_v46 = vmax.f32 %v2886_v2, %v5590_v53 }
 0x1aa   : > { %v2792_v49 = vmax.f32 %v2696_v36, %v2744_v58  ;;  %v3424_v23 = vmax.f32 %v3280_v8, %v3323_v18  ;;  %v3180_v28 = vrot.slane %v3077_v4, 1  ;;  %v3324_v5 = vrot.slane %v3077_v4, 2 }
 0x1ab   : > { %v3468_v14 = vrot.slane %v3077_v4, 3  ;;  %3743 = vst.msk [vmem:[%s5548_s8 + $0x28] sm:$0xff] %vm290_vm0, %v3711_v20  ;;  %v3467_v56 = vsel %vm1208_vm5, %v3465_v62, %v3466_v21  ;;  %v3612_v9 = vrot.slane %v3077_v4, 4  ;;  %v2983_v40 = vmax.f32 %v2887_v60, %v5598_v45  ;;  %v2843_v20 = vld [vmem:[#allocation2 + $0xb8] sm:$0xf] }
 0x1ac   : > { %v3078_v6 = vmax.f32 %v2982_v46, %v5616_v16  ;;  %v3568_v17 = vmax.f32 %v3424_v23, %v3467_v56  ;;  %v3181_v33 = vsel %vm918_vm3, %v3178_v55, %v3180_v28  ;;  %v2888_v29 = vmax.f32 %v2792_v49, %v2840_v13  ;;  %v5650_v49 = vld [vmem:[#allocation2 + $0xe0] sm:$0xff] }
 0x1ad   : > { %v2793_v1 = vmax.f32 %v5531_v25, %v5564_v27  ;;  %v3611_v26 = vsel %vm1353_vm6, %v3609_v37, %v3610_v52  ;;  %v3281_v38 = vmax.f32 %v3076_v24, %v3181_v33  ;;  %v3079_v35 = vmax.f32 %v2983_v40, %v5624_v48 }
 0x1ae   : > { %v3182_v30 = vrot.slane %v3078_v6, 1  ;;  %v3712_v31 = vmax.f32 %v3568_v17, %v3611_v26  ;;  %v3325_v34 = vsel %vm1063_vm4, %v3322_v54, %v3324_v5  ;;  %v3469_v42 = vsel %vm1208_vm5, %v3466_v21, %v3468_v14  ;;  %v3032_v54 = vld [vmem:[#allocation2 + $0xd0] sm:$0xf] }
 0x1af   : > { %v3613_v41 = vsel %vm1353_vm6, %v3610_v52, %v3612_v9  ;;  %v3425_v19 = vmax.f32 %v3281_v38, %v3325_v34  ;;  %v3183_v43 = vrot.slane %v3079_v35, 1  ;;  %v3326_v39 = vrot.slane %v3078_v6, 2  ;;  %v2939_v38 = vld [vmem:[#allocation2 + $0xd0] sm:$0xf]  ;;  %v2702_v34 = vld [vmem:[#allocation2 + $0xa0] sm:$0xf] }
 0x1b0   : > { %v3327_v51 = vrot.slane %v3079_v35, 2  ;;  %3744 = vst.msk [vmem:[%s5548_s8 + $0x30] sm:$0xff] %vm290_vm0, %v3712_v31  ;;  %v3470_v25 = vrot.slane %v3078_v6, 3  ;;  %v2984_v63 = vmax.f32 %v2888_v29, %v2936_v44  ;;  %v2794_v24 = vmax.f32 %v5540_v3, %v5572_v59 }
 0x1b1   : > { %v2889_v32 = vmax.f32 %v2793_v1, %v5590_v53  ;;  %v3569_v11 = vmax.f32 %v3425_v19, %v3469_v42  ;;  %v3184_v61 = vsel %vm918_vm3, %v3182_v30, %v3183_v43  ;;  %v3471_v55 = vrot.slane %v3079_v35, 3  ;;  %v2750_v42 = vld [vmem:[#allocation2 + $0xb8] sm:$0xf] }
 0x1b2   : > { %v3614_v50 = vrot.slane %v3078_v6, 4  ;;  %v3282_v15 = vmax.f32 %v3078_v6, %v3184_v61  ;;  %v3615_v62 = vrot.slane %v3079_v35, 4  ;;  %v3080_v12 = vmax.f32 %v2984_v63, %v3032_v54  ;;  %v5668_v54 = vld [vmem:[#allocation2 + $0xf0] sm:$0xff] }
 0x1b3   : > { %v2890_v22 = vmax.f32 %v2794_v24, %v5598_v45  ;;  %v3713_v2 = vmax.f32 %v3569_v11, %v3613_v41  ;;  %v3328_v36 = vsel %vm1063_vm4, %v3326_v39, %v3327_v51  ;;  %v2985_v3 = vmax.f32 %v2889_v32, %v5616_v16 }
 0x1b4   : > { %v2795_v58 = vmax.f32 %v2699_v57, %v2747_v0  ;;  %v3426_v47 = vmax.f32 %v3282_v15, %v3328_v36  ;;  %v3185_v10 = vrot.slane %v3080_v12, 1  ;;  %v3329_v21 = vrot.slane %v3080_v12, 2 }
 0x1b5   : > { %v3473_v37 = vrot.slane %v3080_v12, 3  ;;  %3745 = vst.msk [vmem:[%s5548_s8 + $0x38] sm:$0xff] %vm290_vm0, %v3713_v2  ;;  %v3472_v8 = vsel %vm1208_vm5, %v3470_v25, %v3471_v55  ;;  %v3617_v52 = vrot.slane %v3080_v12, 4  ;;  %v2986_v4 = vmax.f32 %v2890_v22, %v5624_v48  ;;  %v2846_v2 = vld [vmem:[#allocation2 + $0xd0] sm:$0xf] }
 0x1b6   : > { %v3081_v60 = vmax.f32 %v2985_v3, %v5642_v7  ;;  %v3570_v18 = vmax.f32 %v3426_v47, %v3472_v8  ;;  %v3186_v46 = vsel %vm918_vm3, %v3183_v43, %v3185_v10  ;;  %v2891_v23 = vmax.f32 %v2795_v58, %v2843_v20  ;;  %v5676_v58 = vld [vmem:[#allocation2 + $0xf8] sm:$0xff] }
 0x1b7   : > { %v2796_v28 = vmax.f32 %v5564_v27, %v5590_v53  ;;  %v3616_v5 = vsel %vm1353_vm6, %v3614_v50, %v3615_v62  ;;  %v3283_v14 = vmax.f32 %v3079_v35, %v3186_v46  ;;  %v3082_v56 = vmax.f32 %v2986_v4, %v5650_v49 }
 0x1b8   : > { %v3187_v9 = vrot.slane %v3081_v60, 1  ;;  %v3714_v40 = vmax.f32 %v3570_v18, %v3616_v5  ;;  %v3330_v6 = vsel %vm1063_vm4, %v3327_v51, %v3329_v21  ;;  %v3474_v13 = vsel %vm1208_vm5, %v3471_v55, %v3473_v37  ;;  %v3035_v51 = vld [vmem:[#allocation2 + $0xe8] sm:$0xf] }
 0x1b9   : > { %v3618_v17 = vsel %vm1353_vm6, %v3615_v62, %v3617_v52  ;;  %v3427_v33 = vmax.f32 %v3283_v14, %v3330_v6  ;;  %v3188_v29 = vrot.slane %v3082_v56, 1  ;;  %v3331_v1 = vrot.slane %v3081_v60, 2  ;;  %v2942_v14 = vld [vmem:[#allocation2 + $0xe8] sm:$0xf]  ;;  %v2705_v6 = vld [vmem:[#allocation2 + $0xb8] sm:$0xf] }
 0x1ba   : > { %v3332_v26 = vrot.slane %v3082_v56, 2  ;;  %3746 = vst.msk [vmem:[%s5548_s8 + $0x40] sm:$0xff] %vm290_vm0, %v3714_v40  ;;  %v3475_v27 = vrot.slane %v3081_v60, 3  ;;  %v2987_v30 = vmax.f32 %v2891_v23, %v2939_v38  ;;  %v2797_v35 = vmax.f32 %v5572_v59, %v5598_v45 }
 0x1bb   : > { %v2892_v31 = vmax.f32 %v2796_v28, %v5616_v16  ;;  %v3571_v41 = vmax.f32 %v3427_v33, %v3474_v13  ;;  %v3189_v19 = vsel %vm918_vm3, %v3187_v9, %v3188_v29  ;;  %v3476_v43 = vrot.slane %v3082_v56, 3  ;;  %v2753_v13 = vld [vmem:[#allocation2 + $0xd0] sm:$0xf] }
 0x1bc   : > { %v3619_v39 = vrot.slane %v3081_v60, 4  ;;  %v3284_v44 = vmax.f32 %v3081_v60, %v3189_v19  ;;  %v3620_v25 = vrot.slane %v3082_v56, 4  ;;  %v3083_v63 = vmax.f32 %v2987_v30, %v3035_v51  ;;  %v5694_v51 = vld [vmem:[#allocation2 + $0x108] sm:$0xff] }
 0x1bd   : > { %v2893_v24 = vmax.f32 %v2797_v35, %v5624_v48  ;;  %v3715_v32 = vmax.f32 %v3571_v41, %v3618_v17  ;;  %v3333_v57 = vsel %vm1063_vm4, %v3331_v1, %v3332_v26  ;;  %v2988_v59 = vmax.f32 %v2892_v31, %v5642_v7 }
 0x1be   : > { %v2798_v0 = vmax.f32 %v2702_v34, %v2750_v42  ;;  %v3428_v11 = vmax.f32 %v3284_v44, %v3333_v57  ;;  %v3190_v61 = vrot.slane %v3083_v63, 1  ;;  %v3334_v55 = vrot.slane %v3083_v63, 2 }
 0x1bf   : > { %v3478_v50 = vrot.slane %v3083_v63, 3  ;;  %3747 = vst.msk [vmem:[%s5548_s8 + $0x48] sm:$0xff] %vm290_vm0, %v3715_v32  ;;  %v3477_v15 = vsel %vm1208_vm5, %v3475_v27, %v3476_v43  ;;  %v3622_v62 = vrot.slane %v3083_v63, 4  ;;  %v2989_v12 = vmax.f32 %v2893_v24, %v5650_v49  ;;  %v2849_v32 = vld [vmem:[#allocation2 + $0xe8] sm:$0xf] }
 0x1c0   : > { %v3084_v22 = vmax.f32 %v2988_v59, %v5668_v54  ;;  %v3572_v36 = vmax.f32 %v3428_v11, %v3477_v15  ;;  %v3191_v3 = vsel %vm918_vm3, %v3188_v29, %v3190_v61  ;;  %v2894_v47 = vmax.f32 %v2798_v0, %v2846_v2  ;;  %v5702_v0 = vld [vmem:[#allocation2 + $0x110] sm:$0xff] }
 0x1c1   : > { %v2799_v10 = vmax.f32 %v5590_v53, %v5616_v16  ;;  %v3621_v21 = vsel %vm1353_vm6, %v3619_v39, %v3620_v25  ;;  %v3285_v37 = vmax.f32 %v3082_v56, %v3191_v3  ;;  %v3085_v8 = vmax.f32 %v2989_v12, %v5676_v58 }
 0x1c2   : > { %v3192_v52 = vrot.slane %v3084_v22, 1  ;;  %v3716_v4 = vmax.f32 %v3572_v36, %v3621_v21  ;;  %v3335_v60 = vsel %vm1063_vm4, %v3332_v26, %v3334_v55  ;;  %v3479_v20 = vsel %vm1208_vm5, %v3476_v43, %v3478_v50  ;;  %v3038_v26 = vld [vmem:[#allocation2 + $0x100] sm:$0xf] }
 0x1c3   : > { %v3623_v18 = vsel %vm1353_vm6, %v3620_v25, %v3622_v62  ;;  %v3429_v46 = vmax.f32 %v3285_v37, %v3335_v60  ;;  %v3193_v23 = vrot.slane %v3085_v8, 1  ;;  %v3336_v28 = vrot.slane %v3084_v22, 2  ;;  %v2945_v37 = vld [vmem:[#allocation2 + $0x100] sm:$0xf]  ;;  %v2708_v60 = vld [vmem:[#allocation2 + $0xd0] sm:$0xf] }
 0x1c4   : > { %v3337_v5 = vrot.slane %v3085_v8, 2  ;;  %3748 = vst.msk [vmem:[%s5548_s8 + $0x50] sm:$0xff] %vm290_vm0, %v3716_v4  ;;  %v3480_v53 = vrot.slane %v3084_v22, 3  ;;  %v2990_v9 = vmax.f32 %v2894_v47, %v2942_v14  ;;  %v2800_v56 = vmax.f32 %v5598_v45, %v5624_v48 }
 0x1c5   : > { %v2895_v40 = vmax.f32 %v2799_v10, %v5642_v7  ;;  %v3573_v17 = vmax.f32 %v3429_v46, %v3479_v20  ;;  %v3194_v33 = vsel %vm918_vm3, %v3192_v52, %v3193_v23  ;;  %v3481_v29 = vrot.slane %v3085_v8, 3  ;;  %v2756_v20 = vld [vmem:[#allocation2 + $0xe8] sm:$0xf] }
 0x1c6   : > { %v3624_v1 = vrot.slane %v3084_v22, 4  ;;  %v3286_v38 = vmax.f32 %v3084_v22, %v3194_v33  ;;  %v3625_v27 = vrot.slane %v3085_v8, 4  ;;  %v3086_v30 = vmax.f32 %v2990_v9, %v3038_v26  ;;  %v5720_v26 = vld [vmem:[#allocation2 + $0x120] sm:$0xff] }
 0x1c7   : > { %v2896_v35 = vmax.f32 %v2800_v56, %v5650_v49  ;;  %v3717_v31 = vmax.f32 %v3573_v17, %v3623_v18  ;;  %v3338_v34 = vsel %vm1063_vm4, %v3336_v28, %v3337_v5  ;;  %v2991_v45 = vmax.f32 %v2895_v40, %v5668_v54 }
 0x1c8   : > { %v2801_v42 = vmax.f32 %v2705_v6, %v2753_v13  ;;  %v3430_v41 = vmax.f32 %v3286_v38, %v3338_v34  ;;  %v3195_v19 = vrot.slane %v3086_v30, 1  ;;  %v3339_v43 = vrot.slane %v3086_v30, 2 }
 0x1c9   : > { %v3483_v39 = vrot.slane %v3086_v30, 3  ;;  %3749 = vst.msk [vmem:[%s5548_s8 + $0x58] sm:$0xff] %vm290_vm0, %v3717_v31  ;;  %v3482_v44 = vsel %vm1208_vm5, %v3480_v53, %v3481_v29  ;;  %v3627_v25 = vrot.slane %v3086_v30, 4  ;;  %v2992_v63 = vmax.f32 %v2896_v35, %v5676_v58  ;;  %v2852_v31 = vld [vmem:[#allocation2 + $0x100] sm:$0xf] }
 0x1ca   : > { %v3087_v24 = vmax.f32 %v2991_v45, %v5694_v51  ;;  %v3574_v57 = vmax.f32 %v3430_v41, %v3482_v44  ;;  %v3196_v59 = vsel %vm918_vm3, %v3193_v23, %v3195_v19  ;;  %v2897_v11 = vmax.f32 %v2801_v42, %v2849_v32  ;;  %v5728_v42 = vld [vmem:[#allocation2 + $0x128] sm:$0xff] }
 0x1cb   : > { %v2802_v61 = vmax.f32 %v5616_v16, %v5642_v7  ;;  %v3626_v55 = vsel %vm1353_vm6, %v3624_v1, %v3625_v27  ;;  %v3287_v50 = vmax.f32 %v3085_v8, %v3196_v59  ;;  %v3088_v15 = vmax.f32 %v2992_v63, %v5702_v0 }
 0x1cc   : > { %v3197_v62 = vrot.slane %v3087_v24, 1  ;;  %v3718_v12 = vmax.f32 %v3574_v57, %v3626_v55  ;;  %v3340_v22 = vsel %vm1063_vm4, %v3337_v5, %v3339_v43  ;;  %v3484_v2 = vsel %vm1208_vm5, %v3481_v29, %v3483_v39  ;;  %v3041_v5 = vld [vmem:[#allocation2 + $0x118] sm:$0xf] }
 0x1cd   : > { %v3628_v36 = vsel %vm1353_vm6, %v3625_v27, %v3627_v25  ;;  %v3431_v3 = vmax.f32 %v3287_v50, %v3340_v22  ;;  %v3198_v47 = vrot.slane %v3088_v15, 1  ;;  %v3341_v10 = vrot.slane %v3087_v24, 2  ;;  %v2948_v50 = vld [vmem:[#allocation2 + $0x118] sm:$0xf]  ;;  %v2711_v22 = vld [vmem:[#allocation2 + $0xe8] sm:$0xf] }
 0x1ce   : > { %v3342_v21 = vrot.slane %v3088_v15, 2  ;;  %3750 = vst.msk [vmem:[%s5548_s8 + $0x60] sm:$0xff] %vm290_vm0, %v3718_v12  ;;  %v3485_v16 = vrot.slane %v3087_v24, 3  ;;  %v2993_v52 = vmax.f32 %v2897_v11, %v2945_v37  ;;  %v2803_v8 = vmax.f32 %v5624_v48, %v5650_v49 }
 0x1cf   : > { %v2898_v4 = vmax.f32 %v2802_v61, %v5668_v54  ;;  %v3575_v18 = vmax.f32 %v3431_v3, %v3484_v2  ;;  %v3199_v46 = vsel %vm918_vm3, %v3197_v62, %v3198_v47  ;;  %v3486_v23 = vrot.slane %v3088_v15, 3  ;;  %v2759_v2 = vld [vmem:[#allocation2 + $0x100] sm:$0xf] }
 0x1d0   : > { %v3629_v28 = vrot.slane %v3087_v24, 4  ;;  %v3288_v14 = vmax.f32 %v3087_v24, %v3199_v46  ;;  %v3630_v53 = vrot.slane %v3088_v15, 4  ;;  %v3089_v9 = vmax.f32 %v2993_v52, %v3041_v5  ;;  %v5746_v5 = vld [vmem:[#allocation2 + $0x138] sm:$0xff] }
 0x1d1   : > { %v2899_v56 = vmax.f32 %v2803_v8, %v5676_v58  ;;  %v3719_v40 = vmax.f32 %v3575_v18, %v3628_v36  ;;  %v3343_v6 = vsel %vm1063_vm4, %v3341_v10, %v3342_v21  ;;  %v2994_v48 = vmax.f32 %v2898_v4, %v5694_v51 }
 0x1d2   : > { %v2804_v13 = vmax.f32 %v2708_v60, %v2756_v20  ;;  %v3432_v17 = vmax.f32 %v3288_v14, %v3343_v6  ;;  %v3200_v33 = vrot.slane %v3089_v9, 1  ;;  %v3344_v29 = vrot.slane %v3089_v9, 2 }
 0x1d3   : > { %v3488_v1 = vrot.slane %v3089_v9, 3  ;;  %3751 = vst.msk [vmem:[%s5548_s8 + $0x68] sm:$0xff] %vm290_vm0, %v3719_v40  ;;  %v3487_v38 = vsel %vm1208_vm5, %v3485_v16, %v3486_v23  ;;  %v3632_v27 = vrot.slane %v3089_v9, 4  ;;  %v2995_v30 = vmax.f32 %v2899_v56, %v5702_v0  ;;  %v2855_v40 = vld [vmem:[#allocation2 + $0x118] sm:$0xf] }
 0x1d4   : > { %v3090_v35 = vmax.f32 %v2994_v48, %v5720_v26  ;;  %v3576_v34 = vmax.f32 %v3432_v17, %v3487_v38  ;;  %v3201_v45 = vsel %vm918_vm3, %v3198_v47, %v3200_v33  ;;  %v2900_v41 = vmax.f32 %v2804_v13, %v2852_v31  ;;  %v5754_v13 = vld [vmem:[#allocation2 + $0x140] sm:$0xff] }
 0x1d5   : > { %v2805_v19 = vmax.f32 %v5642_v7, %v5668_v54  ;;  %v3631_v43 = vsel %vm1353_vm6, %v3629_v28, %v3630_v53  ;;  %v3289_v39 = vmax.f32 %v3088_v15, %v3201_v45  ;;  %v3091_v44 = vmax.f32 %v2995_v30, %v5728_v42 }
 0x1d6   : > { %v3202_v25 = vrot.slane %v3090_v35, 1  ;;  %v3720_v63 = vmax.f32 %v3576_v34, %v3631_v43  ;;  %v3345_v24 = vsel %vm1063_vm4, %v3342_v21, %v3344_v29  ;;  %v3489_v32 = vsel %vm1208_vm5, %v3486_v23, %v3488_v1  ;;  %v3044_v21 = vld [vmem:[#allocation2 + $0x130] sm:$0xf] }
 0x1d7   : > { %v3633_v57 = vsel %vm1353_vm6, %v3630_v53, %v3632_v27  ;;  %v3433_v59 = vmax.f32 %v3289_v39, %v3345_v24  ;;  %v3203_v11 = vrot.slane %v3091_v44, 1  ;;  %v3346_v61 = vrot.slane %v3090_v35, 2  ;;  %v2951_v39 = vld [vmem:[#allocation2 + $0x130] sm:$0xf]  ;;  %v2714_v24 = vld [vmem:[#allocation2 + $0x100] sm:$0xf] }
 0x1d8   : > { %v3347_v55 = vrot.slane %v3091_v44, 2  ;;  %3752 = vst.msk [vmem:[%s5548_s8 + $0x70] sm:$0xff] %vm290_vm0, %v3720_v63  ;;  %v3490_v7 = vrot.slane %v3090_v35, 3  ;;  %v2996_v62 = vmax.f32 %v2900_v41, %v2948_v50  ;;  %v2806_v15 = vmax.f32 %v5650_v49, %v5676_v58 }
 0x1d9   : > { %v2901_v12 = vmax.f32 %v2805_v19, %v5694_v51  ;;  %v3577_v36 = vmax.f32 %v3433_v59, %v3489_v32  ;;  %v3204_v3 = vsel %vm918_vm3, %v3202_v25, %v3203_v11  ;;  %v3491_v47 = vrot.slane %v3091_v44, 3  ;;  %v2762_v32 = vld [vmem:[#allocation2 + $0x118] sm:$0xf] }
 0x1da   : > { %v3634_v10 = vrot.slane %v3090_v35, 4  ;;  %v3290_v37 = vmax.f32 %v3090_v35, %v3204_v3  ;;  %v3635_v16 = vrot.slane %v3091_v44, 4  ;;  %v3092_v52 = vmax.f32 %v2996_v62, %v3044_v21  ;;  %v5772_v21 = vld [vmem:[#allocation2 + $0x150] sm:$0xff] }
 0x1db   : > { %v2902_v8 = vmax.f32 %v2806_v15, %v5702_v0  ;;  %v3721_v4 = vmax.f32 %v3577_v36, %v3633_v57  ;;  %v3348_v60 = vsel %vm1063_vm4, %v3346_v61, %v3347_v55  ;;  %v2997_v49 = vmax.f32 %v2901_v12, %v5720_v26 }
 0x1dc   : > { %v2807_v20 = vmax.f32 %v2711_v22, %v2759_v2  ;;  %v3434_v18 = vmax.f32 %v3290_v37, %v3348_v60  ;;  %v3205_v46 = vrot.slane %v3092_v52, 1  ;;  %v3349_v23 = vrot.slane %v3092_v52, 2 }
 0x1dd   : > { %v3493_v28 = vrot.slane %v3092_v52, 3  ;;  %3753 = vst.msk [vmem:[%s5548_s8 + $0x78] sm:$0xff] %vm290_vm0, %v3721_v4  ;;  %v3492_v14 = vsel %vm1208_vm5, %v3490_v7, %v3491_v47  ;;  %v3637_v53 = vrot.slane %v3092_v52, 4  ;;  %v2998_v9 = vmax.f32 %v2902_v8, %v5728_v42  ;;  %v2858_v4 = vld [vmem:[#allocation2 + $0x130] sm:$0xf] }
 0x1de   : > { %v3093_v56 = vmax.f32 %v2997_v49, %v5746_v5  ;;  %v3578_v6 = vmax.f32 %v3434_v18, %v3492_v14  ;;  %v3206_v48 = vsel %vm918_vm3, %v3203_v11, %v3205_v46  ;;  %v2903_v17 = vmax.f32 %v2807_v20, %v2855_v40  ;;  %v5780_v20 = vld [vmem:[#allocation2 + $0x158] sm:$0xff] }
 0x1df   : > { %v2808_v33 = vmax.f32 %v5668_v54, %v5694_v51  ;;  %v3636_v29 = vsel %vm1353_vm6, %v3634_v10, %v3635_v16  ;;  %v3291_v1 = vmax.f32 %v3091_v44, %v3206_v48  ;;  %v3094_v38 = vmax.f32 %v2998_v9, %v5754_v13 }
 0x1e0   : > { %v3207_v27 = vrot.slane %v3093_v56, 1  ;;  %v3722_v30 = vmax.f32 %v3578_v6, %v3636_v29  ;;  %v3350_v35 = vsel %vm1063_vm4, %v3347_v55, %v3349_v23  ;;  %v3494_v31 = vsel %vm1208_vm5, %v3491_v47, %v3493_v28  ;;  %v3047_v55 = vld [vmem:[#allocation2 + $0x148] sm:$0xf] }
 0x1e1   : > { %v3638_v34 = vsel %vm1353_vm6, %v3635_v16, %v3637_v53  ;;  %v3435_v45 = vmax.f32 %v3291_v1, %v3350_v35  ;;  %v3208_v41 = vrot.slane %v3094_v38, 1  ;;  %v3351_v19 = vrot.slane %v3093_v56, 2  ;;  %v2954_v1 = vld [vmem:[#allocation2 + $0x148] sm:$0xf]  ;;  %v2717_v35 = vld [vmem:[#allocation2 + $0x118] sm:$0xf] }
 0x1e2   : > { %v3352_v43 = vrot.slane %v3094_v38, 2  ;;  %3754 = vst.msk [vmem:[%s5548_s8 + $0x80] sm:$0xff] %vm290_vm0, %v3722_v30  ;;  %v3495_v54 = vrot.slane %v3093_v56, 3  ;;  %v2999_v25 = vmax.f32 %v2903_v17, %v2951_v39  ;;  %v2809_v44 = vmax.f32 %v5676_v58, %v5702_v0 }
 0x1e3   : > { %v2904_v63 = vmax.f32 %v2808_v33, %v5720_v26  ;;  %v3579_v57 = vmax.f32 %v3435_v45, %v3494_v31  ;;  %v3209_v59 = vsel %vm918_vm3, %v3207_v27, %v3208_v41  ;;  %v3496_v11 = vrot.slane %v3094_v38, 3  ;;  %v2765_v31 = vld [vmem:[#allocation2 + $0x130] sm:$0xf] }
 0x1e4   : > { %v3639_v61 = vrot.slane %v3093_v56, 4  ;;  %v3292_v50 = vmax.f32 %v3093_v56, %v3209_v59  ;;  %v3640_v7 = vrot.slane %v3094_v38, 4  ;;  %v3095_v62 = vmax.f32 %v2999_v25, %v3047_v55  ;;  %v5798_v55 = vld [vmem:[#allocation2 + $0x168] sm:$0xff] }
 0x1e5   : > { %v2905_v15 = vmax.f32 %v2809_v44, %v5728_v42  ;;  %v3723_v12 = vmax.f32 %v3579_v57, %v3638_v34  ;;  %v3353_v22 = vsel %vm1063_vm4, %v3351_v19, %v3352_v43  ;;  %v3000_v58 = vmax.f32 %v2904_v63, %v5746_v5 }
 0x1e6   : > { %v2810_v2 = vmax.f32 %v2714_v24, %v2762_v32  ;;  %v3436_v36 = vmax.f32 %v3292_v50, %v3353_v22  ;;  %v3210_v3 = vrot.slane %v3095_v62, 1  ;;  %v3354_v47 = vrot.slane %v3095_v62, 2 }
 0x1e7   : > { %v3498_v10 = vrot.slane %v3095_v62, 3  ;;  %3755 = vst.msk [vmem:[%s5548_s8 + $0x88] sm:$0xff] %vm290_vm0, %v3723_v12  ;;  %v3497_v37 = vsel %vm1208_vm5, %v3495_v54, %v3496_v11  ;;  %v3642_v16 = vrot.slane %v3095_v62, 4  ;;  %v3001_v52 = vmax.f32 %v2905_v15, %v5754_v13  ;;  %v2861_v12 = vld [vmem:[#allocation2 + $0x148] sm:$0xf] }
 0x1e8   : > { %v3096_v8 = vmax.f32 %v3000_v58, %v5772_v21  ;;  %v3580_v60 = vmax.f32 %v3436_v36, %v3497_v37  ;;  %v3211_v49 = vsel %vm918_vm3, %v3208_v41, %v3210_v3  ;;  %v2906_v18 = vmax.f32 %v2810_v2, %v2858_v4  ;;  %v5806_v2 = vld [vmem:[#allocation2 + $0x170] sm:$0xff] }
 0x1e9   : > { %v2811_v46 = vmax.f32 %v5694_v51, %v5720_v26  ;;  %v3641_v23 = vsel %vm1353_vm6, %v3639_v61, %v3640_v7  ;;  %v3293_v28 = vmax.f32 %v3094_v38, %v3211_v49  ;;  %v3097_v14 = vmax.f32 %v3001_v52, %v5780_v20 }
 0x1ea   : > { %v3212_v53 = vrot.slane %v3096_v8, 1  ;;  %v3724_v9 = vmax.f32 %v3580_v60, %v3641_v23  ;;  %v3355_v56 = vsel %vm1063_vm4, %v3352_v43, %v3354_v47  ;;  %v3499_v40 = vsel %vm1208_vm5, %v3496_v11, %v3498_v10  ;;  %v3050_v43 = vld [vmem:[#allocation2 + $0x160] sm:$0xf] }
 0x1eb   : > { %v3643_v6 = vsel %vm1353_vm6, %v3640_v7, %v3642_v16  ;;  %v3437_v48 = vmax.f32 %v3293_v28, %v3355_v56  ;;  %v3213_v17 = vrot.slane %v3097_v14, 1  ;;  %v3356_v33 = vrot.slane %v3096_v8, 2  ;;  %v2957_v28 = vld [vmem:[#allocation2 + $0x160] sm:$0xf]  ;;  %v2720_v56 = vld [vmem:[#allocation2 + $0x130] sm:$0xf] }
 0x1ec   : > { %v3357_v29 = vrot.slane %v3097_v14, 2  ;;  %3756 = vst.msk [vmem:[%s5548_s8 + $0x90] sm:$0xff] %vm290_vm0, %v3724_v9  ;;  %v3500_v51 = vrot.slane %v3096_v8, 3  ;;  %v3002_v27 = vmax.f32 %v2906_v18, %v2954_v1  ;;  %v2812_v38 = vmax.f32 %v5702_v0, %v5728_v42 }
 0x1ed   : > { %v2907_v30 = vmax.f32 %v2811_v46, %v5746_v5  ;;  %v3581_v34 = vmax.f32 %v3437_v48, %v3499_v40  ;;  %v3214_v45 = vsel %vm918_vm3, %v3212_v53, %v3213_v17  ;;  %v3501_v41 = vrot.slane %v3097_v14, 3  ;;  %v2768_v40 = vld [vmem:[#allocation2 + $0x148] sm:$0xf] }
 0x1ee   : > { %v3644_v19 = vrot.slane %v3096_v8, 4  ;;  %v3294_v39 = vmax.f32 %v3096_v8, %v3214_v45  ;;  %v3645_v54 = vrot.slane %v3097_v14, 4  ;;  %v3098_v25 = vmax.f32 %v3002_v27, %v3050_v43  ;;  %v5824_v43 = vld [vmem:[#allocation2 + $0x180] sm:$0xff] }
 0x1ef   : > { %v2908_v44 = vmax.f32 %v2812_v38, %v5754_v13  ;;  %v3725_v63 = vmax.f32 %v3581_v34, %v3643_v6  ;;  %v3358_v24 = vsel %vm1063_vm4, %v3356_v33, %v3357_v29  ;;  %v3003_v0 = vmax.f32 %v2907_v30, %v5772_v21 }
 0x1f0   : > { %v2813_v32 = vmax.f32 %v2717_v35, %v2765_v31  ;;  %v3438_v57 = vmax.f32 %v3294_v39, %v3358_v24  ;;  %v3215_v59 = vrot.slane %v3098_v25, 1  ;;  %v3359_v11 = vrot.slane %v3098_v25, 2 }
 0x1f1   : > { %v3503_v61 = vrot.slane %v3098_v25, 3  ;;  %3757 = vst.msk [vmem:[%s5548_s8 + $0x98] sm:$0xff] %vm290_vm0, %v3725_v63  ;;  %v3502_v50 = vsel %vm1208_vm5, %v3500_v51, %v3501_v41  ;;  %v3647_v7 = vrot.slane %v3098_v25, 4  ;;  %v3004_v62 = vmax.f32 %v2908_v44, %v5780_v20  ;;  %v2864_v63 = vld [vmem:[#allocation2 + $0x160] sm:$0xf] }
 0x1f2   : > { %v3099_v15 = vmax.f32 %v3003_v0, %v5798_v55  ;;  %v3582_v22 = vmax.f32 %v3438_v57, %v3502_v50  ;;  %v3216_v58 = vsel %vm918_vm3, %v3213_v17, %v3215_v59  ;;  %v2909_v36 = vmax.f32 %v2813_v32, %v2861_v12  ;;  %v5832_v32 = vld [vmem:[#allocation2 + $0x188] sm:$0xff] }
 0x1f3   : > { %v2814_v3 = vmax.f32 %v5720_v26, %v5746_v5  ;;  %v3646_v47 = vsel %vm1353_vm6, %v3644_v19, %v3645_v54  ;;  %v3295_v10 = vmax.f32 %v3097_v14, %v3216_v58  ;;  %v3100_v37 = vmax.f32 %v3004_v62, %v5806_v2 }
 0x1f4   : > { %v3217_v16 = vrot.slane %v3099_v15, 1  ;;  %v3726_v52 = vmax.f32 %v3582_v22, %v3646_v47  ;;  %v3360_v8 = vsel %vm1063_vm4, %v3357_v29, %v3359_v11  ;;  %v3504_v4 = vsel %vm1208_vm5, %v3501_v41, %v3503_v61  ;;  %v3053_v29 = vld [vmem:[#allocation2 + $0x178] sm:$0xf] }
 0x1f5   : > { %v3648_v60 = vsel %vm1353_vm6, %v3645_v54, %v3647_v7  ;;  %v3439_v49 = vmax.f32 %v3295_v10, %v3360_v8  ;;  %v3218_v18 = vrot.slane %v3100_v37, 1  ;;  %v3361_v46 = vrot.slane %v3099_v15, 2  ;;  %v2960_v10 = vld [vmem:[#allocation2 + $0x178] sm:$0xf]  ;;  %v2723_v8 = vld [vmem:[#allocation2 + $0x148] sm:$0xf] }
 0x1f6   : > { %v3362_v23 = vrot.slane %v3100_v37, 2  ;;  %3758 = vst.msk [vmem:[%s5548_s8 + $0xa0] sm:$0xff] %vm290_vm0, %v3726_v52  ;;  %v3505_v26 = vrot.slane %v3099_v15, 3  ;;  %v3005_v53 = vmax.f32 %v2909_v36, %v2957_v28  ;;  %v2815_v14 = vmax.f32 %v5728_v42, %v5754_v13 }
 0x1f7   : > { %v2910_v9 = vmax.f32 %v2814_v3, %v5772_v21  ;;  %v3583_v6 = vmax.f32 %v3439_v49, %v3504_v4  ;;  %v3219_v48 = vsel %vm918_vm3, %v3217_v16, %v3218_v18  ;;  %v3506_v17 = vrot.slane %v3100_v37, 3  ;;  %v2771_v4 = vld [vmem:[#allocation2 + $0x160] sm:$0xf] }
 0x1f8   : > { %v3649_v33 = vrot.slane %v3099_v15, 4  ;;  %v3296_v1 = vmax.f32 %v3099_v15, %v3219_v48  ;;  %v3650_v51 = vrot.slane %v3100_v37, 4  ;;  %v3101_v27 = vmax.f32 %v3005_v53, %v3053_v29  ;;  %v5850_v29 = vld [vmem:[#allocation2 + $0x198] sm:$0xff] }
 0x1f9   : > { %v2911_v38 = vmax.f32 %v2815_v14, %v5780_v20  ;;  %v3727_v30 = vmax.f32 %v3583_v6, %v3648_v60  ;;  %v3363_v35 = vsel %vm1063_vm4, %v3361_v46, %v3362_v23  ;;  %v3006_v42 = vmax.f32 %v2910_v9, %v5798_v55 }
 0x1fa   : > { %v2816_v31 = vmax.f32 %v2720_v56, %v2768_v40  ;;  %v3440_v34 = vmax.f32 %v3296_v1, %v3363_v35  ;;  %v3220_v45 = vrot.slane %v3101_v27, 1  ;;  %v3364_v41 = vrot.slane %v3101_v27, 2 }
 0x1fb   : > { %v3508_v19 = vrot.slane %v3101_v27, 3  ;;  %3759 = vst.msk [vmem:[%s5548_s8 + $0xa8] sm:$0xff] %vm290_vm0, %v3727_v30  ;;  %v3507_v39 = vsel %vm1208_vm5, %v3505_v26, %v3506_v17  ;;  %v3652_v54 = vrot.slane %v3101_v27, 4  ;;  %v3007_v25 = vmax.f32 %v2911_v38, %v5806_v2  ;;  %v2867_v30 = vld [vmem:[#allocation2 + $0x178] sm:$0xf] }
 0x1fc   : > { %v3102_v44 = vmax.f32 %v3006_v42, %v5824_v43  ;;  %v3584_v24 = vmax.f32 %v3440_v34, %v3507_v39  ;;  %v3221_v0 = vsel %vm918_vm3, %v3218_v18, %v3220_v45  ;;  %v2912_v57 = vmax.f32 %v2816_v31, %v2864_v63  ;;  %v5858_v31 = vld [vmem:[#allocation2 + $0x1a0] sm:$0xff] }
 0x1fd   : > { %v2817_v59 = vmax.f32 %v5746_v5, %v5772_v21  ;;  %v3651_v11 = vsel %vm1353_vm6, %v3649_v33, %v3650_v51  ;;  %v3297_v61 = vmax.f32 %v3100_v37, %v3221_v0  ;;  %v3103_v50 = vmax.f32 %v3007_v25, %v5832_v32 }
 0x1fe   : > { %v3222_v7 = vrot.slane %v3102_v44, 1  ;;  %v3728_v62 = vmax.f32 %v3584_v24, %v3651_v11  ;;  %v3365_v15 = vsel %vm1063_vm4, %v3362_v23, %v3364_v41  ;;  %v3509_v12 = vsel %vm1208_vm5, %v3506_v17, %v3508_v19  ;;  %v3056_v23 = vld [vmem:[#allocation2 + $0x190] sm:$0xf] }
 0x1ff   : > { %v3653_v22 = vsel %vm1353_vm6, %v3650_v51, %v3652_v54  ;;  %v3441_v58 = vmax.f32 %v3297_v61, %v3365_v15  ;;  %v3223_v36 = vrot.slane %v3103_v50, 1  ;;  %v3366_v3 = vrot.slane %v3102_v44, 2  ;;  %v2963_v61 = vld [vmem:[#allocation2 + $0x190] sm:$0xf]  ;;  %v2726_v15 = vld [vmem:[#allocation2 + $0x160] sm:$0xf] }
 0x200   : > { %v3367_v47 = vrot.slane %v3103_v50, 2  ;;  %3760 = vst.msk [vmem:[%s5548_s8 + $0xb0] sm:$0xff] %vm290_vm0, %v3728_v62  ;;  %v3510_v5 = vrot.slane %v3102_v44, 3  ;;  %v3008_v16 = vmax.f32 %v2912_v57, %v2960_v10  ;;  %v2818_v37 = vmax.f32 %v5754_v13, %v5780_v20 }
 0x201   : > { %v2913_v52 = vmax.f32 %v2817_v59, %v5798_v55  ;;  %v3585_v60 = vmax.f32 %v3441_v58, %v3509_v12  ;;  %v3224_v49 = vsel %vm918_vm3, %v3222_v7, %v3223_v36  ;;  %v3511_v18 = vrot.slane %v3103_v50, 3  ;;  %v2774_v12 = vld [vmem:[#allocation2 + $0x178] sm:$0xf] }
 0x202   : > { %v3654_v46 = vrot.slane %v3102_v44, 4  ;;  %v3298_v28 = vmax.f32 %v3102_v44, %v3224_v49  ;;  %v3655_v26 = vrot.slane %v3103_v50, 4  ;;  %v3104_v53 = vmax.f32 %v3008_v16, %v3056_v23  ;;  %v3060_v23 = vld [vmem:[#allocation2 + $0x1b0] sm:$0xff] }
 0x203   : > { %v2914_v14 = vmax.f32 %v2818_v37, %v5806_v2  ;;  %v3729_v9 = vmax.f32 %v3585_v60, %v3653_v22  ;;  %v3368_v56 = vsel %vm1063_vm4, %v3366_v3, %v3367_v47  ;;  %v3009_v13 = vmax.f32 %v2913_v52, %v5824_v43 }
 0x204   : > { %v2819_v40 = vmax.f32 %v2723_v8, %v2771_v4  ;;  %v3442_v6 = vmax.f32 %v3298_v28, %v3368_v56  ;;  %v3225_v48 = vrot.slane %v3104_v53, 1  ;;  %v3369_v17 = vrot.slane %v3104_v53, 2 }
 0x205   : > { %v3513_v33 = vrot.slane %v3104_v53, 3  ;;  %3761 = vst.msk [vmem:[%s5548_s8 + $0xb8] sm:$0xff] %vm290_vm0, %v3729_v9  ;;  %v3512_v1 = vsel %vm1208_vm5, %v3510_v5, %v3511_v18  ;;  %v3657_v51 = vrot.slane %v3104_v53, 4  ;;  %v3010_v27 = vmax.f32 %v2914_v14, %v5832_v32  ;;  %v2870_v9 = vld [vmem:[#allocation2 + $0x190] sm:$0xf] }
 0x206   : > { %v3105_v38 = vmax.f32 %v3009_v13, %v5850_v29  ;;  %v3586_v35 = vmax.f32 %v3442_v6, %v3512_v1  ;;  %v3226_v42 = vsel %vm918_vm3, %v3223_v36, %v3225_v48  ;;  %v2915_v34 = vmax.f32 %v2819_v40, %v2867_v30  ;;  %v3061_v40 = vld [vmem:[#allocation2 + $0x1b8] sm:$0xff] }
 0x207   : > { %v2820_v45 = vmax.f32 %v5772_v21, %v5798_v55  ;;  %v3656_v41 = vsel %vm1353_vm6, %v3654_v46, %v3655_v26  ;;  %v3299_v19 = vmax.f32 %v3103_v50, %v3226_v42  ;;  %v3106_v39 = vmax.f32 %v3010_v27, %v5858_v31 }
 0x208   : > { %v3227_v54 = vrot.slane %v3105_v38, 1  ;;  %v3730_v25 = vmax.f32 %v3586_v35, %v3656_v41  ;;  %v3370_v44 = vsel %vm1063_vm4, %v3367_v47, %v3369_v17  ;;  %v3514_v63 = vsel %vm1208_vm5, %v3511_v18, %v3513_v33  ;;  %v3059_v47 = vld [vmem:[#allocation2 + $0x1a8] sm:$0xf] }
 0x209   : > { %v3658_v24 = vsel %vm1353_vm6, %v3655_v26, %v3657_v51  ;;  %v3443_v0 = vmax.f32 %v3299_v19, %v3370_v44  ;;  %v3228_v57 = vrot.slane %v3106_v39, 1  ;;  %v3371_v59 = vrot.slane %v3105_v38, 2  ;;  %v2777_v44 = vld [vmem:[#allocation2 + $0x190] sm:$0xf] }
 0x20a   : > { %v3372_v11 = vrot.slane %v3106_v39, 2  ;;  %3762 = vst.msk [vmem:[%s5548_s8 + $0xc0] sm:$0xff] %vm290_vm0, %v3730_v25  ;;  %v3515_v21 = vrot.slane %v3105_v38, 3  ;;  %v3011_v7 = vmax.f32 %v2915_v34, %v2963_v61  ;;  %v2821_v50 = vmax.f32 %v5780_v20, %v5806_v2  ;;  %v2729_v25 = vld [vmem:[#allocation2 + $0x178] sm:$0xf] }
 0x20b   : > { %v2916_v62 = vmax.f32 %v2820_v45, %v5824_v43  ;;  %v3587_v22 = vmax.f32 %v3443_v0, %v3514_v63  ;;  %v3229_v58 = vsel %vm918_vm3, %v3227_v54, %v3228_v57  ;;  %v3516_v36 = vrot.slane %v3106_v39, 3 }
 0x20c   : > { %v3659_v3 = vrot.slane %v3105_v38, 4  ;;  %v3300_v10 = vmax.f32 %v3105_v38, %v3229_v58  ;;  %v3660_v5 = vrot.slane %v3106_v39, 4  ;;  %v3107_v16 = vmax.f32 %v3011_v7, %v3059_v47  ;;  %v2873_v47 = vld [vmem:[#allocation2 + $0x1a8] sm:$0xf] }
 0x20d   : > { %v2917_v37 = vmax.f32 %v2821_v50, %v5832_v32  ;;  %v3731_v52 = vmax.f32 %v3587_v22, %v3658_v24  ;;  %v3373_v8 = vsel %vm1063_vm4, %v3371_v59, %v3372_v11  ;;  %v3012_v20 = vmax.f32 %v2916_v62, %v5850_v29  ;;  %v3062_v59 = vld [vmem:[#allocation2 + $0x1c0] sm:$0xf]  ;;  %v3063_v22 = vld [vmem:[#allocation2 + $0x1c8] sm:$0xff] }
 0x20e   : > { %v2822_v4 = vmax.f32 %v2726_v15, %v2774_v12  ;;  %v3444_v60 = vmax.f32 %v3300_v10, %v3373_v8  ;;  %v3230_v49 = vrot.slane %v3107_v16, 1  ;;  %v3374_v18 = vrot.slane %v3107_v16, 2 }
 0x20f   : > { %v3518_v46 = vrot.slane %v3107_v16, 3  ;;  %3763 = vst.msk [vmem:[%s5548_s8 + $0xc8] sm:$0xff] %vm290_vm0, %v3731_v52  ;;  %v3517_v28 = vsel %vm1208_vm5, %v3515_v21, %v3516_v36  ;;  %v3662_v26 = vrot.slane %v3107_v16, 4  ;;  %v3013_v53 = vmax.f32 %v2917_v37, %v5858_v31  ;;  %v3064_v16 = vld [vmem:[#allocation2 + $0x1d0] sm:$0xff] }
 0x210   : > { %v3108_v14 = vmax.f32 %v3012_v20, %v3060_v23  ;;  %v3588_v56 = vmax.f32 %v3444_v60, %v3517_v28  ;;  %v3231_v13 = vsel %vm918_vm3, %v3228_v57, %v3230_v49  ;;  %v2918_v6 = vmax.f32 %v2822_v4, %v2870_v9 }
 0x211   : > { %v2823_v48 = vmax.f32 %v5798_v55, %v5824_v43  ;;  %v3661_v17 = vsel %vm1353_vm6, %v3659_v3, %v3660_v5  ;;  %v3301_v33 = vmax.f32 %v3106_v39, %v3231_v13  ;;  %v5884_v1 = vmax.f32 %v3013_v53, %v3061_v40  ;;  %v2966_v55 = vld [vmem:[#allocation2 + $0x1a8] sm:$0xf]  ;;  %v2969_v53 = vld [vmem:[#allocation2 + $0x1c0] sm:$0xf] }
 0x212   : > { %v3232_v51 = vrot.slane %v3108_v14, 1  ;;  %v3732_v27 = vmax.f32 %v3588_v56, %v3661_v17  ;;  %v3375_v38 = vsel %vm1063_vm4, %v3372_v11, %v3374_v18  ;;  %v3519_v30 = vsel %vm1208_vm5, %v3516_v36, %v3518_v46 }
 0x213   : > { %v3663_v35 = vsel %vm1353_vm6, %v3660_v5, %v3662_v26  ;;  %v3445_v42 = vmax.f32 %v3301_v33, %v3375_v38  ;;  %v3233_v34 = vrot.slane %v5884_v1, 1  ;;  %v3376_v45 = vrot.slane %v3108_v14, 2 }
 0x214   : > { %v3377_v41 = vrot.slane %v5884_v1, 2  ;;  %3764 = vst.msk [vmem:[%s5548_s8 + $0xd0] sm:$0xff] %vm290_vm0, %v3732_v27  ;;  %v3520_v43 = vrot.slane %v3108_v14, 3  ;;  %v3014_v19 = vmax.f32 %v2918_v6, %v2966_v55  ;;  %v2824_v39 = vmax.f32 %v5806_v2, %v5832_v32 }
 0x215   : > { %v2919_v54 = vmax.f32 %v2823_v48, %v5850_v29  ;;  %v3589_v63 = vmax.f32 %v3445_v42, %v3519_v30  ;;  %v3234_v24 = vsel %vm918_vm3, %v3232_v51, %v3233_v34  ;;  %v3521_v0 = vrot.slane %v5884_v1, 3  ;;  %v3065_v48 = vld [vmem:[#allocation2 + $0x1d8] sm:$0xf] }
 0x216   : > { %v3664_v57 = vrot.slane %v3108_v14, 4  ;;  %v3302_v11 = vmax.f32 %v3108_v14, %v3234_v24  ;;  %v3665_v61 = vrot.slane %v5884_v1, 4  ;;  %v3110_v21 = vmax.f32 %v3014_v19, %v3062_v59 }
 0x217   : > { %v2920_v7 = vmax.f32 %v2824_v39, %v5858_v31  ;;  %v3733_v50 = vmax.f32 %v3589_v63, %v3663_v35  ;;  %v3378_v2 = vsel %vm1063_vm4, %v3376_v45, %v3377_v41  ;;  %v3015_v32 = vmax.f32 %v2919_v54, %v3060_v23 }
 0x218   : > { %v2825_v29 = vmax.f32 %v2729_v25, %v2777_v44  ;;  %v3446_v62 = vmax.f32 %v3302_v11, %v3378_v2  ;;  %v3235_v15 = vrot.slane %v3110_v21, 1  ;;  %v3379_v12 = vrot.slane %v3110_v21, 2 }
 0x219   : > { %3765 = vst.msk [vmem:[%s5548_s8 + $0xd8] sm:$0xff] %vm290_vm0, %v3733_v50  ;;  %v3522_v58 = vsel %vm1208_vm5, %v3520_v43, %v3521_v0  ;;  %v3016_v36 = vmax.f32 %v2920_v7, %v3061_v40  ;;  %v3111_v3 = vmax.f32 %v3015_v32, %v3063_v22  ;;  %v3523_v31 = vrot.slane %v3110_v21, 3 }
 0x21a   : > { %v3590_v10 = vmax.f32 %v3446_v62, %v3522_v58  ;;  %v3236_v5 = vsel %vm918_vm3, %v3233_v34, %v3235_v15  ;;  %v2921_v37 = vmax.f32 %v2825_v29, %v2873_v47  ;;  %v3666_v52 = vsel %vm1353_vm6, %v3664_v57, %v3665_v61 }
 0x21b   : > { %v3303_v8 = vmax.f32 %v5884_v1, %v3236_v5  ;;  %v3112_v20 = vmax.f32 %v3016_v36, %v3064_v16  ;;  %v3237_v4 = vrot.slane %v3111_v3, 1  ;;  %v3380_v49 = vsel %vm1063_vm4, %v3377_v41, %v3379_v12 }
 0x21c   : > { %v3734_v60 = vmax.f32 %v3590_v10, %v3666_v52  ;;  %v3667_v18 = vrot.slane %v3110_v21, 4  ;;  %v3381_v28 = vrot.slane %v3111_v3, 2  ;;  %v3524_v14 = vsel %vm1208_vm5, %v3521_v0, %v3523_v31 }
 0x21d   : > { %v3447_v46 = vmax.f32 %v3303_v8, %v3380_v49  ;;  %v3238_v23 = vrot.slane %v3112_v20, 1  ;;  %v3382_v26 = vrot.slane %v3112_v20, 2  ;;  %v3017_v9 = vmax.f32 %v2921_v37, %v2969_v53 }
 0x21e   : > { %3766 = vst.msk [vmem:[%s5548_s8 + $0xe0] sm:$0xff] %vm290_vm0, %v3734_v60  ;;  %v3525_v40 = vrot.slane %v3111_v3, 3  ;;  %v3526_v6 = vrot.slane %v3112_v20, 3  ;;  %v3668_v17 = vsel %vm1353_vm6, %v3665_v61, %v3667_v18  ;;  %v3669_v38 = vrot.slane %v3111_v3, 4 }
 0x21f   : > { %v3591_v56 = vmax.f32 %v3447_v46, %v3524_v14  ;;  %v3239_v13 = vsel %vm918_vm3, %v3237_v4, %v3238_v23  ;;  %v3113_v1 = vmax.f32 %v3017_v9, %v3065_v48  ;;  %v3383_v27 = vsel %vm1063_vm4, %v3381_v28, %v3382_v26 }
 0x220   : > { %v3304_v33 = vmax.f32 %v3111_v3, %v3239_v13  ;;  %v3670_v30 = vrot.slane %v3112_v20, 4  ;;  %v3527_v45 = vsel %vm1208_vm5, %v3525_v40, %v3526_v6 }
 0x221   : > { %v3735_v51 = vmax.f32 %v3591_v56, %v3668_v17  ;;  %v3240_v42 = vrot.slane %v3113_v1, 1  ;;  %v3384_v34 = vrot.slane %v3113_v1, 2  ;;  %v3528_v43 = vrot.slane %v3113_v1, 3 }
 0x222   : > { %v3448_v35 = vmax.f32 %v3304_v33, %v3383_v27  ;;  %v3671_v19 = vsel %vm1353_vm6, %v3669_v38, %v3670_v30  ;;  %v3672_v44 = vrot.slane %v3113_v1, 4 }
 0x223   : > { %3767 = vst.msk [vmem:[%s5548_s8 + $0xe8] sm:$0xff] %vm290_vm0, %v3735_v51  ;;  %v3241_v55 = vsel %vm918_vm3, %v3238_v23, %v3240_v42  ;;  %v3385_v25 = vsel %vm1063_vm4, %v3382_v26, %v3384_v34  ;;  %v3529_v24 = vsel %vm1208_vm5, %v3526_v6, %v3528_v43 }
 0x224   : > { %v3592_v41 = vmax.f32 %v3448_v35, %v3527_v45  ;;  %v3305_v39 = vmax.f32 %v3112_v20, %v3241_v55  ;;  %v3673_v57 = vsel %vm1353_vm6, %v3670_v30, %v3672_v44 }
 0x226   : > { %v3736_v54 = vmax.f32 %v3592_v41, %v3671_v19  ;;  %v3449_v63 = vmax.f32 %v3305_v39, %v3385_v25 }
 0x228   : > { %3768 = vst.msk [vmem:[%s5548_s8 + $0xf0] sm:$0xff] %vm290_vm0, %v3736_v54  ;;  %v3593_v0 = vmax.f32 %v3449_v63, %v3529_v24 }
 0x22a   : > { %v3737_v59 = vmax.f32 %v3593_v0, %v3673_v57 }
 0x22c   : > { %3769 = vst.msk [vmem:[%s5548_s8 + $0xf8] sm:$0xff] %vm290_vm0, %v3737_v59 }
 0x22d PF: > { %s15_s17 = sadd.s32 1, %s4063_s17   ;;  %s5962_s15 = smov %s4059_s16 }
 0x22e   : > { %p12_p5 = scmp.ge.s32.totalorder %s15_s17, 4   ;;  %s5963_s16 = smov %s5965_s18 }
 0x230   :  { %14 = sbr.rel (!%p12_p5) target bundleno = 2 (0x2), region = 95 }

</bundles_post_ra>
